<compile_context>
chip_gen: v7x
topology: tpu7x:2x2x1
jax: 0.10.0
libtpu: 0.0.40
codegen_flags: <defaults>
</compile_context>

<pallas_src>
import functools
import math

import jax
import jax.numpy as jnp
from jax import lax
from jax.experimental import pallas as pl
from jax.experimental.pallas import tpu as pltpu

# ---------------------------------------------------------------------------
# configuration (DiffEqTransformer defaults used by model_itemsets.py)
# ---------------------------------------------------------------------------
D_MODEL = 512
NHEAD = 8
HEAD_DIM = D_MODEL // NHEAD          # 64
DIM_FF = 512                         # DiffEqTransformer uses 512 (module default 2048)
BATCH = 2                            # N
SEQLEN = 8                           # T


# ---------------------------------------------------------------------------
# fused encoder-layer kernel: one invocation handles all T*N rows
# ---------------------------------------------------------------------------
def _encoder_layer_kernel(x_ref, wcat_ref, ow_ref, ob_ref, n1s_ref, n1b_ref,
                          f1w_ref, f1b_ref, f2w_ref, f2b_ref, n2s_ref, n2b_ref,
                          mask_ref, o_ref, *, nhead, head_dim, d_model):
    inv_sqrt_d = 1.0 / math.sqrt(head_dim)
    x = x_ref[...]                                    # (TN, D) f32
    mask = mask_ref[...]                              # (TN, TN) same-batch 0/1 mask

    # Fused q / value-path projection: one lane-dense (TN,D)@(D,2D) bf16 matmul.
    qx = jnp.dot(x.astype(jnp.bfloat16), wcat_ref[...],
                 preferred_element_type=jnp.float32)  # (TN, 2D)
    q = qx[:, :d_model]                               # x @ qw
    xav = qx[:, d_model:]                             # x @ qw @ blockdiag(qw^T vw)/sqrt(d)
    qsq = q * q

    # Per-head L2 attention; out_proj folded in per head (no concat, no scratch).
    sa = jnp.zeros_like(x)                            # f32 (TN, D)
    for h in range(nhead):                            # static unroll, 8 tiny matmuls
        lo = h * head_dim
        qh = q[:, lo:lo + head_dim]                   # (TN, Dh) f32
        xh = xav[:, lo:lo + head_dim].astype(jnp.bfloat16)
        # Gram-matrix form of the pairwise squared distances (same identity as PyTorch).
        gram = lax.dot_general(qh, qh, (((1,), (1,)), ((), ())),
                               preferred_element_type=jnp.float32)    # (TN, TN)
        rn = jnp.sum(qsq[:, lo:lo + head_dim], axis=-1, keepdims=True)
        sq = jnp.maximum(rn + jnp.transpose(rn) - 2.0 * gram, 0.0)
        # sq >= 0  ->  logits <= 0  ->  exp <= 1, and the (same-batch) diagonal is
        # exactly 1, so no row-max subtraction is needed and the denominator is >= 1.
        e = jnp.exp(-sq * inv_sqrt_d) * mask
        attn = e * pl.reciprocal(jnp.sum(e, axis=-1, keepdims=True), approx=True)
        ctx = jnp.dot(attn.astype(jnp.bfloat16), xh,
                      preferred_element_type=jnp.float32)             # (TN, Dh)
        sa = sa + jnp.dot(ctx.astype(jnp.bfloat16), ow_ref[lo:lo + head_dim, :],
                          preferred_element_type=jnp.float32)         # out_proj slice

    # out_proj bias + residual + ActNorm1 (scale = exp(weight), precomputed).
    h1 = (x + sa + ob_ref[...] + n1b_ref[...]) * n1s_ref[...]

    # ConcatLinear FF (time column folded into effective biases) + residual + ActNorm2.
    ff = jnp.dot(h1.astype(jnp.bfloat16), f1w_ref[...],
                 preferred_element_type=jnp.float32) + f1b_ref[...]
    ff = jnp.maximum(ff, 0.0)                                         # relu
    ff = jnp.dot(ff.astype(jnp.bfloat16), f2w_ref[...],
                 preferred_element_type=jnp.float32) + f2b_ref[...]
    o_ref[...] = (h1 + ff + n2b_ref[...]) * n2s_ref[...]


# ---------------------------------------------------------------------------
# parameter-only precompute: run ONCE per ODE solve, not per evaluation
# ---------------------------------------------------------------------------
def prepare_params(params, seqlen, batch):
    D, Dh = D_MODEL, HEAD_DIM
    hp = lax.Precision.HIGHEST
    qw = params["q_weight"]                                   # (D, H, Dh)
    qw_flat = qw.reshape(D, D)
    # Per-head value-path weight: qw_h^T vw_h / sqrt(Dh), folded into the q projection.
    wqv = jnp.einsum("mhd,mhe->hde", qw, params["v_weight"],
                     precision=hp) / math.sqrt(Dh)            # (H, Dh, Dh)
    xav_w = jnp.einsum("mhd,hde->mhe", qw, wqv, precision=hp).reshape(D, D)
    w_cat = jnp.concatenate([qw_flat, xav_w], axis=1).astype(jnp.bfloat16)  # (D, 2D)

    tn = seqlen * batch
    bidx = jnp.arange(tn, dtype=jnp.int32) % batch            # batch id of each row
    seg_mask = (bidx[:, None] == bidx[None, :]).astype(jnp.float32)

    return {
        "w_cat": w_cat,
        "out_w": params["out_w"].astype(jnp.bfloat16),
        "out_b": params["out_b"],
        "n1_scale": jnp.exp(params["n1_w"]),
        "n1_b": params["n1_b"],
        "ff1_w": params["ff1_w"].astype(jnp.bfloat16),
        "ff1_wt": params["ff1_wt"],
        "ff1_b": params["ff1_b"],
        "ff2_w": params["ff2_w"].astype(jnp.bfloat16),
        "ff2_wt": params["ff2_wt"],
        "ff2_b": params["ff2_b"],
        "n2_scale": jnp.exp(params["n2_w"]),
        "n2_b": params["n2_b"],
        "seg_mask": seg_mask,
    }


# ---------------------------------------------------------------------------
# wrapper: forward(prepared_params, t, x) with x in PyTorch layout (T, N, D)
# ---------------------------------------------------------------------------
def encoder_layer_forward(prep, t, x_tnd):
    T, N, D = x_tnd.shape
    x2d = x_tnd.reshape(T * N, D)          # row-major: free reshape, no transpose
    # ConcatLinear: y = x @ Wx + t*w_t + b  ->  fold t*w_t into an effective bias.
    f1b_eff = prep["ff1_b"] + t * prep["ff1_wt"]
    f2b_eff = prep["ff2_b"] + t * prep["ff2_wt"]

    out = pl.pallas_call(
        functools.partial(_encoder_layer_kernel,
                          nhead=NHEAD, head_dim=HEAD_DIM, d_model=D),
        out_shape=jax.ShapeDtypeStruct((T * N, D), jnp.float32),
        compiler_params=pltpu.CompilerParams(vmem_limit_bytes=16 * 1024 * 1024),
    )(x2d, prep["w_cat"], prep["out_w"], prep["out_b"],
      prep["n1_scale"], prep["n1_b"],
      prep["ff1_w"], f1b_eff, prep["ff2_w"], f2b_eff,
      prep["n2_scale"], prep["n2_b"], prep["seg_mask"])
    return out.reshape(T, N, D)            # back to (T, N, D), also a free reshape


# ---------------------------------------------------------------------------
# pure-JAX f32 reference mirroring the PyTorch forward (for validation only)
# ---------------------------------------------------------------------------
def reference_forward(params, t, x_tnd):
    T, N, D = x_tnd.shape
    hp = lax.Precision.HIGHEST
    qw, vw = params["q_weight"], params["v_weight"]
    q = jnp.einsum("tbm,mhd->tbhd", x_tnd, qw, precision=hp)
    sq = (jnp.einsum("tbhd,tbhd->tbh", q, q, precision=hp)[:, None]
          + jnp.einsum("sbhd,sbhd->sbh", q, q, precision=hp)[None]
          - 2.0 * jnp.einsum("tbhd,sbhd->tsbh", q, q, precision=hp))
    attn = jax.nn.softmax(-sq / math.sqrt(HEAD_DIM), axis=1)
    A = jnp.einsum("mhd,nhd->hmn", qw, qw, precision=hp) / math.sqrt(HEAD_DIM)
    XA = jnp.einsum("tbm,hmn->tbhn", x_tnd, A, precision=hp)
    PXA = jnp.einsum("tsbh,sbhm->tbhm", attn, XA, precision=hp)
    PXAV = jnp.einsum("tbhm,mhd->tbhd", PXA, vw, precision=hp).reshape(T, N, D)
    sa = jnp.einsum("tbm,mn->tbn", PXAV, params["out_w"], precision=hp) + params["out_b"]
    h1 = (x_tnd + sa + params["n1_b"]) * jnp.exp(params["n1_w"])
    ff = jnp.maximum(jnp.einsum("tbm,mf->tbf", h1, params["ff1_w"], precision=hp)
                     + t * params["ff1_wt"] + params["ff1_b"], 0.0)
    ff = (jnp.einsum("tbf,fm->tbm", ff, params["ff2_w"], precision=hp)
          + t * params["ff2_wt"] + params["ff2_b"])
    return (h1 + ff + params["n2_b"]) * jnp.exp(params["n2_w"])


# ---------------------------------------------------------------------------
# deterministic parameter init (shapes follow the PyTorch __init__)
# ---------------------------------------------------------------------------
def init_params(key):
    ks = jax.random.split(key, 13)

    def dense(k, shape, fan_in):
        return jax.random.normal(k, shape, jnp.float32) / math.sqrt(fan_in)

    return {
        "q_weight": dense(ks[0], (D_MODEL, NHEAD, HEAD_DIM), D_MODEL),
        "v_weight": dense(ks[1], (D_MODEL, NHEAD, HEAD_DIM), D_MODEL),
        "out_w": dense(ks[2], (D_MODEL, D_MODEL), D_MODEL),
        "out_b": jnp.zeros((1, D_MODEL), jnp.float32),
        # ConcatLinear = Linear(d_in + 1, d_out): Wx (input cols), w_t (time col), bias.
        "ff1_w": dense(ks[3], (D_MODEL, DIM_FF), D_MODEL + 1),
        "ff1_wt": dense(ks[4], (1, DIM_FF), D_MODEL + 1),
        "ff1_b": 0.01 * jax.random.normal(ks[5], (1, DIM_FF), jnp.float32),
        "ff2_w": dense(ks[6], (DIM_FF, D_MODEL), DIM_FF + 1),
        "ff2_wt": dense(ks[7], (1, D_MODEL), DIM_FF + 1),
        "ff2_b": 0.01 * jax.random.normal(ks[8], (1, D_MODEL), jnp.float32),
        # ActNorm1d: y = (x + bias) * exp(weight)   (fixed params; see TODO above)
        "n1_w": 0.05 * jax.random.normal(ks[9], (1, D_MODEL), jnp.float32),
        "n1_b": 0.05 * jax.random.normal(ks[10], (1, D_MODEL), jnp.float32),
        "n2_w": 0.05 * jax.random.normal(ks[11], (1, D_MODEL), jnp.float32),
        "n2_b": 0.05 * jax.random.normal(ks[12], (1, D_MODEL), jnp.float32),
    }


if __name__ == "__main__":
    root = jax.random.PRNGKey(0)
    k_params, k_x = jax.random.split(root)
    params = init_params(k_params)
    x = jax.random.normal(k_x, (SEQLEN, BATCH, D_MODEL), jnp.float32)   # (T, N, D)
    t = jnp.float32(0.5)

    # One-time, per-ODE-solve precompute (weight fusion + bf16 cast + masks).
    prep = prepare_params(params, SEQLEN, BATCH)

    fwd = jax.jit(encoder_layer_forward)
    y = jax.block_until_ready(fwd(prep, t, x))

    assert y.shape == (SEQLEN, BATCH, D_MODEL), y.shape
    assert bool(jnp.all(jnp.isfinite(y)))

    # Validate against the pure-f32 reference; tolerance widened vs. the all-f32 kernel
    # because the weight matrices are deliberately stored in bf16 (f32 accumulation).
    y_ref = reference_forward(params, t, x)
    max_err = float(jnp.max(jnp.abs(y - y_ref)))
    mean_err = float(jnp.mean(jnp.abs(y - y_ref)))
    assert max_err < 5e-2, f"max abs diff vs reference: {max_err}"
    assert mean_err < 5e-3, f"mean abs diff vs reference: {mean_err}"

    print("KERNEL_OK")
</pallas_src>

<mosaic_0001>
module attributes {stable_mosaic.version = 11 : i64} {
  func.func @_encoder_layer_kernel(%arg0: memref<16x512xf32, #tpu.memory_space<vmem>>, %arg1: memref<512x1024xbf16, #tpu.memory_space<vmem>>, %arg2: memref<512x512xbf16, #tpu.memory_space<vmem>>, %arg3: memref<1x512xf32, #tpu.memory_space<vmem>>, %arg4: memref<1x512xf32, #tpu.memory_space<vmem>>, %arg5: memref<1x512xf32, #tpu.memory_space<vmem>>, %arg6: memref<512x512xbf16, #tpu.memory_space<vmem>>, %arg7: memref<1x512xf32, #tpu.memory_space<vmem>>, %arg8: memref<512x512xbf16, #tpu.memory_space<vmem>>, %arg9: memref<1x512xf32, #tpu.memory_space<vmem>>, %arg10: memref<1x512xf32, #tpu.memory_space<vmem>>, %arg11: memref<1x512xf32, #tpu.memory_space<vmem>>, %arg12: memref<16x16xf32, #tpu.memory_space<vmem>>, %arg13: memref<16x512xf32, #tpu.memory_space<vmem>>) attributes {dimension_semantics = [], scalar_prefetch = 0 : i64, scratch_operands = 0 : i64, tpu.core_type = #tpu.core_type<tc>} {
    %c0 = arith.constant 0 : index
    %c0_0 = arith.constant 0 : index
    %0 = vector.load %arg0[%c0, %c0_0] : memref<16x512xf32, #tpu.memory_space<vmem>>, vector<16x512xf32>
    %c0_1 = arith.constant 0 : index
    %c0_2 = arith.constant 0 : index
    %1 = vector.load %arg12[%c0_1, %c0_2] : memref<16x16xf32, #tpu.memory_space<vmem>>, vector<16x16xf32>
    %2 = arith.truncf %0 : vector<16x512xf32> to vector<16x512xbf16>
    %c0_3 = arith.constant 0 : index
    %c0_4 = arith.constant 0 : index
    %3 = vector.load %arg1[%c0_3, %c0_4] : memref<512x1024xbf16, #tpu.memory_space<vmem>>, vector<512x1024xbf16>
    %cst = arith.constant dense<0.000000e+00> : vector<16x1024xf32>
    %4 = tpu.matmul %2, %3, %cst {dimension_numbers = #tpu.dot_dimension_numbers<[1], [0], [0], [1], [0, 0, 1, 1], [], []>} : vector<16x512xbf16>, vector<512x1024xbf16>, vector<16x1024xf32> -> vector<16x1024xf32>
    %5 = vector.extract_strided_slice %4 {offsets = [0, 0], sizes = [16, 512], strides = [1, 1]} : vector<16x1024xf32> to vector<16x512xf32>
    %6 = vector.extract_strided_slice %4 {offsets = [0, 512], sizes = [16, 512], strides = [1, 1]} : vector<16x1024xf32> to vector<16x512xf32>
    %7 = arith.mulf %5, %5 : vector<16x512xf32>
    %cst_5 = arith.constant 0.000000e+00 : f32
    %8 = vector.broadcast %cst_5 : f32 to vector<16x512xf32>
    %9 = vector.extract_strided_slice %5 {offsets = [0, 0], sizes = [16, 64], strides = [1, 1]} : vector<16x512xf32> to vector<16x64xf32>
    %10 = vector.extract_strided_slice %6 {offsets = [0, 0], sizes = [16, 64], strides = [1, 1]} : vector<16x512xf32> to vector<16x64xf32>
    %11 = arith.truncf %10 : vector<16x64xf32> to vector<16x64xbf16>
    %cst_6 = arith.constant dense<0.000000e+00> : vector<16x16xf32>
    %12 = tpu.matmul %9, %9, %cst_6 {dimension_numbers = #tpu.dot_dimension_numbers<[1], [1], [0], [0], [0, 0, 1, 0], [], []>} : vector<16x64xf32>, vector<16x64xf32>, vector<16x16xf32> -> vector<16x16xf32>
    %13 = vector.extract_strided_slice %7 {offsets = [0, 0], sizes = [16, 64], strides = [1, 1]} : vector<16x512xf32> to vector<16x64xf32>
    %cst_7 = arith.constant dense<0.000000e+00> : vector<16xf32>
    %14 = vector.multi_reduction <add>, %13, %cst_7 [1] : vector<16x64xf32> to vector<16xf32>
    %15 = vector.shape_cast %14 : vector<16xf32> to vector<16x1xf32>
    %16 = tpu.transpose %15, [1, 0] : vector<16x1xf32> -> vector<1x16xf32>
    %17 = vector.broadcast %15 : vector<16x1xf32> to vector<16x16xf32>
    %18 = vector.broadcast %16 : vector<1x16xf32> to vector<16x16xf32>
    %19 = arith.addf %17, %18 : vector<16x16xf32>
    %cst_8 = arith.constant 2.000000e+00 : f32
    %20 = vector.broadcast %cst_8 : f32 to vector<16x16xf32>
    %21 = arith.mulf %20, %12 : vector<16x16xf32>
    %22 = arith.subf %19, %21 : vector<16x16xf32>
    %cst_9 = arith.constant 0.000000e+00 : f32
    %23 = vector.broadcast %cst_9 : f32 to vector<16x16xf32>
    %24 = arith.maximumf %22, %23 : vector<16x16xf32>
    %cst_10 = arith.constant 0.000000e+00 : f32
    %25 = vector.broadcast %cst_10 : f32 to vector<16x16xf32>
    %26 = arith.subf %25, %24 : vector<16x16xf32>
    %cst_11 = arith.constant 1.250000e-01 : f32
    %27 = vector.broadcast %cst_11 : f32 to vector<16x16xf32>
    %28 = arith.mulf %26, %27 : vector<16x16xf32>
    %29 = math.exp %28 : vector<16x16xf32>
    %30 = arith.mulf %29, %1 : vector<16x16xf32>
    %cst_12 = arith.constant dense<0.000000e+00> : vector<16xf32>
    %31 = vector.multi_reduction <add>, %30, %cst_12 [1] : vector<16x16xf32> to vector<16xf32>
    %32 = vector.shape_cast %31 : vector<16xf32> to vector<16x1xf32>
    %33 = tpu.reciprocal %32 {approx = true} : vector<16x1xf32> -> vector<16x1xf32>
    %34 = vector.broadcast %33 : vector<16x1xf32> to vector<16x16xf32>
    %35 = arith.mulf %30, %34 : vector<16x16xf32>
    %36 = arith.truncf %35 : vector<16x16xf32> to vector<16x16xbf16>
    %cst_13 = arith.constant dense<0.000000e+00> : vector<16x64xf32>
    %37 = tpu.matmul %36, %11, %cst_13 {dimension_numbers = #tpu.dot_dimension_numbers<[1], [0], [0], [1], [0, 0, 1, 1], [], []>} : vector<16x16xbf16>, vector<16x64xbf16>, vector<16x64xf32> -> vector<16x64xf32>
    %38 = arith.truncf %37 : vector<16x64xf32> to vector<16x64xbf16>
    %c0_14 = arith.constant 0 : index
    %c0_15 = arith.constant 0 : index
    %39 = vector.load %arg2[%c0_14, %c0_15] : memref<512x512xbf16, #tpu.memory_space<vmem>>, vector<64x512xbf16>
    %cst_16 = arith.constant dense<0.000000e+00> : vector<16x512xf32>
    %40 = tpu.matmul %38, %39, %cst_16 {dimension_numbers = #tpu.dot_dimension_numbers<[1], [0], [0], [1], [0, 0, 1, 1], [], []>} : vector<16x64xbf16>, vector<64x512xbf16>, vector<16x512xf32> -> vector<16x512xf32>
    %41 = arith.addf %8, %40 : vector<16x512xf32>
    %42 = vector.extract_strided_slice %5 {offsets = [0, 64], sizes = [16, 64], strides = [1, 1]} : vector<16x512xf32> to vector<16x64xf32>
    %43 = vector.extract_strided_slice %6 {offsets = [0, 64], sizes = [16, 64], strides = [1, 1]} : vector<16x512xf32> to vector<16x64xf32>
    %44 = arith.truncf %43 : vector<16x64xf32> to vector<16x64xbf16>
    %cst_17 = arith.constant dense<0.000000e+00> : vector<16x16xf32>
    %45 = tpu.matmul %42, %42, %cst_17 {dimension_numbers = #tpu.dot_dimension_numbers<[1], [1], [0], [0], [0, 0, 1, 0], [], []>} : vector<16x64xf32>, vector<16x64xf32>, vector<16x16xf32> -> vector<16x16xf32>
    %46 = vector.extract_strided_slice %7 {offsets = [0, 64], sizes = [16, 64], strides = [1, 1]} : vector<16x512xf32> to vector<16x64xf32>
    %cst_18 = arith.constant dense<0.000000e+00> : vector<16xf32>
    %47 = vector.multi_reduction <add>, %46, %cst_18 [1] : vector<16x64xf32> to vector<16xf32>
    %48 = vector.shape_cast %47 : vector<16xf32> to vector<16x1xf32>
    %49 = tpu.transpose %48, [1, 0] : vector<16x1xf32> -> vector<1x16xf32>
    %50 = vector.broadcast %48 : vector<16x1xf32> to vector<16x16xf32>
    %51 = vector.broadcast %49 : vector<1x16xf32> to vector<16x16xf32>
    %52 = arith.addf %50, %51 : vector<16x16xf32>
    %cst_19 = arith.constant 2.000000e+00 : f32
    %53 = vector.broadcast %cst_19 : f32 to vector<16x16xf32>
    %54 = arith.mulf %53, %45 : vector<16x16xf32>
    %55 = arith.subf %52, %54 : vector<16x16xf32>
    %cst_20 = arith.constant 0.000000e+00 : f32
    %56 = vector.broadcast %cst_20 : f32 to vector<16x16xf32>
    %57 = arith.maximumf %55, %56 : vector<16x16xf32>
    %cst_21 = arith.constant 0.000000e+00 : f32
    %58 = vector.broadcast %cst_21 : f32 to vector<16x16xf32>
    %59 = arith.subf %58, %57 : vector<16x16xf32>
    %cst_22 = arith.constant 1.250000e-01 : f32
    %60 = vector.broadcast %cst_22 : f32 to vector<16x16xf32>
    %61 = arith.mulf %59, %60 : vector<16x16xf32>
    %62 = math.exp %61 : vector<16x16xf32>
    %63 = arith.mulf %62, %1 : vector<16x16xf32>
    %cst_23 = arith.constant dense<0.000000e+00> : vector<16xf32>
    %64 = vector.multi_reduction <add>, %63, %cst_23 [1] : vector<16x16xf32> to vector<16xf32>
    %65 = vector.shape_cast %64 : vector<16xf32> to vector<16x1xf32>
    %66 = tpu.reciprocal %65 {approx = true} : vector<16x1xf32> -> vector<16x1xf32>
    %67 = vector.broadcast %66 : vector<16x1xf32> to vector<16x16xf32>
    %68 = arith.mulf %63, %67 : vector<16x16xf32>
    %69 = arith.truncf %68 : vector<16x16xf32> to vector<16x16xbf16>
    %cst_24 = arith.constant dense<0.000000e+00> : vector<16x64xf32>
    %70 = tpu.matmul %69, %44, %cst_24 {dimension_numbers = #tpu.dot_dimension_numbers<[1], [0], [0], [1], [0, 0, 1, 1], [], []>} : vector<16x16xbf16>, vector<16x64xbf16>, vector<16x64xf32> -> vector<16x64xf32>
    %71 = arith.truncf %70 : vector<16x64xf32> to vector<16x64xbf16>
    %c64 = arith.constant 64 : index
    %c0_25 = arith.constant 0 : index
    %72 = vector.load %arg2[%c64, %c0_25] : memref<512x512xbf16, #tpu.memory_space<vmem>>, vector<64x512xbf16>
    %cst_26 = arith.constant dense<0.000000e+00> : vector<16x512xf32>
    %73 = tpu.matmul %71, %72, %cst_26 {dimension_numbers = #tpu.dot_dimension_numbers<[1], [0], [0], [1], [0, 0, 1, 1], [], []>} : vector<16x64xbf16>, vector<64x512xbf16>, vector<16x512xf32> -> vector<16x512xf32>
    %74 = arith.addf %41, %73 : vector<16x512xf32>
    %75 = vector.extract_strided_slice %5 {offsets = [0, 128], sizes = [16, 64], strides = [1, 1]} : vector<16x512xf32> to vector<16x64xf32>
    %76 = vector.extract_strided_slice %6 {offsets = [0, 128], sizes = [16, 64], strides = [1, 1]} : vector<16x512xf32> to vector<16x64xf32>
    %77 = arith.truncf %76 : vector<16x64xf32> to vector<16x64xbf16>
    %cst_27 = arith.constant dense<0.000000e+00> : vector<16x16xf32>
    %78 = tpu.matmul %75, %75, %cst_27 {dimension_numbers = #tpu.dot_dimension_numbers<[1], [1], [0], [0], [0, 0, 1, 0], [], []>} : vector<16x64xf32>, vector<16x64xf32>, vector<16x16xf32> -> vector<16x16xf32>
    %79 = vector.extract_strided_slice %7 {offsets = [0, 128], sizes = [16, 64], strides = [1, 1]} : vector<16x512xf32> to vector<16x64xf32>
    %cst_28 = arith.constant dense<0.000000e+00> : vector<16xf32>
    %80 = vector.multi_reduction <add>, %79, %cst_28 [1] : vector<16x64xf32> to vector<16xf32>
    %81 = vector.shape_cast %80 : vector<16xf32> to vector<16x1xf32>
    %82 = tpu.transpose %81, [1, 0] : vector<16x1xf32> -> vector<1x16xf32>
    %83 = vector.broadcast %81 : vector<16x1xf32> to vector<16x16xf32>
    %84 = vector.broadcast %82 : vector<1x16xf32> to vector<16x16xf32>
    %85 = arith.addf %83, %84 : vector<16x16xf32>
    %cst_29 = arith.constant 2.000000e+00 : f32
    %86 = vector.broadcast %cst_29 : f32 to vector<16x16xf32>
    %87 = arith.mulf %86, %78 : vector<16x16xf32>
    %88 = arith.subf %85, %87 : vector<16x16xf32>
    %cst_30 = arith.constant 0.000000e+00 : f32
    %89 = vector.broadcast %cst_30 : f32 to vector<16x16xf32>
    %90 = arith.maximumf %88, %89 : vector<16x16xf32>
    %cst_31 = arith.constant 0.000000e+00 : f32
    %91 = vector.broadcast %cst_31 : f32 to vector<16x16xf32>
    %92 = arith.subf %91, %90 : vector<16x16xf32>
    %cst_32 = arith.constant 1.250000e-01 : f32
    %93 = vector.broadcast %cst_32 : f32 to vector<16x16xf32>
    %94 = arith.mulf %92, %93 : vector<16x16xf32>
    %95 = math.exp %94 : vector<16x16xf32>
    %96 = arith.mulf %95, %1 : vector<16x16xf32>
    %cst_33 = arith.constant dense<0.000000e+00> : vector<16xf32>
    %97 = vector.multi_reduction <add>, %96, %cst_33 [1] : vector<16x16xf32> to vector<16xf32>
    %98 = vector.shape_cast %97 : vector<16xf32> to vector<16x1xf32>
    %99 = tpu.reciprocal %98 {approx = true} : vector<16x1xf32> -> vector<16x1xf32>
    %100 = vector.broadcast %99 : vector<16x1xf32> to vector<16x16xf32>
    %101 = arith.mulf %96, %100 : vector<16x16xf32>
    %102 = arith.truncf %101 : vector<16x16xf32> to vector<16x16xbf16>
    %cst_34 = arith.constant dense<0.000000e+00> : vector<16x64xf32>
    %103 = tpu.matmul %102, %77, %cst_34 {dimension_numbers = #tpu.dot_dimension_numbers<[1], [0], [0], [1], [0, 0, 1, 1], [], []>} : vector<16x16xbf16>, vector<16x64xbf16>, vector<16x64xf32> -> vector<16x64xf32>
    %104 = arith.truncf %103 : vector<16x64xf32> to vector<16x64xbf16>
    %c128 = arith.constant 128 : index
    %c0_35 = arith.constant 0 : index
    %105 = vector.load %arg2[%c128, %c0_35] : memref<512x512xbf16, #tpu.memory_space<vmem>>, vector<64x512xbf16>
    %cst_36 = arith.constant dense<0.000000e+00> : vector<16x512xf32>
    %106 = tpu.matmul %104, %105, %cst_36 {dimension_numbers = #tpu.dot_dimension_numbers<[1], [0], [0], [1], [0, 0, 1, 1], [], []>} : vector<16x64xbf16>, vector<64x512xbf16>, vector<16x512xf32> -> vector<16x512xf32>
    %107 = arith.addf %74, %106 : vector<16x512xf32>
    %108 = vector.extract_strided_slice %5 {offsets = [0, 192], sizes = [16, 64], strides = [1, 1]} : vector<16x512xf32> to vector<16x64xf32>
    %109 = vector.extract_strided_slice %6 {offsets = [0, 192], sizes = [16, 64], strides = [1, 1]} : vector<16x512xf32> to vector<16x64xf32>
    %110 = arith.truncf %109 : vector<16x64xf32> to vector<16x64xbf16>
    %cst_37 = arith.constant dense<0.000000e+00> : vector<16x16xf32>
    %111 = tpu.matmul %108, %108, %cst_37 {dimension_numbers = #tpu.dot_dimension_numbers<[1], [1], [0], [0], [0, 0, 1, 0], [], []>} : vector<16x64xf32>, vector<16x64xf32>, vector<16x16xf32> -> vector<16x16xf32>
    %112 = vector.extract_strided_slice %7 {offsets = [0, 192], sizes = [16, 64], strides = [1, 1]} : vector<16x512xf32> to vector<16x64xf32>
    %cst_38 = arith.constant dense<0.000000e+00> : vector<16xf32>
    %113 = vector.multi_reduction <add>, %112, %cst_38 [1] : vector<16x64xf32> to vector<16xf32>
    %114 = vector.shape_cast %113 : vector<16xf32> to vector<16x1xf32>
    %115 = tpu.transpose %114, [1, 0] : vector<16x1xf32> -> vector<1x16xf32>
    %116 = vector.broadcast %114 : vector<16x1xf32> to vector<16x16xf32>
    %117 = vector.broadcast %115 : vector<1x16xf32> to vector<16x16xf32>
    %118 = arith.addf %116, %117 : vector<16x16xf32>
    %cst_39 = arith.constant 2.000000e+00 : f32
    %119 = vector.broadcast %cst_39 : f32 to vector<16x16xf32>
    %120 = arith.mulf %119, %111 : vector<16x16xf32>
    %121 = arith.subf %118, %120 : vector<16x16xf32>
    %cst_40 = arith.constant 0.000000e+00 : f32
    %122 = vector.broadcast %cst_40 : f32 to vector<16x16xf32>
    %123 = arith.maximumf %121, %122 : vector<16x16xf32>
    %cst_41 = arith.constant 0.000000e+00 : f32
    %124 = vector.broadcast %cst_41 : f32 to vector<16x16xf32>
    %125 = arith.subf %124, %123 : vector<16x16xf32>
    %cst_42 = arith.constant 1.250000e-01 : f32
    %126 = vector.broadcast %cst_42 : f32 to vector<16x16xf32>
    %127 = arith.mulf %125, %126 : vector<16x16xf32>
    %128 = math.exp %127 : vector<16x16xf32>
    %129 = arith.mulf %128, %1 : vector<16x16xf32>
    %cst_43 = arith.constant dense<0.000000e+00> : vector<16xf32>
    %130 = vector.multi_reduction <add>, %129, %cst_43 [1] : vector<16x16xf32> to vector<16xf32>
    %131 = vector.shape_cast %130 : vector<16xf32> to vector<16x1xf32>
    %132 = tpu.reciprocal %131 {approx = true} : vector<16x1xf32> -> vector<16x1xf32>
    %133 = vector.broadcast %132 : vector<16x1xf32> to vector<16x16xf32>
    %134 = arith.mulf %129, %133 : vector<16x16xf32>
    %135 = arith.truncf %134 : vector<16x16xf32> to vector<16x16xbf16>
    %cst_44 = arith.constant dense<0.000000e+00> : vector<16x64xf32>
    %136 = tpu.matmul %135, %110, %cst_44 {dimension_numbers = #tpu.dot_dimension_numbers<[1], [0], [0], [1], [0, 0, 1, 1], [], []>} : vector<16x16xbf16>, vector<16x64xbf16>, vector<16x64xf32> -> vector<16x64xf32>
    %137 = arith.truncf %136 : vector<16x64xf32> to vector<16x64xbf16>
    %c192 = arith.constant 192 : index
    %c0_45 = arith.constant 0 : index
    %138 = vector.load %arg2[%c192, %c0_45] : memref<512x512xbf16, #tpu.memory_space<vmem>>, vector<64x512xbf16>
    %cst_46 = arith.constant dense<0.000000e+00> : vector<16x512xf32>
    %139 = tpu.matmul %137, %138, %cst_46 {dimension_numbers = #tpu.dot_dimension_numbers<[1], [0], [0], [1], [0, 0, 1, 1], [], []>} : vector<16x64xbf16>, vector<64x512xbf16>, vector<16x512xf32> -> vector<16x512xf32>
    %140 = arith.addf %107, %139 : vector<16x512xf32>
    %141 = vector.extract_strided_slice %5 {offsets = [0, 256], sizes = [16, 64], strides = [1, 1]} : vector<16x512xf32> to vector<16x64xf32>
    %142 = vector.extract_strided_slice %6 {offsets = [0, 256], sizes = [16, 64], strides = [1, 1]} : vector<16x512xf32> to vector<16x64xf32>
    %143 = arith.truncf %142 : vector<16x64xf32> to vector<16x64xbf16>
    %cst_47 = arith.constant dense<0.000000e+00> : vector<16x16xf32>
    %144 = tpu.matmul %141, %141, %cst_47 {dimension_numbers = #tpu.dot_dimension_numbers<[1], [1], [0], [0], [0, 0, 1, 0], [], []>} : vector<16x64xf32>, vector<16x64xf32>, vector<16x16xf32> -> vector<16x16xf32>
    %145 = vector.extract_strided_slice %7 {offsets = [0, 256], sizes = [16, 64], strides = [1, 1]} : vector<16x512xf32> to vector<16x64xf32>
    %cst_48 = arith.constant dense<0.000000e+00> : vector<16xf32>
    %146 = vector.multi_reduction <add>, %145, %cst_48 [1] : vector<16x64xf32> to vector<16xf32>
    %147 = vector.shape_cast %146 : vector<16xf32> to vector<16x1xf32>
    %148 = tpu.transpose %147, [1, 0] : vector<16x1xf32> -> vector<1x16xf32>
    %149 = vector.broadcast %147 : vector<16x1xf32> to vector<16x16xf32>
    %150 = vector.broadcast %148 : vector<1x16xf32> to vector<16x16xf32>
    %151 = arith.addf %149, %150 : vector<16x16xf32>
    %cst_49 = arith.constant 2.000000e+00 : f32
    %152 = vector.broadcast %cst_49 : f32 to vector<16x16xf32>
    %153 = arith.mulf %152, %144 : vector<16x16xf32>
    %154 = arith.subf %151, %153 : vector<16x16xf32>
    %cst_50 = arith.constant 0.000000e+00 : f32
    %155 = vector.broadcast %cst_50 : f32 to vector<16x16xf32>
    %156 = arith.maximumf %154, %155 : vector<16x16xf32>
    %cst_51 = arith.constant 0.000000e+00 : f32
    %157 = vector.broadcast %cst_51 : f32 to vector<16x16xf32>
    %158 = arith.subf %157, %156 : vector<16x16xf32>
    %cst_52 = arith.constant 1.250000e-01 : f32
    %159 = vector.broadcast %cst_52 : f32 to vector<16x16xf32>
    %160 = arith.mulf %158, %159 : vector<16x16xf32>
    %161 = math.exp %160 : vector<16x16xf32>
    %162 = arith.mulf %161, %1 : vector<16x16xf32>
    %cst_53 = arith.constant dense<0.000000e+00> : vector<16xf32>
    %163 = vector.multi_reduction <add>, %162, %cst_53 [1] : vector<16x16xf32> to vector<16xf32>
    %164 = vector.shape_cast %163 : vector<16xf32> to vector<16x1xf32>
    %165 = tpu.reciprocal %164 {approx = true} : vector<16x1xf32> -> vector<16x1xf32>
    %166 = vector.broadcast %165 : vector<16x1xf32> to vector<16x16xf32>
    %167 = arith.mulf %162, %166 : vector<16x16xf32>
    %168 = arith.truncf %167 : vector<16x16xf32> to vector<16x16xbf16>
    %cst_54 = arith.constant dense<0.000000e+00> : vector<16x64xf32>
    %169 = tpu.matmul %168, %143, %cst_54 {dimension_numbers = #tpu.dot_dimension_numbers<[1], [0], [0], [1], [0, 0, 1, 1], [], []>} : vector<16x16xbf16>, vector<16x64xbf16>, vector<16x64xf32> -> vector<16x64xf32>
    %170 = arith.truncf %169 : vector<16x64xf32> to vector<16x64xbf16>
    %c256 = arith.constant 256 : index
    %c0_55 = arith.constant 0 : index
    %171 = vector.load %arg2[%c256, %c0_55] : memref<512x512xbf16, #tpu.memory_space<vmem>>, vector<64x512xbf16>
    %cst_56 = arith.constant dense<0.000000e+00> : vector<16x512xf32>
    %172 = tpu.matmul %170, %171, %cst_56 {dimension_numbers = #tpu.dot_dimension_numbers<[1], [0], [0], [1], [0, 0, 1, 1], [], []>} : vector<16x64xbf16>, vector<64x512xbf16>, vector<16x512xf32> -> vector<16x512xf32>
    %173 = arith.addf %140, %172 : vector<16x512xf32>
    %174 = vector.extract_strided_slice %5 {offsets = [0, 320], sizes = [16, 64], strides = [1, 1]} : vector<16x512xf32> to vector<16x64xf32>
    %175 = vector.extract_strided_slice %6 {offsets = [0, 320], sizes = [16, 64], strides = [1, 1]} : vector<16x512xf32> to vector<16x64xf32>
    %176 = arith.truncf %175 : vector<16x64xf32> to vector<16x64xbf16>
    %cst_57 = arith.constant dense<0.000000e+00> : vector<16x16xf32>
    %177 = tpu.matmul %174, %174, %cst_57 {dimension_numbers = #tpu.dot_dimension_numbers<[1], [1], [0], [0], [0, 0, 1, 0], [], []>} : vector<16x64xf32>, vector<16x64xf32>, vector<16x16xf32> -> vector<16x16xf32>
    %178 = vector.extract_strided_slice %7 {offsets = [0, 320], sizes = [16, 64], strides = [1, 1]} : vector<16x512xf32> to vector<16x64xf32>
    %cst_58 = arith.constant dense<0.000000e+00> : vector<16xf32>
    %179 = vector.multi_reduction <add>, %178, %cst_58 [1] : vector<16x64xf32> to vector<16xf32>
    %180 = vector.shape_cast %179 : vector<16xf32> to vector<16x1xf32>
    %181 = tpu.transpose %180, [1, 0] : vector<16x1xf32> -> vector<1x16xf32>
    %182 = vector.broadcast %180 : vector<16x1xf32> to vector<16x16xf32>
    %183 = vector.broadcast %181 : vector<1x16xf32> to vector<16x16xf32>
    %184 = arith.addf %182, %183 : vector<16x16xf32>
    %cst_59 = arith.constant 2.000000e+00 : f32
    %185 = vector.broadcast %cst_59 : f32 to vector<16x16xf32>
    %186 = arith.mulf %185, %177 : vector<16x16xf32>
    %187 = arith.subf %184, %186 : vector<16x16xf32>
    %cst_60 = arith.constant 0.000000e+00 : f32
    %188 = vector.broadcast %cst_60 : f32 to vector<16x16xf32>
    %189 = arith.maximumf %187, %188 : vector<16x16xf32>
    %cst_61 = arith.constant 0.000000e+00 : f32
    %190 = vector.broadcast %cst_61 : f32 to vector<16x16xf32>
    %191 = arith.subf %190, %189 : vector<16x16xf32>
    %cst_62 = arith.constant 1.250000e-01 : f32
    %192 = vector.broadcast %cst_62 : f32 to vector<16x16xf32>
    %193 = arith.mulf %191, %192 : vector<16x16xf32>
    %194 = math.exp %193 : vector<16x16xf32>
    %195 = arith.mulf %194, %1 : vector<16x16xf32>
    %cst_63 = arith.constant dense<0.000000e+00> : vector<16xf32>
    %196 = vector.multi_reduction <add>, %195, %cst_63 [1] : vector<16x16xf32> to vector<16xf32>
    %197 = vector.shape_cast %196 : vector<16xf32> to vector<16x1xf32>
    %198 = tpu.reciprocal %197 {approx = true} : vector<16x1xf32> -> vector<16x1xf32>
    %199 = vector.broadcast %198 : vector<16x1xf32> to vector<16x16xf32>
    %200 = arith.mulf %195, %199 : vector<16x16xf32>
    %201 = arith.truncf %200 : vector<16x16xf32> to vector<16x16xbf16>
    %cst_64 = arith.constant dense<0.000000e+00> : vector<16x64xf32>
    %202 = tpu.matmul %201, %176, %cst_64 {dimension_numbers = #tpu.dot_dimension_numbers<[1], [0], [0], [1], [0, 0, 1, 1], [], []>} : vector<16x16xbf16>, vector<16x64xbf16>, vector<16x64xf32> -> vector<16x64xf32>
    %203 = arith.truncf %202 : vector<16x64xf32> to vector<16x64xbf16>
    %c320 = arith.constant 320 : index
    %c0_65 = arith.constant 0 : index
    %204 = vector.load %arg2[%c320, %c0_65] : memref<512x512xbf16, #tpu.memory_space<vmem>>, vector<64x512xbf16>
    %cst_66 = arith.constant dense<0.000000e+00> : vector<16x512xf32>
    %205 = tpu.matmul %203, %204, %cst_66 {dimension_numbers = #tpu.dot_dimension_numbers<[1], [0], [0], [1], [0, 0, 1, 1], [], []>} : vector<16x64xbf16>, vector<64x512xbf16>, vector<16x512xf32> -> vector<16x512xf32>
    %206 = arith.addf %173, %205 : vector<16x512xf32>
    %207 = vector.extract_strided_slice %5 {offsets = [0, 384], sizes = [16, 64], strides = [1, 1]} : vector<16x512xf32> to vector<16x64xf32>
    %208 = vector.extract_strided_slice %6 {offsets = [0, 384], sizes = [16, 64], strides = [1, 1]} : vector<16x512xf32> to vector<16x64xf32>
    %209 = arith.truncf %208 : vector<16x64xf32> to vector<16x64xbf16>
    %cst_67 = arith.constant dense<0.000000e+00> : vector<16x16xf32>
    %210 = tpu.matmul %207, %207, %cst_67 {dimension_numbers = #tpu.dot_dimension_numbers<[1], [1], [0], [0], [0, 0, 1, 0], [], []>} : vector<16x64xf32>, vector<16x64xf32>, vector<16x16xf32> -> vector<16x16xf32>
    %211 = vector.extract_strided_slice %7 {offsets = [0, 384], sizes = [16, 64], strides = [1, 1]} : vector<16x512xf32> to vector<16x64xf32>
    %cst_68 = arith.constant dense<0.000000e+00> : vector<16xf32>
    %212 = vector.multi_reduction <add>, %211, %cst_68 [1] : vector<16x64xf32> to vector<16xf32>
    %213 = vector.shape_cast %212 : vector<16xf32> to vector<16x1xf32>
    %214 = tpu.transpose %213, [1, 0] : vector<16x1xf32> -> vector<1x16xf32>
    %215 = vector.broadcast %213 : vector<16x1xf32> to vector<16x16xf32>
    %216 = vector.broadcast %214 : vector<1x16xf32> to vector<16x16xf32>
    %217 = arith.addf %215, %216 : vector<16x16xf32>
    %cst_69 = arith.constant 2.000000e+00 : f32
    %218 = vector.broadcast %cst_69 : f32 to vector<16x16xf32>
    %219 = arith.mulf %218, %210 : vector<16x16xf32>
    %220 = arith.subf %217, %219 : vector<16x16xf32>
    %cst_70 = arith.constant 0.000000e+00 : f32
    %221 = vector.broadcast %cst_70 : f32 to vector<16x16xf32>
    %222 = arith.maximumf %220, %221 : vector<16x16xf32>
    %cst_71 = arith.constant 0.000000e+00 : f32
    %223 = vector.broadcast %cst_71 : f32 to vector<16x16xf32>
    %224 = arith.subf %223, %222 : vector<16x16xf32>
    %cst_72 = arith.constant 1.250000e-01 : f32
    %225 = vector.broadcast %cst_72 : f32 to vector<16x16xf32>
    %226 = arith.mulf %224, %225 : vector<16x16xf32>
    %227 = math.exp %226 : vector<16x16xf32>
    %228 = arith.mulf %227, %1 : vector<16x16xf32>
    %cst_73 = arith.constant dense<0.000000e+00> : vector<16xf32>
    %229 = vector.multi_reduction <add>, %228, %cst_73 [1] : vector<16x16xf32> to vector<16xf32>
    %230 = vector.shape_cast %229 : vector<16xf32> to vector<16x1xf32>
    %231 = tpu.reciprocal %230 {approx = true} : vector<16x1xf32> -> vector<16x1xf32>
    %232 = vector.broadcast %231 : vector<16x1xf32> to vector<16x16xf32>
    %233 = arith.mulf %228, %232 : vector<16x16xf32>
    %234 = arith.truncf %233 : vector<16x16xf32> to vector<16x16xbf16>
    %cst_74 = arith.constant dense<0.000000e+00> : vector<16x64xf32>
    %235 = tpu.matmul %234, %209, %cst_74 {dimension_numbers = #tpu.dot_dimension_numbers<[1], [0], [0], [1], [0, 0, 1, 1], [], []>} : vector<16x16xbf16>, vector<16x64xbf16>, vector<16x64xf32> -> vector<16x64xf32>
    %236 = arith.truncf %235 : vector<16x64xf32> to vector<16x64xbf16>
    %c384 = arith.constant 384 : index
    %c0_75 = arith.constant 0 : index
    %237 = vector.load %arg2[%c384, %c0_75] : memref<512x512xbf16, #tpu.memory_space<vmem>>, vector<64x512xbf16>
    %cst_76 = arith.constant dense<0.000000e+00> : vector<16x512xf32>
    %238 = tpu.matmul %236, %237, %cst_76 {dimension_numbers = #tpu.dot_dimension_numbers<[1], [0], [0], [1], [0, 0, 1, 1], [], []>} : vector<16x64xbf16>, vector<64x512xbf16>, vector<16x512xf32> -> vector<16x512xf32>
    %239 = arith.addf %206, %238 : vector<16x512xf32>
    %240 = vector.extract_strided_slice %5 {offsets = [0, 448], sizes = [16, 64], strides = [1, 1]} : vector<16x512xf32> to vector<16x64xf32>
    %241 = vector.extract_strided_slice %6 {offsets = [0, 448], sizes = [16, 64], strides = [1, 1]} : vector<16x512xf32> to vector<16x64xf32>
    %242 = arith.truncf %241 : vector<16x64xf32> to vector<16x64xbf16>
    %cst_77 = arith.constant dense<0.000000e+00> : vector<16x16xf32>
    %243 = tpu.matmul %240, %240, %cst_77 {dimension_numbers = #tpu.dot_dimension_numbers<[1], [1], [0], [0], [0, 0, 1, 0], [], []>} : vector<16x64xf32>, vector<16x64xf32>, vector<16x16xf32> -> vector<16x16xf32>
    %244 = vector.extract_strided_slice %7 {offsets = [0, 448], sizes = [16, 64], strides = [1, 1]} : vector<16x512xf32> to vector<16x64xf32>
    %cst_78 = arith.constant dense<0.000000e+00> : vector<16xf32>
    %245 = vector.multi_reduction <add>, %244, %cst_78 [1] : vector<16x64xf32> to vector<16xf32>
    %246 = vector.shape_cast %245 : vector<16xf32> to vector<16x1xf32>
    %247 = tpu.transpose %246, [1, 0] : vector<16x1xf32> -> vector<1x16xf32>
    %248 = vector.broadcast %246 : vector<16x1xf32> to vector<16x16xf32>
    %249 = vector.broadcast %247 : vector<1x16xf32> to vector<16x16xf32>
    %250 = arith.addf %248, %249 : vector<16x16xf32>
    %cst_79 = arith.constant 2.000000e+00 : f32
    %251 = vector.broadcast %cst_79 : f32 to vector<16x16xf32>
    %252 = arith.mulf %251, %243 : vector<16x16xf32>
    %253 = arith.subf %250, %252 : vector<16x16xf32>
    %cst_80 = arith.constant 0.000000e+00 : f32
    %254 = vector.broadcast %cst_80 : f32 to vector<16x16xf32>
    %255 = arith.maximumf %253, %254 : vector<16x16xf32>
    %cst_81 = arith.constant 0.000000e+00 : f32
    %256 = vector.broadcast %cst_81 : f32 to vector<16x16xf32>
    %257 = arith.subf %256, %255 : vector<16x16xf32>
    %cst_82 = arith.constant 1.250000e-01 : f32
    %258 = vector.broadcast %cst_82 : f32 to vector<16x16xf32>
    %259 = arith.mulf %257, %258 : vector<16x16xf32>
    %260 = math.exp %259 : vector<16x16xf32>
    %261 = arith.mulf %260, %1 : vector<16x16xf32>
    %cst_83 = arith.constant dense<0.000000e+00> : vector<16xf32>
    %262 = vector.multi_reduction <add>, %261, %cst_83 [1] : vector<16x16xf32> to vector<16xf32>
    %263 = vector.shape_cast %262 : vector<16xf32> to vector<16x1xf32>
    %264 = tpu.reciprocal %263 {approx = true} : vector<16x1xf32> -> vector<16x1xf32>
    %265 = vector.broadcast %264 : vector<16x1xf32> to vector<16x16xf32>
    %266 = arith.mulf %261, %265 : vector<16x16xf32>
    %267 = arith.truncf %266 : vector<16x16xf32> to vector<16x16xbf16>
    %cst_84 = arith.constant dense<0.000000e+00> : vector<16x64xf32>
    %268 = tpu.matmul %267, %242, %cst_84 {dimension_numbers = #tpu.dot_dimension_numbers<[1], [0], [0], [1], [0, 0, 1, 1], [], []>} : vector<16x16xbf16>, vector<16x64xbf16>, vector<16x64xf32> -> vector<16x64xf32>
    %269 = arith.truncf %268 : vector<16x64xf32> to vector<16x64xbf16>
    %c448 = arith.constant 448 : index
    %c0_85 = arith.constant 0 : index
    %270 = vector.load %arg2[%c448, %c0_85] : memref<512x512xbf16, #tpu.memory_space<vmem>>, vector<64x512xbf16>
    %cst_86 = arith.constant dense<0.000000e+00> : vector<16x512xf32>
    %271 = tpu.matmul %269, %270, %cst_86 {dimension_numbers = #tpu.dot_dimension_numbers<[1], [0], [0], [1], [0, 0, 1, 1], [], []>} : vector<16x64xbf16>, vector<64x512xbf16>, vector<16x512xf32> -> vector<16x512xf32>
    %272 = arith.addf %239, %271 : vector<16x512xf32>
    %273 = arith.addf %0, %272 : vector<16x512xf32>
    %c0_87 = arith.constant 0 : index
    %c0_88 = arith.constant 0 : index
    %274 = vector.load %arg3[%c0_87, %c0_88] : memref<1x512xf32, #tpu.memory_space<vmem>>, vector<1x512xf32>
    %275 = vector.broadcast %274 : vector<1x512xf32> to vector<16x512xf32>
    %276 = arith.addf %273, %275 : vector<16x512xf32>
    %c0_89 = arith.constant 0 : index
    %c0_90 = arith.constant 0 : index
    %277 = vector.load %arg5[%c0_89, %c0_90] : memref<1x512xf32, #tpu.memory_space<vmem>>, vector<1x512xf32>
    %278 = vector.broadcast %277 : vector<1x512xf32> to vector<16x512xf32>
    %279 = arith.addf %276, %278 : vector<16x512xf32>
    %c0_91 = arith.constant 0 : index
    %c0_92 = arith.constant 0 : index
    %280 = vector.load %arg4[%c0_91, %c0_92] : memref<1x512xf32, #tpu.memory_space<vmem>>, vector<1x512xf32>
    %281 = vector.broadcast %280 : vector<1x512xf32> to vector<16x512xf32>
    %282 = arith.mulf %279, %281 : vector<16x512xf32>
    %283 = arith.truncf %282 : vector<16x512xf32> to vector<16x512xbf16>
    %c0_93 = arith.constant 0 : index
    %c0_94 = arith.constant 0 : index
    %284 = vector.load %arg6[%c0_93, %c0_94] : memref<512x512xbf16, #tpu.memory_space<vmem>>, vector<512x512xbf16>
    %cst_95 = arith.constant dense<0.000000e+00> : vector<16x512xf32>
    %285 = tpu.matmul %283, %284, %cst_95 {dimension_numbers = #tpu.dot_dimension_numbers<[1], [0], [0], [1], [0, 0, 1, 1], [], []>} : vector<16x512xbf16>, vector<512x512xbf16>, vector<16x512xf32> -> vector<16x512xf32>
    %c0_96 = arith.constant 0 : index
    %c0_97 = arith.constant 0 : index
    %286 = vector.load %arg7[%c0_96, %c0_97] : memref<1x512xf32, #tpu.memory_space<vmem>>, vector<1x512xf32>
    %287 = vector.broadcast %286 : vector<1x512xf32> to vector<16x512xf32>
    %288 = arith.addf %285, %287 : vector<16x512xf32>
    %cst_98 = arith.constant 0.000000e+00 : f32
    %289 = vector.broadcast %cst_98 : f32 to vector<16x512xf32>
    %290 = arith.maximumf %288, %289 : vector<16x512xf32>
    %291 = arith.truncf %290 : vector<16x512xf32> to vector<16x512xbf16>
    %c0_99 = arith.constant 0 : index
    %c0_100 = arith.constant 0 : index
    %292 = vector.load %arg8[%c0_99, %c0_100] : memref<512x512xbf16, #tpu.memory_space<vmem>>, vector<512x512xbf16>
    %cst_101 = arith.constant dense<0.000000e+00> : vector<16x512xf32>
    %293 = tpu.matmul %291, %292, %cst_101 {dimension_numbers = #tpu.dot_dimension_numbers<[1], [0], [0], [1], [0, 0, 1, 1], [], []>} : vector<16x512xbf16>, vector<512x512xbf16>, vector<16x512xf32> -> vector<16x512xf32>
    %c0_102 = arith.constant 0 : index
    %c0_103 = arith.constant 0 : index
    %294 = vector.load %arg9[%c0_102, %c0_103] : memref<1x512xf32, #tpu.memory_space<vmem>>, vector<1x512xf32>
    %295 = vector.broadcast %294 : vector<1x512xf32> to vector<16x512xf32>
    %296 = arith.addf %293, %295 : vector<16x512xf32>
    %297 = arith.addf %282, %296 : vector<16x512xf32>
    %c0_104 = arith.constant 0 : index
    %c0_105 = arith.constant 0 : index
    %298 = vector.load %arg11[%c0_104, %c0_105] : memref<1x512xf32, #tpu.memory_space<vmem>>, vector<1x512xf32>
    %299 = vector.broadcast %298 : vector<1x512xf32> to vector<16x512xf32>
    %300 = arith.addf %297, %299 : vector<16x512xf32>
    %c0_106 = arith.constant 0 : index
    %c0_107 = arith.constant 0 : index
    %301 = vector.load %arg10[%c0_106, %c0_107] : memref<1x512xf32, #tpu.memory_space<vmem>>, vector<1x512xf32>
    %302 = vector.broadcast %301 : vector<1x512xf32> to vector<16x512xf32>
    %303 = arith.mulf %300, %302 : vector<16x512xf32>
    %c0_108 = arith.constant 0 : index
    %c0_109 = arith.constant 0 : index
    %304 = vector.load %arg13[%c0_108, %c0_109] : memref<16x512xf32, #tpu.memory_space<vmem>>, vector<16x512xf32>
    tpu.vector_store %arg13[%c0_108, %c0_109], %303 {strides = array<i32>} : memref<16x512xf32, #tpu.memory_space<vmem>>, vector<16x512xf32>,
    return
  }
}

</mosaic_0001>

<bundles_post_ra>
// kernel: encoder_layer_forward.1
= control target key start
LH: loop header
LB: loop body
LE: loop exit
PB: predicated region body
PF: predicated region fallthrough
CT: control target
= control target key end

     0   :  { %18 = vsyncpa [#allocation3], 0  ;;  %s9706_s0 = inlined_call_operand.vmem [shape: f32[16,512], index: 0, kind: input, shape index: {}]   ;;  %s9707_s1 = inlined_call_operand.hbm [shape: bf16[512,1024], index: 1, kind: input, shape index: {}]   ;;  %s9708_s2 = inlined_call_operand.hbm [shape: bf16[512,512], index: 2, kind: input, shape index: {}]   ;;  %s9709_s3 = inlined_call_operand.vmem [shape: f32[1,512], index: 3, kind: input, shape index: {}]   ;;  %s9710_s4 = inlined_call_operand.vmem [shape: f32[1,512], index: 4, kind: input, shape index: {}]   ;;  %s9711_s5 = inlined_call_operand.vmem [shape: f32[1,512], index: 5, kind: input, shape index: {}]   ;;  %s9712_s6 = inlined_call_operand.hbm [shape: bf16[512,512], index: 6, kind: input, shape index: {}]   ;;  %s9713_s7 = inlined_call_operand.vmem [shape: f32[1,512], index: 7, kind: input, shape index: {}]   ;;  %s9714_s8 = inlined_call_operand.hbm [shape: bf16[512,512], index: 8, kind: input, shape index: {}]   ;;  %s9715_s9 = inlined_call_operand.vmem [shape: f32[1,512], index: 9, kind: input, shape index: {}]   ;;  %s9716_s10 = inlined_call_operand.vmem [shape: f32[1,512], index: 10, kind: input, shape index: {}]   ;;  %s9717_s11 = inlined_call_operand.vmem [shape: f32[1,512], index: 11, kind: input, shape index: {}]   ;;  %s9718_s12 = inlined_call_operand.vmem [shape: f32[16,16], index: 12, kind: input, shape index: {}]   ;;  %s9719_s13 = inlined_call_operand.vmem [shape: f32[16,512], index: 13, kind: output, shape index: {}]  }
   0x1   :  { %19 = vsyncpa [#allocation5], 0 }
   0x2   :  { %20 = vsyncpa [#allocation8], 0  ;;  %s9045_s25 = smov [#allocation4]   ;;  %s8951_s29 = scalar_lea.hbm %s9708_s2, 16384 }
   0x3   :  { %s40_s26 = sshll.u32 %s9045_s25, 4  ;;  %p8952_p0 = scmp.ne.s32.totalorder %s9708_s2, %s8951_s29  ;;  %s41_s26 = int_to_ptr.vmem [resolvable:$true] %s40_s26 }
   0x4   :  { %p8955_p1 = scmp.lt.u32.totalorder %s8951_s29, %s9708_s2 }
   0x6   :  { %p8957_p2 = pnand %p8955_p1, %p8952_p0 }
   0x8   :  { %8960 = shalt.err (!%p8957_p2)
}
   0x9   :  { %s8961_s17 = scalar_lea.vmem %s41_s26, 16384  ;;  %p8966_p4 = scmp.lt.s32.totalorder %s41_s26, %s41_s26 }
   0xa   :  { %p8962_p3 = scmp.ne.s32.totalorder %s41_s26, %s8961_s17  ;;  %p8967_p5 = scmp.lt.s32.totalorder %s8961_s17, %s8961_s17 }
   0xc   :  { %p8968_p6 = por %p8967_p5, %p8966_p4 }
   0xe   :  { %p8969_p7 = pnand %p8968_p6, %p8962_p3 }
  0x10   :  { %8972 = shalt.err (!%p8969_p7)
}
  0x11   :  { %s9046_s18 = smov 256   ;;  %s9047_s19 = smov 16  }
  0x12   :  { %46 = dma.hbm_to_vmem [thread:$0]  %s9708_s2, 16384, %s41_s26, [#allocation5], %s9046_s18, %s9046_s18, %s9047_s19  }
  0x13   :  { %s9048_s22 = smov [#allocation2]   ;;  %s8973_s27 = scalar_lea.hbm %s9707_s1, 32768 }
  0x14   :  { %s28_s23 = sshll.u32 %s9048_s22, 4  ;;  %p8974_p8 = scmp.ne.s32.totalorder %s9707_s1, %s8973_s27  ;;  %s29_s23 = int_to_ptr.vmem [resolvable:$true] %s28_s23 }
  0x15   :  { %p8977_p9 = scmp.lt.u32.totalorder %s8973_s27, %s9707_s1 }
  0x17   :  { %p8979_p10 = pnand %p8977_p9, %p8974_p8 }
  0x19   :  { %8982 = shalt.err (!%p8979_p10)
}
  0x1a   :  { %s8983_s15 = scalar_lea.vmem %s29_s23, 32768  ;;  %p8988_p12 = scmp.lt.s32.totalorder %s29_s23, %s29_s23 }
  0x1b   :  { %p8984_p11 = scmp.ne.s32.totalorder %s29_s23, %s8983_s15  ;;  %p8989_p13 = scmp.lt.s32.totalorder %s8983_s15, %s8983_s15 }
  0x1d   :  { %p8990_p0 = por %p8989_p13, %p8988_p12 }
  0x1f   :  { %p8991_p1 = pnand %p8990_p0, %p8984_p11 }
  0x21   :  { %8994 = shalt.err (!%p8991_p1)
}
  0x22   :  { %s9049_s2 = smov 512   ;;  %s9050_s26 = smov 32  }
  0x23   :  { %34 = dma.hbm_to_vmem [thread:$0]  %s9707_s1, 32768, %s29_s23, [#allocation3], %s9049_s2, %s9049_s2, %s9050_s26  }
  0x24   :  { %s9051_s20 = smov [#allocation6]   ;;  %s9052_s22 = smov [#allocation7]  }
  0x25   :  { %s58_s21 = sshll.u32 %s9051_s20, 4  ;;  %s72_s24 = sshll.u32 %s9052_s22, 4  ;;  %s59_s21 = int_to_ptr.vmem [resolvable:$true] %s58_s21  ;;  %s9154_s24 = int_to_ptr.vmem [resolvable:$true] %s72_s24 }
  0x26   :  { %s8995_s28 = scalar_lea.hbm %s9712_s6, 16384 }
  0x27   :  { %p8996_p2 = scmp.ne.s32.totalorder %s9712_s6, %s8995_s28  ;;  %p8999_p3 = scmp.lt.u32.totalorder %s8995_s28, %s9712_s6 }
  0x29   :  { %p9001_p4 = pnand %p8999_p3, %p8996_p2 }
  0x2b   :  { %9004 = shalt.err (!%p9001_p4)
}
  0x2c   :  { %s9005_s1 = scalar_lea.vmem %s59_s21, 16384  ;;  %p9010_p6 = scmp.lt.s32.totalorder %s59_s21, %s59_s21 }
  0x2d   :  { %p9006_p5 = scmp.ne.s32.totalorder %s59_s21, %s9005_s1  ;;  %p9011_p7 = scmp.lt.s32.totalorder %s9005_s1, %s9005_s1 }
  0x2f   :  { %p9012_p8 = por %p9011_p7, %p9010_p6 }
  0x31   :  { %p9013_p9 = pnand %p9012_p8, %p9006_p5 }
  0x33   :  { %9016 = shalt.err (!%p9013_p9)
}
  0x34   :  { %64 = dma.hbm_to_vmem [thread:$0]  %s9712_s6, 16384, %s59_s21, [#allocation5], %s9046_s18, %s9046_s18, %s9047_s19  }
  0x35   :  { %s9017_s17 = scalar_lea.hbm %s9714_s8, 16384 }
  0x36   :  { %p9018_p10 = scmp.ne.s32.totalorder %s9714_s8, %s9017_s17  ;;  %p9021_p11 = scmp.lt.u32.totalorder %s9017_s17, %s9714_s8 }
  0x38   :  { %p9023_p12 = pnand %p9021_p11, %p9018_p10 }
  0x3a   :  { %9026 = shalt.err (!%p9023_p12)
}
  0x3b   :  { %s9027_s28 = scalar_lea.vmem %s9154_s24, 16384  ;;  %p9032_p0 = scmp.lt.s32.totalorder %s9154_s24, %s9154_s24 }
  0x3c   :  { %p9028_p13 = scmp.ne.s32.totalorder %s9154_s24, %s9027_s28  ;;  %p9033_p1 = scmp.lt.s32.totalorder %s9027_s28, %s9027_s28 }
  0x3e   :  { %p9034_p2 = por %p9033_p1, %p9032_p0 }
  0x40   :  { %p9035_p3 = pnand %p9034_p2, %p9028_p13 }
  0x42   :  { %9038 = shalt.err (!%p9035_p3)
}
  0x43   :  { %78 = dma.hbm_to_vmem [thread:$0]  %s9714_s8, 16384, %s9154_s24, [#allocation8], %s9046_s18, %s9046_s18, %s9047_s19  }
  0x44   :  { %9039 = dma.done.wait [#allocation3], 32768  }
  0x45   :  { %9040 = vsyncadd [#allocation3], 4294934528 }
  0x46   :  { %9041 = dma.done.wait [#allocation5], 32768  }
  0x47   :  { %9042 = vsyncadd [#allocation5], 4294934528 }
  0x48   :  { %9043 = dma.done.wait [#allocation8], 16384  }
  0x49   :  { %9044 = vsyncadd [#allocation8], 4294950912  ;;  %v114_v0 = vld [vmem:[#allocation2] sm:$0xff]  ;;  %v101_v17 = vld [vmem:[%s9706_s0 + $0x8] sm:$0xff]  ;;  %vm2003_vm0 = vcmask 523264   ;;  %s9053_s25 = smov 64  }
  0x4a   :  { %v118_v1 = vld [vmem:[#allocation2 + $0x20] sm:$0xff]  ;;  %v105_v18 = vld [vmem:[%s9706_s0 + $0x28] sm:$0xff]  ;;  %vm9242_vm1 = vmpackc.low %vm2003_vm0, %vm2003_vm0  ;;  %vm2145_vm2 = vcmask 130048   ;;  %vm9055_vm3 = vmmov 0  }
  0x4b   :  { %v122_v2 = vld [vmem:[#allocation2 + $0x40] sm:$0xff]  ;;  %v7290_v3 = vcombine.high %v114_v0, %v118_v1  ;;  %v7289_v4 = vcombine.low %v114_v0, %v118_v1  ;;  %v9197_v20 = vpack.c.bf16 %v105_v18, %v101_v17 }
  0x4c   :  { %v126_v5 = vld [vmem:[#allocation2 + $0x60] sm:$0xff] }
  0x4d   :  { %v7298_v6 = vcombine.high %v122_v2, %v126_v5  ;;  %v130_v7 = vld [vmem:[#allocation2 + $0x80] sm:$0xff]  ;;  %1650 = vmatprep.subr.bf16.mxu0 %v7290_v3  ;;  %v7297_v9 = vcombine.low %v122_v2, %v126_v5  ;;  %1682 = vmatprep.mubr.bf16.mxu0 %v9197_v20 }
  0x4e   :  { %v134_v8 = vld [vmem:[#allocation2 + $0xa0] sm:$0xff]  ;;  %1651 = vmatpush1.bf16.msra.mxu0 %v7289_v4  ;;  %1768 = vmatprep.mubr.bf16.mxu1 %v9197_v20 }
  0x4f   :  { %1652 = vmatprep.subr.bf16.mxu0 %v7298_v6  ;;  %v7306_v10 = vcombine.high %v130_v7, %v134_v8  ;;  %v138_v11 = vld [vmem:[#allocation2 + $0xc0] sm:$0xff]  ;;  %v7305_v13 = vcombine.low %v130_v7, %v134_v8 }
  0x50   :  { %v142_v12 = vld [vmem:[#allocation2 + $0xe0] sm:$0xff] }
  0x51   :  { %v7314_v14 = vcombine.high %v138_v11, %v142_v12  ;;  %v146_v15 = vld [vmem:[#allocation2 + $0x100] sm:$0xff]  ;;  %v7313_v19 = vcombine.low %v138_v11, %v142_v12 }
  0x52   :  { %1653 = vmatpush1.bf16.msra.mxu0 %v7297_v9  ;;  %v150_v16 = vld [vmem:[#allocation2 + $0x120] sm:$0xff]  ;;  %v103_v9 = vld [vmem:[%s9706_s0 + $0x18] sm:$0xff] }
  0x53   :  { %1654 = vmatprep.subr.bf16.mxu0 %v7306_v10  ;;  %v7322_v21 = vcombine.high %v146_v15, %v150_v16  ;;  %v154_v22 = vld [vmem:[#allocation2 + $0x140] sm:$0xff]  ;;  %v7321_v24 = vcombine.low %v146_v15, %v150_v16  ;;  %v107_v10 = vld [vmem:[%s9706_s0 + $0x38] sm:$0xff] }
  0x54   :  { %v158_v23 = vld [vmem:[#allocation2 + $0x160] sm:$0xff]  ;;  %v9215_v16 = vpack.c.bf16 %v107_v10, %v103_v9  ;;  %v120_v9 = vld [vmem:[#allocation2 + $0x30] sm:$0xff] }
  0x55   :  { %v7330_v25 = vcombine.high %v154_v22, %v158_v23  ;;  %v162_v26 = vld [vmem:[#allocation2 + $0x180] sm:$0xff]  ;;  %v7329_v28 = vcombine.low %v154_v22, %v158_v23 }
  0x56   :  { %1655 = vmatpush1.bf16.msra.mxu0 %v7305_v13  ;;  %v166_v27 = vld [vmem:[#allocation2 + $0x1a0] sm:$0xff] }
  0x57   :  { %1656 = vmatprep.subr.bf16.mxu0 %v7314_v14  ;;  %v7338_v29 = vcombine.high %v162_v26, %v166_v27  ;;  %v170_v30 = vld [vmem:[#allocation2 + $0x1c0] sm:$0xff]  ;;  %v7337_v32 = vcombine.low %v162_v26, %v166_v27 }
  0x58   :  { %v174_v31 = vld [vmem:[#allocation2 + $0x1e0] sm:$0xff] }
  0x59   :  { %v7346_v33 = vcombine.high %v170_v30, %v174_v31  ;;  %v178_v34 = vld [vmem:[#allocation2 + $0x200] sm:$0xff]  ;;  %v7345_v36 = vcombine.low %v170_v30, %v174_v31 }
  0x5a   :  { %1657 = vmatpush1.bf16.msra.mxu0 %v7313_v19  ;;  %v182_v35 = vld [vmem:[#allocation2 + $0x220] sm:$0xff] }
  0x5b   :  { %1658 = vmatprep.subr.bf16.mxu0 %v7322_v21  ;;  %v186_v37 = vld [vmem:[#allocation2 + $0x240] sm:$0xff]  ;;  %v7354_v38 = vcombine.high %v178_v34, %v182_v35  ;;  %v7353_v40 = vcombine.low %v178_v34, %v182_v35 }
  0x5c   :  { %v190_v39 = vld [vmem:[#allocation2 + $0x260] sm:$0xff] }
  0x5d   :  { %v194_v41 = vld [vmem:[#allocation2 + $0x280] sm:$0xff]  ;;  %v7362_v43 = vcombine.high %v186_v37, %v190_v39  ;;  %v7361_v44 = vcombine.low %v186_v37, %v190_v39 }
  0x5e   :  { %1659 = vmatpush1.bf16.msra.mxu0 %v7321_v24  ;;  %v198_v42 = vld [vmem:[#allocation2 + $0x2a0] sm:$0xff] }
  0x5f   :  { %1660 = vmatprep.subr.bf16.mxu0 %v7330_v25  ;;  %v202_v45 = vld [vmem:[#allocation2 + $0x2c0] sm:$0xff]  ;;  %v7370_v47 = vcombine.high %v194_v41, %v198_v42  ;;  %v7369_v48 = vcombine.low %v194_v41, %v198_v42 }
  0x60   :  { %v206_v46 = vld [vmem:[#allocation2 + $0x2e0] sm:$0xff] }
  0x61   :  { %v210_v49 = vld [vmem:[#allocation2 + $0x300] sm:$0xff]  ;;  %v7378_v51 = vcombine.high %v202_v45, %v206_v46  ;;  %v7377_v52 = vcombine.low %v202_v45, %v206_v46 }
  0x62   :  { %1661 = vmatpush1.bf16.msra.mxu0 %v7329_v28  ;;  %v214_v50 = vld [vmem:[#allocation2 + $0x320] sm:$0xff] }
  0x63   :  { %1662 = vmatprep.subr.bf16.mxu0 %v7338_v29  ;;  %v218_v53 = vld [vmem:[#allocation2 + $0x340] sm:$0xff]  ;;  %v7386_v55 = vcombine.high %v210_v49, %v214_v50  ;;  %v7385_v56 = vcombine.low %v210_v49, %v214_v50 }
  0x64   :  { %v222_v54 = vld [vmem:[#allocation2 + $0x360] sm:$0xff] }
  0x65   :  { %v226_v57 = vld [vmem:[#allocation2 + $0x380] sm:$0xff]  ;;  %v7394_v59 = vcombine.high %v218_v53, %v222_v54  ;;  %v7393_v60 = vcombine.low %v218_v53, %v222_v54 }
  0x66   :  { %1663 = vmatpush1.bf16.msra.mxu0 %v7337_v32  ;;  %v230_v58 = vld [vmem:[#allocation2 + $0x3a0] sm:$0xff] }
  0x67   :  { %1664 = vmatprep.subr.bf16.mxu0 %v7346_v33  ;;  %v234_v61 = vld [vmem:[#allocation2 + $0x3c0] sm:$0xff]  ;;  %v7402_v63 = vcombine.high %v226_v57, %v230_v58  ;;  %v7401_v0 = vcombine.low %v226_v57, %v230_v58 }
  0x68   :  { %v238_v62 = vld [vmem:[#allocation2 + $0x3e0] sm:$0xff] }
  0x69   :  { %v242_v1 = vld [vmem:[#allocation2 + $0x400] sm:$0xff]  ;;  %v7410_v3 = vcombine.high %v234_v61, %v238_v62  ;;  %v7409_v6 = vcombine.low %v234_v61, %v238_v62 }
  0x6a   :  { %1665 = vmatpush1.bf16.msra.mxu0 %v7345_v36  ;;  %v246_v2 = vld [vmem:[#allocation2 + $0x420] sm:$0xff] }
  0x6b   :  { %1666 = vmatprep.subr.bf16.mxu0 %v7354_v38  ;;  %v100_v4 = vld [vmem:[%s9706_s0] sm:$0xff]  ;;  %v7418_v11 = vcombine.high %v242_v1, %v246_v2  ;;  %v7417_v13 = vcombine.low %v242_v1, %v246_v2 }
  0x6c   :  { %v104_v5 = vld [vmem:[%s9706_s0 + $0x20] sm:$0xff] }
  0x6d   :  { %v250_v7 = vld [vmem:[#allocation2 + $0x440] sm:$0xff]  ;;  %v9213_v12 = vpack.c.bf16 %v104_v5, %v100_v4 }
  0x6e   :  { %1667 = vmatpush1.bf16.msra.mxu0 %v7353_v40  ;;  %v254_v8 = vld [vmem:[#allocation2 + $0x460] sm:$0xff] }
  0x6f   :  { %1668 = vmatprep.subr.bf16.mxu0 %v7362_v43  ;;  %v258_v14 = vld [vmem:[#allocation2 + $0x480] sm:$0xff]  ;;  %v7426_v17 = vcombine.high %v250_v7, %v254_v8  ;;  %v7425_v18 = vcombine.low %v250_v7, %v254_v8  ;;  %v116_v8 = vld [vmem:[#allocation2 + $0x10] sm:$0xff] }
  0x70   :  { %v262_v15 = vld [vmem:[#allocation2 + $0x4a0] sm:$0xff] }
  0x71   :  { %v266_v19 = vld [vmem:[#allocation2 + $0x4c0] sm:$0xff]  ;;  %v7434_v22 = vcombine.high %v258_v14, %v262_v15  ;;  %v7433_v23 = vcombine.low %v258_v14, %v262_v15  ;;  %v124_v15 = vld [vmem:[#allocation2 + $0x50] sm:$0xff] }
  0x72   :  { %1669 = vmatpush1.bf16.msra.mxu0 %v7361_v44  ;;  %v270_v21 = vld [vmem:[#allocation2 + $0x4e0] sm:$0xff] }
  0x73   :  { %1670 = vmatprep.subr.bf16.mxu0 %v7370_v47  ;;  %v274_v24 = vld [vmem:[#allocation2 + $0x500] sm:$0xff]  ;;  %v7442_v26 = vcombine.high %v266_v19, %v270_v21  ;;  %v7441_v27 = vcombine.low %v266_v19, %v270_v21  ;;  %v7293_v21 = vcombine.low %v116_v8, %v120_v9 }
  0x74   :  { %v278_v25 = vld [vmem:[#allocation2 + $0x520] sm:$0xff] }
  0x75   :  { %v282_v28 = vld [vmem:[#allocation2 + $0x540] sm:$0xff]  ;;  %v7450_v30 = vcombine.high %v274_v24, %v278_v25  ;;  %v7449_v31 = vcombine.low %v274_v24, %v278_v25 }
  0x76   :  { %1671 = vmatpush1.bf16.msra.mxu0 %v7369_v48  ;;  %v286_v29 = vld [vmem:[#allocation2 + $0x560] sm:$0xff] }
  0x77   :  { %1672 = vmatprep.subr.bf16.mxu0 %v7378_v51  ;;  %v290_v32 = vld [vmem:[#allocation2 + $0x580] sm:$0xff]  ;;  %v7458_v34 = vcombine.high %v282_v28, %v286_v29  ;;  %v7457_v35 = vcombine.low %v282_v28, %v286_v29 }
  0x78   :  { %v294_v33 = vld [vmem:[#allocation2 + $0x5a0] sm:$0xff] }
  0x79   :  { %v298_v36 = vld [vmem:[#allocation2 + $0x5c0] sm:$0xff]  ;;  %v7466_v38 = vcombine.high %v290_v32, %v294_v33  ;;  %v7465_v39 = vcombine.low %v290_v32, %v294_v33 }
  0x7a   :  { %1673 = vmatpush1.bf16.msra.mxu0 %v7377_v52  ;;  %v302_v37 = vld [vmem:[#allocation2 + $0x5e0] sm:$0xff] }
  0x7b   :  { %1674 = vmatprep.subr.bf16.mxu0 %v7386_v55  ;;  %v306_v40 = vld [vmem:[#allocation2 + $0x600] sm:$0xff]  ;;  %v7474_v42 = vcombine.high %v298_v36, %v302_v37  ;;  %v7473_v43 = vcombine.low %v298_v36, %v302_v37 }
  0x7c   :  { %v310_v41 = vld [vmem:[#allocation2 + $0x620] sm:$0xff] }
  0x7d   :  { %v314_v44 = vld [vmem:[#allocation2 + $0x640] sm:$0xff]  ;;  %v7482_v46 = vcombine.high %v306_v40, %v310_v41  ;;  %v7481_v47 = vcombine.low %v306_v40, %v310_v41 }
  0x7e   :  { %1675 = vmatpush1.bf16.msra.mxu0 %v7385_v56  ;;  %v318_v45 = vld [vmem:[#allocation2 + $0x660] sm:$0xff] }
  0x7f   :  { %1676 = vmatprep.subr.bf16.mxu0 %v7394_v59  ;;  %v322_v48 = vld [vmem:[#allocation2 + $0x680] sm:$0xff]  ;;  %v7490_v50 = vcombine.high %v314_v44, %v318_v45  ;;  %v7489_v51 = vcombine.low %v314_v44, %v318_v45 }
  0x80   :  { %v326_v49 = vld [vmem:[#allocation2 + $0x6a0] sm:$0xff] }
  0x81   :  { %v330_v52 = vld [vmem:[#allocation2 + $0x6c0] sm:$0xff]  ;;  %v7498_v54 = vcombine.high %v322_v48, %v326_v49  ;;  %v7497_v55 = vcombine.low %v322_v48, %v326_v49 }
  0x82   :  { %1677 = vmatpush1.bf16.msra.mxu0 %v7393_v60  ;;  %v334_v53 = vld [vmem:[#allocation2 + $0x6e0] sm:$0xff] }
  0x83   :  { %1678 = vmatprep.subr.bf16.mxu0 %v7402_v63  ;;  %v338_v56 = vld [vmem:[#allocation2 + $0x700] sm:$0xff]  ;;  %v7506_v58 = vcombine.high %v330_v52, %v334_v53  ;;  %v7505_v59 = vcombine.low %v330_v52, %v334_v53 }
  0x84   :  { %v342_v57 = vld [vmem:[#allocation2 + $0x720] sm:$0xff] }
  0x85   :  { %v346_v60 = vld [vmem:[#allocation2 + $0x740] sm:$0xff]  ;;  %v7514_v62 = vcombine.high %v338_v56, %v342_v57  ;;  %v7513_v63 = vcombine.low %v338_v56, %v342_v57 }
  0x86   :  { %1679 = vmatpush1.bf16.msra.mxu0 %v7401_v0  ;;  %v350_v61 = vld [vmem:[#allocation2 + $0x760] sm:$0xff] }
  0x87   :  { %1680 = vmatprep.subr.bf16.mxu0 %v7410_v3  ;;  %v354_v0 = vld [vmem:[#allocation2 + $0x780] sm:$0xff]  ;;  %v7522_v2 = vcombine.high %v346_v60, %v350_v61  ;;  %v7521_v3 = vcombine.low %v346_v60, %v350_v61 }
  0x88   :  { %v358_v1 = vld [vmem:[#allocation2 + $0x7a0] sm:$0xff] }
  0x89   :  { %v362_v4 = vld [vmem:[#allocation2 + $0x7c0] sm:$0xff]  ;;  %v7529_v7 = vcombine.low %v354_v0, %v358_v1 }
  0x8a   :  { %1681 = vmatpush1.bf16.msra.mxu0 %v7409_v6  ;;  %v366_v5 = vld [vmem:[#allocation2 + $0x7e0] sm:$0xff]  ;;  %v7530_v6 = vcombine.high %v354_v0, %v358_v1 }
  0x8b   :  { %1693 = vmatprep.subr.bf16.mxu0 %v7418_v11  ;;  %v7538_v10 = vcombine.high %v362_v4, %v366_v5  ;;  %v102_v11 = vld [vmem:[%s9706_s0 + $0x10] sm:$0xff]  ;;  %v7537_v14 = vcombine.low %v362_v4, %v366_v5 }
  0x8c   :  { %v224_v4 = vld [vmem:[#allocation2 + $0x370] sm:$0xff] }
  0x8d   :  { %1683 = vmatmul.mubr.bf16.vlgmr.msra.gmra.mrb[0].mxu0 %v9213_v12 }
  0x8e   :  { %1694 = vmatpush1.bf16.msra.mxu0 %v7417_v13  ;;  %1725 = vmatprep.mubr.bf16.mxu0 %v9215_v16  ;;  %v106_v13 = vld [vmem:[%s9706_s0 + $0x30] sm:$0xff] }
  0x8f   :  { %1695 = vmatprep.subr.bf16.mxu0 %v7426_v17  ;;  %v128_v17 = vld [vmem:[#allocation2 + $0x70] sm:$0xff]  ;;  %v9225_v19 = vpack.c.bf16 %v106_v13, %v102_v11 }
  0x90   :  { %v7302_v24 = vcombine.high %v124_v15, %v128_v17  ;;  %v7301_v25 = vcombine.low %v124_v15, %v128_v17  ;;  %v236_v11 = vld [vmem:[#allocation2 + $0x3d0] sm:$0xff] }
  0x91   :  { %v240_v13 = vld [vmem:[#allocation2 + $0x3f0] sm:$0xff] }
  0x92   :  { %1696 = vmatpush1.bf16.msra.mxu0 %v7425_v18  ;;  %v7294_v18 = vcombine.high %v116_v8, %v120_v9  ;;  %v232_v8 = vld [vmem:[#allocation2 + $0x3b0] sm:$0xff]  ;;  %v7414_v15 = vcombine.high %v236_v11, %v240_v13 }
  0x93   :  { %1697 = vmatprep.subr.bf16.mxu0 %v7434_v22  ;;  %v132_v22 = vld [vmem:[#allocation2 + $0x90] sm:$0xff] }
  0x94   :  { %v244_v17 = vld [vmem:[#allocation2 + $0x410] sm:$0xff] }
  0x96   :  { %1698 = vmatpush1.bf16.msra.mxu0 %v7433_v23  ;;  %v136_v23 = vld [vmem:[#allocation2 + $0xb0] sm:$0xff] }
  0x97   :  { %1699 = vmatprep.subr.bf16.mxu0 %v7442_v26  ;;  %v140_v26 = vld [vmem:[#allocation2 + $0xd0] sm:$0xff]  ;;  %v7310_v28 = vcombine.high %v132_v22, %v136_v23  ;;  %v7309_v29 = vcombine.low %v132_v22, %v136_v23 }
  0x98   :  { %v252_v23 = vld [vmem:[#allocation2 + $0x450] sm:$0xff] }
  0x9a   :  { %1700 = vmatpush1.bf16.msra.mxu0 %v7441_v27  ;;  %v144_v27 = vld [vmem:[#allocation2 + $0xf0] sm:$0xff] }
  0x9b   :  { %1701 = vmatprep.subr.bf16.mxu0 %v7450_v30  ;;  %v148_v30 = vld [vmem:[#allocation2 + $0x110] sm:$0xff]  ;;  %v7318_v32 = vcombine.high %v140_v26, %v144_v27  ;;  %v7317_v33 = vcombine.low %v140_v26, %v144_v27 }
  0x9c   :  { %v260_v27 = vld [vmem:[#allocation2 + $0x490] sm:$0xff] }
  0x9e   :  { %1702 = vmatpush1.bf16.msra.mxu0 %v7449_v31  ;;  %v152_v31 = vld [vmem:[#allocation2 + $0x130] sm:$0xff] }
  0x9f   :  { %1703 = vmatprep.subr.bf16.mxu0 %v7458_v34  ;;  %v156_v34 = vld [vmem:[#allocation2 + $0x150] sm:$0xff]  ;;  %v7326_v36 = vcombine.high %v148_v30, %v152_v31  ;;  %v7325_v37 = vcombine.low %v148_v30, %v152_v31 }
  0xa0   :  { %v268_v31 = vld [vmem:[#allocation2 + $0x4d0] sm:$0xff] }
  0xa2   :  { %1704 = vmatpush1.bf16.msra.mxu0 %v7457_v35  ;;  %v160_v35 = vld [vmem:[#allocation2 + $0x170] sm:$0xff] }
  0xa3   :  { %1705 = vmatprep.subr.bf16.mxu0 %v7466_v38  ;;  %v164_v38 = vld [vmem:[#allocation2 + $0x190] sm:$0xff]  ;;  %v7334_v40 = vcombine.high %v156_v34, %v160_v35  ;;  %v7333_v41 = vcombine.low %v156_v34, %v160_v35 }
  0xa4   :  { %v276_v35 = vld [vmem:[#allocation2 + $0x510] sm:$0xff] }
  0xa6   :  { %1706 = vmatpush1.bf16.msra.mxu0 %v7465_v39  ;;  %v168_v39 = vld [vmem:[#allocation2 + $0x1b0] sm:$0xff] }
  0xa7   :  { %1707 = vmatprep.subr.bf16.mxu0 %v7474_v42  ;;  %v172_v42 = vld [vmem:[#allocation2 + $0x1d0] sm:$0xff]  ;;  %v7342_v44 = vcombine.high %v164_v38, %v168_v39  ;;  %v7341_v45 = vcombine.low %v164_v38, %v168_v39 }
  0xa8   :  { %v284_v39 = vld [vmem:[#allocation2 + $0x550] sm:$0xff] }
  0xaa   :  { %1708 = vmatpush1.bf16.msra.mxu0 %v7473_v43  ;;  %v176_v43 = vld [vmem:[#allocation2 + $0x1f0] sm:$0xff] }
  0xab   :  { %1709 = vmatprep.subr.bf16.mxu0 %v7482_v46  ;;  %v180_v46 = vld [vmem:[#allocation2 + $0x210] sm:$0xff]  ;;  %v7350_v48 = vcombine.high %v172_v42, %v176_v43  ;;  %v7349_v49 = vcombine.low %v172_v42, %v176_v43 }
  0xac   :  { %v292_v43 = vld [vmem:[#allocation2 + $0x590] sm:$0xff] }
  0xae   :  { %1710 = vmatpush1.bf16.msra.mxu0 %v7481_v47  ;;  %v184_v47 = vld [vmem:[#allocation2 + $0x230] sm:$0xff] }
  0xaf   :  { %1711 = vmatprep.subr.bf16.mxu0 %v7490_v50  ;;  %v188_v50 = vld [vmem:[#allocation2 + $0x250] sm:$0xff]  ;;  %v7358_v52 = vcombine.high %v180_v46, %v184_v47  ;;  %v7357_v53 = vcombine.low %v180_v46, %v184_v47 }
  0xb0   :  { %v300_v47 = vld [vmem:[#allocation2 + $0x5d0] sm:$0xff] }
  0xb2   :  { %1712 = vmatpush1.bf16.msra.mxu0 %v7489_v51  ;;  %v192_v51 = vld [vmem:[#allocation2 + $0x270] sm:$0xff] }
  0xb3   :  { %1713 = vmatprep.subr.bf16.mxu0 %v7498_v54  ;;  %v196_v54 = vld [vmem:[#allocation2 + $0x290] sm:$0xff]  ;;  %v7366_v56 = vcombine.high %v188_v50, %v192_v51  ;;  %v7365_v57 = vcombine.low %v188_v50, %v192_v51 }
  0xb4   :  { %v308_v51 = vld [vmem:[#allocation2 + $0x610] sm:$0xff] }
  0xb6   :  { %1714 = vmatpush1.bf16.msra.mxu0 %v7497_v55  ;;  %v200_v55 = vld [vmem:[#allocation2 + $0x2b0] sm:$0xff] }
  0xb7   :  { %1715 = vmatprep.subr.bf16.mxu0 %v7506_v58  ;;  %v204_v58 = vld [vmem:[#allocation2 + $0x2d0] sm:$0xff]  ;;  %v7374_v60 = vcombine.high %v196_v54, %v200_v55  ;;  %v7373_v61 = vcombine.low %v196_v54, %v200_v55 }
  0xb8   :  { %v316_v55 = vld [vmem:[#allocation2 + $0x650] sm:$0xff] }
  0xba   :  { %1716 = vmatpush1.bf16.msra.mxu0 %v7505_v59  ;;  %v208_v59 = vld [vmem:[#allocation2 + $0x2f0] sm:$0xff] }
  0xbb   :  { %1717 = vmatprep.subr.bf16.mxu0 %v7514_v62  ;;  %v212_v62 = vld [vmem:[#allocation2 + $0x310] sm:$0xff]  ;;  %v7382_v0 = vcombine.high %v204_v58, %v208_v59  ;;  %v7381_v1 = vcombine.low %v204_v58, %v208_v59 }
  0xbc   :  { %v324_v59 = vld [vmem:[#allocation2 + $0x690] sm:$0xff] }
  0xbe   :  { %1718 = vmatpush1.bf16.msra.mxu0 %v7513_v63  ;;  %v216_v63 = vld [vmem:[#allocation2 + $0x330] sm:$0xff] }
  0xbf   :  { %1719 = vmatprep.subr.bf16.mxu0 %v7522_v2  ;;  %v7390_v2 = vcombine.high %v212_v62, %v216_v63  ;;  %v7389_v5 = vcombine.low %v212_v62, %v216_v63  ;;  %v332_v63 = vld [vmem:[#allocation2 + $0x6d0] sm:$0xff] }
  0xc2   :  { %1720 = vmatpush1.bf16.msra.mxu0 %v7521_v3  ;;  %v220_v3 = vld [vmem:[#allocation2 + $0x350] sm:$0xff] }
  0xc3   :  { %1721 = vmatprep.subr.bf16.mxu0 %v7530_v6  ;;  %v7398_v6 = vcombine.high %v220_v3, %v224_v4  ;;  %v7397_v9 = vcombine.low %v220_v3, %v224_v4  ;;  %v340_v3 = vld [vmem:[#allocation2 + $0x710] sm:$0xff] }
  0xc4   :  { %v344_v4 = vld [vmem:[#allocation2 + $0x730] sm:$0xff] }
  0xc6   :  { %1722 = vmatpush1.bf16.msra.mxu0 %v7529_v7  ;;  %v228_v7 = vld [vmem:[#allocation2 + $0x390] sm:$0xff] }
  0xc7   :  { %1723 = vmatprep.subr.bf16.mxu0 %v7538_v10  ;;  %v7406_v10 = vcombine.high %v228_v7, %v232_v8 }
  0xca   :  { %1724 = vmatpush1.bf16.msra.mxu0 %v7537_v14  ;;  %v7405_v14 = vcombine.low %v228_v7, %v232_v8  ;;  %v348_v7 = vld [vmem:[#allocation2 + $0x750] sm:$0xff] }
  0xcb   :  { %1822 = vmatprep.subr.bf16.mxu0 %v7294_v18  ;;  %v248_v18 = vld [vmem:[#allocation2 + $0x430] sm:$0xff] }
  0xcc   :  { %v7422_v22 = vcombine.high %v244_v17, %v248_v18  ;;  %v352_v8 = vld [vmem:[#allocation2 + $0x770] sm:$0xff] }
  0xcd   :  { %1726 = vmatmul.mubr.bf16.vlgmr.msra.gmra.mrb[0].mxu0 %v9225_v19 }
  0xce   :  { %1823 = vmatpush1.bf16.msra.mxu0 %v7293_v21  ;;  %1854 = vmatprep.mubr.bf16.mxu0 %v9197_v20  ;;  %v7413_v21 = vcombine.low %v236_v11, %v240_v13  ;;  %v356_v11 = vld [vmem:[#allocation2 + $0x790] sm:$0xff] }
  0xcf   :  { %1824 = vmatprep.subr.bf16.mxu0 %v7302_v24  ;;  %v256_v24 = vld [vmem:[#allocation2 + $0x470] sm:$0xff] }
  0xd0   :  { %v7430_v26 = vcombine.high %v252_v23, %v256_v24  ;;  %v360_v13 = vld [vmem:[#allocation2 + $0x7b0] sm:$0xff] }
  0xd2   :  { %1825 = vmatpush1.bf16.msra.mxu0 %v7301_v25  ;;  %v7421_v25 = vcombine.low %v244_v17, %v248_v18  ;;  %v364_v17 = vld [vmem:[#allocation2 + $0x7d0] sm:$0xff] }
  0xd3   :  { %1826 = vmatprep.subr.bf16.mxu0 %v7310_v28  ;;  %v264_v28 = vld [vmem:[#allocation2 + $0x4b0] sm:$0xff] }
  0xd4   :  { %v7438_v30 = vcombine.high %v260_v27, %v264_v28  ;;  %v368_v18 = vld [vmem:[#allocation2 + $0x7f0] sm:$0xff] }
  0xd6   :  { %1827 = vmatpush1.bf16.msra.mxu0 %v7309_v29  ;;  %v7429_v29 = vcombine.low %v252_v23, %v256_v24  ;;  %v7541_v23 = vcombine.low %v364_v17, %v368_v18  ;;  %v115_v24 = vld [vmem:[#allocation2 + $0x8] sm:$0xff] }
  0xd7   :  { %1828 = vmatprep.subr.bf16.mxu0 %v7318_v32  ;;  %v272_v32 = vld [vmem:[#allocation2 + $0x4f0] sm:$0xff] }
  0xd8   :  { %v7446_v34 = vcombine.high %v268_v31, %v272_v32 }
  0xda   :  { %1829 = vmatpush1.bf16.msra.mxu0 %v7317_v33  ;;  %v7437_v33 = vcombine.low %v260_v27, %v264_v28 }
  0xdb   :  { %1830 = vmatprep.subr.bf16.mxu0 %v7326_v36  ;;  %v280_v36 = vld [vmem:[#allocation2 + $0x530] sm:$0xff] }
  0xdc   :  { %v7454_v38 = vcombine.high %v276_v35, %v280_v36 }
  0xde   :  { %1831 = vmatpush1.bf16.msra.mxu0 %v7325_v37  ;;  %v7445_v37 = vcombine.low %v268_v31, %v272_v32  ;;  %v131_v31 = vld [vmem:[#allocation2 + $0x88] sm:$0xff] }
  0xdf   :  { %1832 = vmatprep.subr.bf16.mxu0 %v7334_v40  ;;  %v288_v40 = vld [vmem:[#allocation2 + $0x570] sm:$0xff]  ;;  %v135_v32 = vld [vmem:[#allocation2 + $0xa8] sm:$0xff] }
  0xe0   :  { %v7462_v42 = vcombine.high %v284_v39, %v288_v40 }
  0xe2   :  { %1833 = vmatpush1.bf16.msra.mxu0 %v7333_v41  ;;  %v7453_v41 = vcombine.low %v276_v35, %v280_v36  ;;  %v139_v35 = vld [vmem:[#allocation2 + $0xc8] sm:$0xff] }
  0xe3   :  { %1834 = vmatprep.subr.bf16.mxu0 %v7342_v44  ;;  %v296_v44 = vld [vmem:[#allocation2 + $0x5b0] sm:$0xff]  ;;  %v143_v36 = vld [vmem:[#allocation2 + $0xe8] sm:$0xff] }
  0xe4   :  { %v7470_v46 = vcombine.high %v292_v43, %v296_v44 }
  0xe6   :  { %1835 = vmatpush1.bf16.msra.mxu0 %v7341_v45  ;;  %v7461_v45 = vcombine.low %v284_v39, %v288_v40  ;;  %v147_v39 = vld [vmem:[#allocation2 + $0x108] sm:$0xff] }
  0xe7   :  { %1836 = vmatprep.subr.bf16.mxu0 %v7350_v48  ;;  %v304_v48 = vld [vmem:[#allocation2 + $0x5f0] sm:$0xff]  ;;  %v151_v40 = vld [vmem:[#allocation2 + $0x128] sm:$0xff] }
  0xe8   :  { %v7478_v50 = vcombine.high %v300_v47, %v304_v48 }
  0xea   :  { %1837 = vmatpush1.bf16.msra.mxu0 %v7349_v49  ;;  %v7469_v49 = vcombine.low %v292_v43, %v296_v44  ;;  %v155_v43 = vld [vmem:[#allocation2 + $0x148] sm:$0xff] }
  0xeb   :  { %1838 = vmatprep.subr.bf16.mxu0 %v7358_v52  ;;  %v312_v52 = vld [vmem:[#allocation2 + $0x630] sm:$0xff]  ;;  %v159_v44 = vld [vmem:[#allocation2 + $0x168] sm:$0xff] }
  0xec   :  { %v7486_v54 = vcombine.high %v308_v51, %v312_v52 }
  0xee   :  { %1839 = vmatpush1.bf16.msra.mxu0 %v7357_v53  ;;  %v7477_v53 = vcombine.low %v300_v47, %v304_v48  ;;  %v163_v47 = vld [vmem:[#allocation2 + $0x188] sm:$0xff] }
  0xef   :  { %1840 = vmatprep.subr.bf16.mxu0 %v7366_v56  ;;  %v320_v56 = vld [vmem:[#allocation2 + $0x670] sm:$0xff]  ;;  %v167_v48 = vld [vmem:[#allocation2 + $0x1a8] sm:$0xff] }
  0xf0   :  { %v7494_v58 = vcombine.high %v316_v55, %v320_v56 }
  0xf2   :  { %1841 = vmatpush1.bf16.msra.mxu0 %v7365_v57  ;;  %v7485_v57 = vcombine.low %v308_v51, %v312_v52  ;;  %v171_v51 = vld [vmem:[#allocation2 + $0x1c8] sm:$0xff] }
  0xf3   :  { %1842 = vmatprep.subr.bf16.mxu0 %v7374_v60  ;;  %v328_v60 = vld [vmem:[#allocation2 + $0x6b0] sm:$0xff]  ;;  %v175_v52 = vld [vmem:[#allocation2 + $0x1e8] sm:$0xff] }
  0xf4   :  { %v7502_v62 = vcombine.high %v324_v59, %v328_v60 }
  0xf6   :  { %1843 = vmatpush1.bf16.msra.mxu0 %v7373_v61  ;;  %v7493_v61 = vcombine.low %v316_v55, %v320_v56  ;;  %v179_v55 = vld [vmem:[#allocation2 + $0x208] sm:$0xff] }
  0xf7   :  { %1844 = vmatprep.subr.bf16.mxu0 %v7382_v0  ;;  %v336_v0 = vld [vmem:[#allocation2 + $0x6f0] sm:$0xff]  ;;  %v183_v56 = vld [vmem:[#allocation2 + $0x228] sm:$0xff] }
  0xfa   :  { %1845 = vmatpush1.bf16.msra.mxu0 %v7381_v1  ;;  %v7501_v1 = vcombine.low %v324_v59, %v328_v60  ;;  %v187_v59 = vld [vmem:[#allocation2 + $0x248] sm:$0xff] }
  0xfb   :  { %1846 = vmatprep.subr.bf16.mxu0 %v7390_v2  ;;  %v7510_v2 = vcombine.high %v332_v63, %v336_v0  ;;  %v191_v60 = vld [vmem:[#allocation2 + $0x268] sm:$0xff] }
  0xfe   :  { %1847 = vmatpush1.bf16.msra.mxu0 %v7389_v5  ;;  %v7509_v5 = vcombine.low %v332_v63, %v336_v0  ;;  %v195_v63 = vld [vmem:[#allocation2 + $0x288] sm:$0xff] }
  0xff   :  { %1848 = vmatprep.subr.bf16.mxu0 %v7398_v6  ;;  %v7518_v6 = vcombine.high %v340_v3, %v344_v4  ;;  %v199_v0 = vld [vmem:[#allocation2 + $0x2a8] sm:$0xff] }
 0x102   :  { %1849 = vmatpush1.bf16.msra.mxu0 %v7397_v9  ;;  %v7517_v9 = vcombine.low %v340_v3, %v344_v4  ;;  %v203_v3 = vld [vmem:[#allocation2 + $0x2c8] sm:$0xff] }
 0x103   :  { %1850 = vmatprep.subr.bf16.mxu0 %v7406_v10  ;;  %v7526_v10 = vcombine.high %v348_v7, %v352_v8  ;;  %v207_v4 = vld [vmem:[#allocation2 + $0x2e8] sm:$0xff] }
 0x106   :  { %1851 = vmatpush1.bf16.msra.mxu0 %v7405_v14  ;;  %v7525_v14 = vcombine.low %v348_v7, %v352_v8  ;;  %v211_v7 = vld [vmem:[#allocation2 + $0x308] sm:$0xff] }
 0x107   :  { %1852 = vmatprep.subr.bf16.mxu0 %v7414_v15  ;;  %v7534_v15 = vcombine.high %v356_v11, %v360_v13  ;;  %v215_v8 = vld [vmem:[#allocation2 + $0x328] sm:$0xff] }
 0x10a   :  { %1853 = vmatpush1.bf16.msra.mxu0 %v7413_v21  ;;  %v7533_v21 = vcombine.low %v356_v11, %v360_v13  ;;  %v219_v11 = vld [vmem:[#allocation2 + $0x348] sm:$0xff] }
 0x10b   :  { %1865 = vmatprep.subr.bf16.mxu0 %v7422_v22  ;;  %v7542_v22 = vcombine.high %v364_v17, %v368_v18  ;;  %v223_v13 = vld [vmem:[#allocation2 + $0x368] sm:$0xff] }
 0x10c   :  { %v227_v17 = vld [vmem:[#allocation2 + $0x388] sm:$0xff] }
 0x10d   :  { %1855 = vmatmul.mubr.bf16.vlgmr.msra.gmra.mrb[4].mxu0 %v9213_v12  ;;  %v231_v18 = vld [vmem:[#allocation2 + $0x3a8] sm:$0xff] }
 0x10e   :  { %1866 = vmatpush1.bf16.msra.mxu0 %v7421_v25  ;;  %1897 = vmatprep.mubr.bf16.mxu0 %v9215_v16  ;;  %v119_v25 = vld [vmem:[#allocation2 + $0x28] sm:$0xff] }
 0x10f   :  { %1867 = vmatprep.subr.bf16.mxu0 %v7430_v26  ;;  %v123_v26 = vld [vmem:[#allocation2 + $0x48] sm:$0xff]  ;;  %v7292_v27 = vcombine.high %v115_v24, %v119_v25  ;;  %v7291_v28 = vcombine.low %v115_v24, %v119_v25  ;;  %v7403_v25 = vcombine.low %v227_v17, %v231_v18 }
 0x110   :  { %v239_v24 = vld [vmem:[#allocation2 + $0x3e8] sm:$0xff] }
 0x111   :  { %1736 = vmatprep.subr.bf16.mxu1 %v7292_v27 }
 0x112   :  { %1868 = vmatpush1.bf16.msra.mxu0 %v7429_v29  ;;  %v127_v29 = vld [vmem:[#allocation2 + $0x68] sm:$0xff]  ;;  %1737 = vmatpush1.bf16.msra.mxu1 %v7291_v28 }
 0x113   :  { %1869 = vmatprep.subr.bf16.mxu0 %v7438_v30  ;;  %v7300_v30 = vcombine.high %v123_v26, %v127_v29  ;;  %v243_v28 = vld [vmem:[#allocation2 + $0x408] sm:$0xff] }
 0x115   :  { %1738 = vmatprep.subr.bf16.mxu1 %v7300_v30 }
 0x116   :  { %1870 = vmatpush1.bf16.msra.mxu0 %v7437_v33  ;;  %v7299_v33 = vcombine.low %v123_v26, %v127_v29  ;;  %v247_v29 = vld [vmem:[#allocation2 + $0x428] sm:$0xff] }
 0x117   :  { %1871 = vmatprep.subr.bf16.mxu0 %v7446_v34  ;;  %v7308_v34 = vcombine.high %v131_v31, %v135_v32  ;;  %v7420_v30 = vcombine.high %v243_v28, %v247_v29 }
 0x118   :  { %1739 = vmatpush1.bf16.msra.mxu1 %v7299_v33  ;;  %v255_v33 = vld [vmem:[#allocation2 + $0x468] sm:$0xff] }
 0x119   :  { %1740 = vmatprep.subr.bf16.mxu1 %v7308_v34 }
 0x11a   :  { %1872 = vmatpush1.bf16.msra.mxu0 %v7445_v37  ;;  %v7307_v37 = vcombine.low %v131_v31, %v135_v32  ;;  %v7419_v31 = vcombine.low %v243_v28, %v247_v29  ;;  %v251_v32 = vld [vmem:[#allocation2 + $0x448] sm:$0xff] }
 0x11b   :  { %1873 = vmatprep.subr.bf16.mxu0 %v7454_v38  ;;  %v7316_v38 = vcombine.high %v139_v35, %v143_v36  ;;  %v7428_v34 = vcombine.high %v251_v32, %v255_v33  ;;  %v347_v28 = vld [vmem:[#allocation2 + $0x748] sm:$0xff] }
 0x11c   :  { %1741 = vmatpush1.bf16.msra.mxu1 %v7307_v37  ;;  %v263_v37 = vld [vmem:[#allocation2 + $0x4a8] sm:$0xff] }
 0x11d   :  { %1742 = vmatprep.subr.bf16.mxu1 %v7316_v38  ;;  %v351_v29 = vld [vmem:[#allocation2 + $0x768] sm:$0xff] }
 0x11e   :  { %1874 = vmatpush1.bf16.msra.mxu0 %v7453_v41  ;;  %v7315_v41 = vcombine.low %v139_v35, %v143_v36  ;;  %v7427_v35 = vcombine.low %v251_v32, %v255_v33  ;;  %v259_v36 = vld [vmem:[#allocation2 + $0x488] sm:$0xff]  ;;  %v7524_v32 = vcombine.high %v347_v28, %v351_v29 }
 0x11f   :  { %1875 = vmatprep.subr.bf16.mxu0 %v7462_v42  ;;  %v7324_v42 = vcombine.high %v147_v39, %v151_v40  ;;  %v7436_v38 = vcombine.high %v259_v36, %v263_v37  ;;  %v355_v33 = vld [vmem:[#allocation2 + $0x788] sm:$0xff] }
 0x120   :  { %1743 = vmatpush1.bf16.msra.mxu1 %v7315_v41  ;;  %v271_v41 = vld [vmem:[#allocation2 + $0x4e8] sm:$0xff] }
 0x121   :  { %1744 = vmatprep.subr.bf16.mxu1 %v7324_v42 }
 0x122   :  { %1876 = vmatpush1.bf16.msra.mxu0 %v7461_v45  ;;  %v7323_v45 = vcombine.low %v147_v39, %v151_v40  ;;  %v7435_v39 = vcombine.low %v259_v36, %v263_v37  ;;  %v267_v40 = vld [vmem:[#allocation2 + $0x4c8] sm:$0xff] }
 0x123   :  { %1877 = vmatprep.subr.bf16.mxu0 %v7470_v46  ;;  %v7332_v46 = vcombine.high %v155_v43, %v159_v44  ;;  %v7444_v42 = vcombine.high %v267_v40, %v271_v41  ;;  %v363_v37 = vld [vmem:[#allocation2 + $0x7c8] sm:$0xff] }
 0x124   :  { %1745 = vmatpush1.bf16.msra.mxu1 %v7323_v45 }
 0x125   :  { %1746 = vmatprep.subr.bf16.mxu1 %v7332_v46 }
 0x126   :  { %1878 = vmatpush1.bf16.msra.mxu0 %v7469_v49  ;;  %v7331_v49 = vcombine.low %v155_v43, %v159_v44  ;;  %v7443_v43 = vcombine.low %v267_v40, %v271_v41 }
 0x127   :  { %1879 = vmatprep.subr.bf16.mxu0 %v7478_v50  ;;  %v7340_v50 = vcombine.high %v163_v47, %v167_v48 }
 0x128   :  { %1747 = vmatpush1.bf16.msra.mxu1 %v7331_v49 }
 0x129   :  { %1748 = vmatprep.subr.bf16.mxu1 %v7340_v50 }
 0x12a   :  { %1880 = vmatpush1.bf16.msra.mxu0 %v7477_v53  ;;  %v7339_v53 = vcombine.low %v163_v47, %v167_v48  ;;  %v275_v47 = vld [vmem:[#allocation2 + $0x508] sm:$0xff] }
 0x12b   :  { %1881 = vmatprep.subr.bf16.mxu0 %v7486_v54  ;;  %v7348_v54 = vcombine.high %v171_v51, %v175_v52  ;;  %v279_v48 = vld [vmem:[#allocation2 + $0x528] sm:$0xff] }
 0x12c   :  { %1749 = vmatpush1.bf16.msra.mxu1 %v7339_v53  ;;  %v283_v53 = vld [vmem:[#allocation2 + $0x548] sm:$0xff] }
 0x12d   :  { %1750 = vmatprep.subr.bf16.mxu1 %v7348_v54  ;;  %v287_v54 = vld [vmem:[#allocation2 + $0x568] sm:$0xff] }
 0x12e   :  { %1882 = vmatpush1.bf16.msra.mxu0 %v7485_v57  ;;  %v7347_v57 = vcombine.low %v171_v51, %v175_v52  ;;  %v7451_v51 = vcombine.low %v275_v47, %v279_v48  ;;  %v7452_v52 = vcombine.high %v275_v47, %v279_v48  ;;  %v125_v48 = vld [vmem:[#allocation2 + $0x58] sm:$0xff] }
 0x12f   :  { %1883 = vmatprep.subr.bf16.mxu0 %v7494_v58  ;;  %v7356_v58 = vcombine.high %v179_v55, %v183_v56 }
 0x130   :  { %1751 = vmatpush1.bf16.msra.mxu1 %v7347_v57 }
 0x131   :  { %1752 = vmatprep.subr.bf16.mxu1 %v7356_v58  ;;  %v7460_v58 = vcombine.high %v283_v53, %v287_v54 }
 0x132   :  { %1884 = vmatpush1.bf16.msra.mxu0 %v7493_v61  ;;  %v7355_v61 = vcombine.low %v179_v55, %v183_v56 }
 0x133   :  { %1885 = vmatprep.subr.bf16.mxu0 %v7502_v62  ;;  %v7364_v62 = vcombine.high %v187_v59, %v191_v60 }
 0x134   :  { %1753 = vmatpush1.bf16.msra.mxu1 %v7355_v61 }
 0x135   :  { %1754 = vmatprep.subr.bf16.mxu1 %v7364_v62  ;;  %v7459_v62 = vcombine.low %v283_v53, %v287_v54  ;;  %v133_v53 = vld [vmem:[#allocation2 + $0x98] sm:$0xff] }
 0x136   :  { %1886 = vmatpush1.bf16.msra.mxu0 %v7501_v1  ;;  %v7363_v1 = vcombine.low %v187_v59, %v191_v60  ;;  %v291_v59 = vld [vmem:[#allocation2 + $0x588] sm:$0xff]  ;;  %v137_v54 = vld [vmem:[#allocation2 + $0xb8] sm:$0xff] }
 0x137   :  { %1887 = vmatprep.subr.bf16.mxu0 %v7510_v2  ;;  %v7372_v2 = vcombine.high %v195_v63, %v199_v0  ;;  %v295_v60 = vld [vmem:[#allocation2 + $0x5a8] sm:$0xff] }
 0x138   :  { %1755 = vmatpush1.bf16.msra.mxu1 %v7363_v1  ;;  %v303_v1 = vld [vmem:[#allocation2 + $0x5e8] sm:$0xff] }
 0x139   :  { %1756 = vmatprep.subr.bf16.mxu1 %v7372_v2  ;;  %v7467_v2 = vcombine.low %v291_v59, %v295_v60 }
 0x13a   :  { %1888 = vmatpush1.bf16.msra.mxu0 %v7509_v5  ;;  %v7371_v5 = vcombine.low %v195_v63, %v199_v0  ;;  %v7468_v63 = vcombine.high %v291_v59, %v295_v60  ;;  %v299_v0 = vld [vmem:[#allocation2 + $0x5c8] sm:$0xff]  ;;  %v7312_v59 = vcombine.high %v133_v53, %v137_v54  ;;  %v145_v60 = vld [vmem:[#allocation2 + $0xf8] sm:$0xff] }
 0x13b   :  { %1889 = vmatprep.subr.bf16.mxu0 %v7518_v6  ;;  %v7380_v6 = vcombine.high %v203_v3, %v207_v4 }
 0x13c   :  { %1757 = vmatpush1.bf16.msra.mxu1 %v7371_v5  ;;  %v311_v5 = vld [vmem:[#allocation2 + $0x628] sm:$0xff] }
 0x13d   :  { %1758 = vmatprep.subr.bf16.mxu1 %v7380_v6  ;;  %v7475_v6 = vcombine.low %v299_v0, %v303_v1 }
 0x13e   :  { %1890 = vmatpush1.bf16.msra.mxu0 %v7517_v9  ;;  %v7379_v9 = vcombine.low %v203_v3, %v207_v4  ;;  %v7476_v3 = vcombine.high %v299_v0, %v303_v1  ;;  %v307_v4 = vld [vmem:[#allocation2 + $0x608] sm:$0xff] }
 0x13f   :  { %1891 = vmatprep.subr.bf16.mxu0 %v7526_v10  ;;  %v7388_v10 = vcombine.high %v211_v7, %v215_v8 }
 0x140   :  { %1759 = vmatpush1.bf16.msra.mxu1 %v7379_v9  ;;  %v319_v9 = vld [vmem:[#allocation2 + $0x668] sm:$0xff] }
 0x141   :  { %1760 = vmatprep.subr.bf16.mxu1 %v7388_v10  ;;  %v7483_v10 = vcombine.low %v307_v4, %v311_v5 }
 0x142   :  { %1892 = vmatpush1.bf16.msra.mxu0 %v7525_v14  ;;  %v7387_v14 = vcombine.low %v211_v7, %v215_v8  ;;  %v7484_v7 = vcombine.high %v307_v4, %v311_v5  ;;  %v315_v8 = vld [vmem:[#allocation2 + $0x648] sm:$0xff]  ;;  %v165_v5 = vld [vmem:[#allocation2 + $0x198] sm:$0xff] }
 0x143   :  { %1893 = vmatprep.subr.bf16.mxu0 %v7534_v15  ;;  %v7396_v15 = vcombine.high %v219_v11, %v223_v13 }
 0x144   :  { %1761 = vmatpush1.bf16.msra.mxu1 %v7387_v14  ;;  %v327_v14 = vld [vmem:[#allocation2 + $0x6a8] sm:$0xff] }
 0x145   :  { %1762 = vmatprep.subr.bf16.mxu1 %v7396_v15  ;;  %v7491_v15 = vcombine.low %v315_v8, %v319_v9 }
 0x146   :  { %1894 = vmatpush1.bf16.msra.mxu0 %v7533_v21  ;;  %v7395_v21 = vcombine.low %v219_v11, %v223_v13  ;;  %v7492_v11 = vcombine.high %v315_v8, %v319_v9  ;;  %v323_v13 = vld [vmem:[#allocation2 + $0x688] sm:$0xff]  ;;  %v173_v9 = vld [vmem:[#allocation2 + $0x1d8] sm:$0xff] }
 0x147   :  { %1895 = vmatprep.subr.bf16.mxu0 %v7542_v22  ;;  %v7404_v22 = vcombine.high %v227_v17, %v231_v18  ;;  %v7500_v17 = vcombine.high %v323_v13, %v327_v14  ;;  %v331_v18 = vld [vmem:[#allocation2 + $0x6c8] sm:$0xff] }
 0x148   :  { %1763 = vmatpush1.bf16.msra.mxu1 %v7395_v21  ;;  %v335_v21 = vld [vmem:[#allocation2 + $0x6e8] sm:$0xff] }
 0x149   :  { %1764 = vmatprep.subr.bf16.mxu1 %v7404_v22  ;;  %v7499_v22 = vcombine.low %v323_v13, %v327_v14  ;;  %v181_v14 = vld [vmem:[#allocation2 + $0x218] sm:$0xff] }
 0x14a   :  { %1896 = vmatpush1.bf16.msra.mxu0 %v7541_v23  ;;  %v235_v23 = vld [vmem:[#allocation2 + $0x3c8] sm:$0xff] }
 0x14b   :  { %v7412_v26 = vcombine.high %v235_v23, %v239_v24  ;;  %v7411_v27 = vcombine.low %v235_v23, %v239_v24  ;;  %v7508_v23 = vcombine.high %v331_v18, %v335_v21  ;;  %v339_v24 = vld [vmem:[#allocation2 + $0x708] sm:$0xff] }
 0x14c   :  { %1765 = vmatpush1.bf16.msra.mxu1 %v7403_v25  ;;  %v343_v25 = vld [vmem:[#allocation2 + $0x728] sm:$0xff] }
 0x14d   :  { %1898 = vmatmul.mubr.bf16.vlgmr.msra.gmra.mrb[4].mxu0 %v9225_v19  ;;  %1766 = vmatprep.subr.bf16.mxu1 %v7412_v26  ;;  %v7507_v26 = vcombine.low %v331_v18, %v335_v21  ;;  %v189_v21 = vld [vmem:[#allocation2 + $0x258] sm:$0xff] }
 0x150   :  { %1767 = vmatpush1.bf16.msra.mxu1 %v7411_v27  ;;  %v7516_v27 = vcombine.high %v339_v24, %v343_v25 }
 0x151   :  { %1779 = vmatprep.subr.bf16.mxu1 %v7420_v30  ;;  %v7515_v30 = vcombine.low %v339_v24, %v343_v25  ;;  %v197_v25 = vld [vmem:[#allocation2 + $0x298] sm:$0xff] }
 0x153   :  { %1769 = vmatmul.mubr.bf16.vlgmr.msra.gmra.mrb[0].mxu1 %v9213_v12 }
 0x154   :  { %1811 = vmatprep.mubr.bf16.mxu1 %v9215_v16  ;;  %1780 = vmatpush1.bf16.msra.mxu1 %v7419_v31 }
 0x155   :  { %1781 = vmatprep.subr.bf16.mxu1 %v7428_v34  ;;  %v359_v34 = vld [vmem:[#allocation2 + $0x7a8] sm:$0xff] }
 0x156   :  { %v7532_v36 = vcombine.high %v355_v33, %v359_v34  ;;  %v7531_v40 = vcombine.low %v355_v33, %v359_v34  ;;  %v213_v34 = vld [vmem:[#allocation2 + $0x318] sm:$0xff] }
 0x158   :  { %1782 = vmatpush1.bf16.msra.mxu1 %v7427_v35  ;;  %v7523_v35 = vcombine.low %v347_v28, %v351_v29  ;;  %v205_v29 = vld [vmem:[#allocation2 + $0x2d8] sm:$0xff] }
 0x159   :  { %1783 = vmatprep.subr.bf16.mxu1 %v7436_v38  ;;  %v367_v38 = vld [vmem:[#allocation2 + $0x7e8] sm:$0xff] }
 0x15a   :  { %v7540_v41 = vcombine.high %v363_v37, %v367_v38 }
 0x15c   :  { %1784 = vmatpush1.bf16.msra.mxu1 %v7435_v39 }
 0x15d   :  { %1785 = vmatprep.subr.bf16.mxu1 %v7444_v42  ;;  %v7539_v42 = vcombine.low %v363_v37, %v367_v38  ;;  %v221_v38 = vld [vmem:[#allocation2 + $0x358] sm:$0xff] }
 0x160   :  { %1786 = vmatpush1.bf16.msra.mxu1 %v7443_v43  ;;  %v117_v43 = vld [vmem:[#allocation2 + $0x18] sm:$0xff] }
 0x161   :  { %1787 = vmatprep.subr.bf16.mxu1 %v7452_v52 }
 0x164   :  { %1788 = vmatpush1.bf16.msra.mxu1 %v7451_v51 }
 0x165   :  { %1789 = vmatprep.subr.bf16.mxu1 %v7460_v58  ;;  %v7311_v58 = vcombine.low %v133_v53, %v137_v54 }
 0x168   :  { %1790 = vmatpush1.bf16.msra.mxu1 %v7459_v62  ;;  %v149_v62 = vld [vmem:[#allocation2 + $0x118] sm:$0xff] }
 0x169   :  { %1791 = vmatprep.subr.bf16.mxu1 %v7468_v63  ;;  %v153_v63 = vld [vmem:[#allocation2 + $0x138] sm:$0xff] }
 0x16a   :  { %v7328_v1 = vcombine.high %v149_v62, %v153_v63 }
 0x16c   :  { %1792 = vmatpush1.bf16.msra.mxu1 %v7467_v2  ;;  %v157_v2 = vld [vmem:[#allocation2 + $0x158] sm:$0xff] }
 0x16d   :  { %1793 = vmatprep.subr.bf16.mxu1 %v7476_v3  ;;  %v161_v3 = vld [vmem:[#allocation2 + $0x178] sm:$0xff] }
 0x16e   :  { %v7336_v4 = vcombine.high %v157_v2, %v161_v3 }
 0x170   :  { %1794 = vmatpush1.bf16.msra.mxu1 %v7475_v6  ;;  %v169_v6 = vld [vmem:[#allocation2 + $0x1b8] sm:$0xff] }
 0x171   :  { %1795 = vmatprep.subr.bf16.mxu1 %v7484_v7  ;;  %v7335_v7 = vcombine.low %v157_v2, %v161_v3  ;;  %v7344_v8 = vcombine.high %v165_v5, %v169_v6 }
 0x174   :  { %1796 = vmatpush1.bf16.msra.mxu1 %v7483_v10  ;;  %v177_v10 = vld [vmem:[#allocation2 + $0x1f8] sm:$0xff] }
 0x175   :  { %1797 = vmatprep.subr.bf16.mxu1 %v7492_v11  ;;  %v7343_v11 = vcombine.low %v165_v5, %v169_v6  ;;  %v7352_v13 = vcombine.high %v173_v9, %v177_v10  ;;  %v269_v5 = vld [vmem:[#allocation2 + $0x4d8] sm:$0xff] }
 0x176   :  { %v273_v6 = vld [vmem:[#allocation2 + $0x4f8] sm:$0xff] }
 0x178   :  { %1798 = vmatpush1.bf16.msra.mxu1 %v7491_v15  ;;  %v185_v15 = vld [vmem:[#allocation2 + $0x238] sm:$0xff] }
 0x179   :  { %1799 = vmatprep.subr.bf16.mxu1 %v7500_v17  ;;  %v7351_v17 = vcombine.low %v173_v9, %v177_v10  ;;  %v7360_v18 = vcombine.high %v181_v14, %v185_v15  ;;  %v277_v9 = vld [vmem:[#allocation2 + $0x518] sm:$0xff] }
 0x17a   :  { %v281_v10 = vld [vmem:[#allocation2 + $0x538] sm:$0xff] }
 0x17c   :  { %1800 = vmatpush1.bf16.msra.mxu1 %v7499_v22  ;;  %v193_v22 = vld [vmem:[#allocation2 + $0x278] sm:$0xff] }
 0x17d   :  { %1801 = vmatprep.subr.bf16.mxu1 %v7508_v23  ;;  %v7359_v23 = vcombine.low %v181_v14, %v185_v15  ;;  %v7368_v24 = vcombine.high %v189_v21, %v193_v22 }
 0x180   :  { %1802 = vmatpush1.bf16.msra.mxu1 %v7507_v26  ;;  %v201_v26 = vld [vmem:[#allocation2 + $0x2b8] sm:$0xff] }
 0x181   :  { %1803 = vmatprep.subr.bf16.mxu1 %v7516_v27  ;;  %v7367_v27 = vcombine.low %v189_v21, %v193_v22  ;;  %v7376_v28 = vcombine.high %v197_v25, %v201_v26 }
 0x184   :  { %1804 = vmatpush1.bf16.msra.mxu1 %v7515_v30  ;;  %v209_v30 = vld [vmem:[#allocation2 + $0x2f8] sm:$0xff] }
 0x185   :  { %1805 = vmatprep.subr.bf16.mxu1 %v7524_v32  ;;  %v7384_v32 = vcombine.high %v205_v29, %v209_v30  ;;  %v7383_v33 = vcombine.low %v205_v29, %v209_v30  ;;  %v297_v29 = vld [vmem:[#allocation2 + $0x5b8] sm:$0xff] }
 0x186   :  { %v301_v30 = vld [vmem:[#allocation2 + $0x5d8] sm:$0xff] }
 0x188   :  { %1806 = vmatpush1.bf16.msra.mxu1 %v7523_v35  ;;  %v217_v35 = vld [vmem:[#allocation2 + $0x338] sm:$0xff] }
 0x189   :  { %1807 = vmatprep.subr.bf16.mxu1 %v7532_v36  ;;  %v7391_v36 = vcombine.low %v213_v34, %v217_v35  ;;  %v7392_v37 = vcombine.high %v213_v34, %v217_v35  ;;  %v309_v35 = vld [vmem:[#allocation2 + $0x618] sm:$0xff] }
 0x18c   :  { %1808 = vmatpush1.bf16.msra.mxu1 %v7531_v40 }
 0x18d   :  { %1809 = vmatprep.subr.bf16.mxu1 %v7540_v41  ;;  %v229_v41 = vld [vmem:[#allocation2 + $0x398] sm:$0xff] }
 0x190   :  { %1810 = vmatpush1.bf16.msra.mxu1 %v7539_v42  ;;  %v233_v42 = vld [vmem:[#allocation2 + $0x3b8] sm:$0xff] }
 0x193   :  { %1812 = vmatmul.mubr.bf16.vlgmr.msra.gmra.mrb[0].mxu1 %v9225_v19 }
 0x194   :  { %1940 = vmatprep.mubr.bf16.mxu1 %v9197_v20  ;;  %v7327_v20 = vcombine.low %v149_v62, %v153_v63  ;;  %v261_v63 = vld [vmem:[#allocation2 + $0x498] sm:$0xff] }
 0x1a0   :  { %v1727_v44 = vpop.f32.mrb[0].mxu0 }
 0x1a1   :  { %2218 = vrot.lane.b32.xlu0 %v1727_v44, %s9053_s25  ;;  %v9235_v45 = vpop.f32.mrb[1].mxu0  ;;  %8037 = vmatprep.mubr.msk.f32.mxu0 %vm2003_vm0, %v1727_v44  ;;  %v9238_v46 = vmul.f32 %v1727_v44, %v1727_v44 }
 0x1a2   :  { %v1731_v49 = vpop.f32.mrb[2].mxu0 }
 0x1a3   :  { %v8137_v55 = vpack.c.bf16 %v1731_v49, %v1727_v44  ;;  %2303 = vrot.lane.b32.xlu1 %v9238_v46, %s9053_s25  ;;  %v9248_v56 = vpop.f32.mrb[3].mxu0  ;;  %v1998_v61 = vmul.f32 %v1731_v49, %v1731_v49  ;;  %v2085_v31 = vsel %vm2003_vm0, %v9238_v46, 0.0  ;;  %v121_v44 = vld [vmem:[#allocation2 + $0x38] sm:$0xff] }
 0x1a4   :  { %v9252_v57 = vpack.c.bf16 %v9248_v56, %v9235_v45  ;;  %v7295_v46 = vcombine.low %v117_v43, %v121_v44  ;;  %v7296_v47 = vcombine.high %v117_v43, %v121_v44  ;;  %v7408_v44 = vcombine.high %v229_v41, %v233_v42 }
 0x1a5   :  { %2220 = vrot.lane.b32.xlu0 %v1731_v49, %s9053_s25  ;;  %8139 = vmatprep.subr.msk.bf16.mxu0 %vm9242_vm1, %v8137_v55  ;;  %v2088_v39 = vsel %vm2003_vm0, %v1998_v61, 0.0 }
 0x1a6   :  { %8142 = vmatpush3.bf16.xpose.msk.msra.mxu0 %vm9242_vm1, %v8137_v55  ;;  %1908 = vmatprep.subr.bf16.mxu1 %v7296_v47  ;;  %v141_v55 = vld [vmem:[#allocation2 + $0xd8] sm:$0xff] }
 0x1a7   :  { %2305 = vrot.lane.b32.xlu1 %v1998_v61, %s9053_s25  ;;  %1909 = vmatpush1.bf16.msra.mxu1 %v7295_v46  ;;  %v7320_v61 = vcombine.high %v141_v55, %v145_v60  ;;  %v7319_v0 = vcombine.low %v141_v55, %v145_v60  ;;  %v237_v46 = vld [vmem:[#allocation2 + $0x3d8] sm:$0xff] }
 0x1a8   :  { %v241_v47 = vld [vmem:[#allocation2 + $0x3f8] sm:$0xff] }
 0x1a9   :  { %v7415_v53 = vcombine.low %v237_v46, %v241_v47  ;;  %v253_v55 = vld [vmem:[#allocation2 + $0x458] sm:$0xff] }
 0x1ad   :  { %8038 = vmatmul.mubr.msk.f32.vlgmr.msra.gmra.mrb[8].mxu0 %vm2003_vm0, %v1731_v49  ;;  %v129_v49 = vld [vmem:[#allocation2 + $0x78] sm:$0xff] }
 0x1ae   :  { %v7304_v51 = vcombine.high %v125_v48, %v129_v49  ;;  %v7303_v52 = vcombine.low %v125_v48, %v129_v49  ;;  %v7407_v48 = vcombine.low %v229_v41, %v233_v42  ;;  %v7416_v49 = vcombine.high %v237_v46, %v241_v47 }
 0x1b0   :  { %1910 = vmatprep.subr.bf16.mxu1 %v7304_v51  ;;  %v245_v51 = vld [vmem:[#allocation2 + $0x418] sm:$0xff] }
 0x1b1   :  { %1911 = vmatpush1.bf16.msra.mxu1 %v7303_v52  ;;  %v249_v52 = vld [vmem:[#allocation2 + $0x438] sm:$0xff] }
 0x1b2   :  { %1912 = vmatprep.subr.bf16.mxu1 %v7312_v59  ;;  %v7424_v54 = vcombine.high %v245_v51, %v249_v52  ;;  %v7423_v59 = vcombine.low %v245_v51, %v249_v52 }
 0x1b5   :  { %1913 = vmatpush1.bf16.msra.mxu1 %v7311_v58  ;;  %v257_v58 = vld [vmem:[#allocation2 + $0x478] sm:$0xff] }
 0x1b6   :  { %1914 = vmatprep.subr.bf16.mxu1 %v7320_v61  ;;  %v7432_v61 = vcombine.high %v253_v55, %v257_v58  ;;  %v7431_v2 = vcombine.low %v253_v55, %v257_v58 }
 0x1b9   :  { %1915 = vmatpush1.bf16.msra.mxu1 %v7319_v0  ;;  %v265_v0 = vld [vmem:[#allocation2 + $0x4b8] sm:$0xff] }
 0x1ba   :  { %1916 = vmatprep.subr.bf16.mxu1 %v7328_v1 }
 0x1bd   :  { %1917 = vmatpush1.bf16.msra.mxu1 %v7327_v20 }
 0x1be   :  { %1918 = vmatprep.subr.bf16.mxu1 %v7336_v4  ;;  %v7440_v4 = vcombine.high %v261_v63, %v265_v0 }
 0x1c1   :  { %1919 = vmatpush1.bf16.msra.mxu1 %v7335_v7 }
 0x1c2   :  { %1920 = vmatprep.subr.bf16.mxu1 %v7344_v8  ;;  %v7439_v8 = vcombine.low %v261_v63, %v265_v0  ;;  %v357_v63 = vld [vmem:[#allocation2 + $0x798] sm:$0xff] }
 0x1c3   :  { %v361_v0 = vld [vmem:[#allocation2 + $0x7b8] sm:$0xff] }
 0x1c4   :  { %2086 = vadd.xlane.f32.xlu0 %v2085_v31  ;;  %v7375_v31 = vcombine.low %v197_v25, %v201_v26  ;;  %v289_v25 = vld [vmem:[#allocation2 + $0x578] sm:$0xff] }
 0x1c5   :  { %1921 = vmatpush1.bf16.msra.mxu1 %v7343_v11  ;;  %v7447_v11 = vcombine.low %v269_v5, %v273_v6 }
 0x1c6   :  { %1922 = vmatprep.subr.bf16.mxu1 %v7352_v13  ;;  %v7456_v13 = vcombine.high %v277_v9, %v281_v10 }
 0x1c9   :  { %1923 = vmatpush1.bf16.msra.mxu1 %v7351_v17 }
 0x1ca   :  { %1924 = vmatprep.subr.bf16.mxu1 %v7360_v18  ;;  %v7455_v18 = vcombine.low %v277_v9, %v281_v10 }
 0x1cb   :  { %2089 = vadd.xlane.f32.xlu1 %v2088_v39  ;;  %v225_v39 = vld [vmem:[#allocation2 + $0x378] sm:$0xff] }
 0x1cc   :  { %v7400_v40 = vcombine.high %v221_v38, %v225_v39  ;;  %v7399_v43 = vcombine.low %v221_v38, %v225_v39  ;;  %v317_v39 = vld [vmem:[#allocation2 + $0x658] sm:$0xff] }
 0x1cd   :  { %1925 = vmatpush1.bf16.msra.mxu1 %v7359_v23 }
 0x1ce   :  { %1926 = vmatprep.subr.bf16.mxu1 %v7368_v24  ;;  %v285_v24 = vld [vmem:[#allocation2 + $0x558] sm:$0xff] }
 0x1cf   :  { %v7463_v26 = vcombine.low %v285_v24, %v289_v25 }
 0x1d1   :  { %1927 = vmatpush1.bf16.msra.mxu1 %v7367_v27  ;;  %v7464_v27 = vcombine.high %v285_v24, %v289_v25 }
 0x1d2   :  { %1928 = vmatprep.subr.bf16.mxu1 %v7376_v28  ;;  %v293_v28 = vld [vmem:[#allocation2 + $0x598] sm:$0xff] }
 0x1d5   :  { %1929 = vmatpush1.bf16.msra.mxu1 %v7375_v31  ;;  %v7471_v31 = vcombine.low %v293_v28, %v297_v29 }
 0x1d6   :  { %1930 = vmatprep.subr.bf16.mxu1 %v7384_v32  ;;  %v7472_v32 = vcombine.high %v293_v28, %v297_v29 }
 0x1d9   :  { %1931 = vmatpush1.bf16.msra.mxu1 %v7383_v33  ;;  %v305_v33 = vld [vmem:[#allocation2 + $0x5f8] sm:$0xff] }
 0x1da   :  { %1932 = vmatprep.subr.bf16.mxu1 %v7392_v37  ;;  %v7480_v34 = vcombine.high %v301_v30, %v305_v33  ;;  %v7479_v37 = vcombine.low %v301_v30, %v305_v33 }
 0x1dd   :  { %1933 = vmatpush1.bf16.msra.mxu1 %v7391_v36  ;;  %v313_v36 = vld [vmem:[#allocation2 + $0x638] sm:$0xff] }
 0x1de   :  { %1934 = vmatprep.subr.bf16.mxu1 %v7400_v40  ;;  %v7488_v38 = vcombine.high %v309_v35, %v313_v36  ;;  %v321_v40 = vld [vmem:[#allocation2 + $0x678] sm:$0xff]  ;;  %v7487_v41 = vcombine.low %v309_v35, %v313_v36  ;;  %v9293_v36 = vld [vmem:[%s9718_s12] sm:$0xff] }
 0x1df   :  { %v7496_v42 = vcombine.high %v317_v39, %v321_v40  ;;  %v7495_v46 = vcombine.low %v317_v39, %v321_v40 }
 0x1e1   :  { %1935 = vmatpush1.bf16.msra.mxu1 %v7399_v43  ;;  %v325_v43 = vld [vmem:[#allocation2 + $0x698] sm:$0xff] }
 0x1e2   :  { %1936 = vmatprep.subr.bf16.mxu1 %v7408_v44  ;;  %v329_v44 = vld [vmem:[#allocation2 + $0x6b8] sm:$0xff] }
 0x1e3   :  { %v7504_v47 = vcombine.high %v325_v43, %v329_v44  ;;  %v7503_v51 = vcombine.low %v325_v43, %v329_v44 }
 0x1e5   :  { %1937 = vmatpush1.bf16.msra.mxu1 %v7407_v48  ;;  %v333_v48 = vld [vmem:[#allocation2 + $0x6d8] sm:$0xff] }
 0x1e6   :  { %1938 = vmatprep.subr.bf16.mxu1 %v7416_v49  ;;  %v337_v49 = vld [vmem:[#allocation2 + $0x6f8] sm:$0xff] }
 0x1e7   :  { %v7512_v52 = vcombine.high %v333_v48, %v337_v49  ;;  %v7511_v55 = vcombine.low %v333_v48, %v337_v49 }
 0x1e9   :  { %1939 = vmatpush1.bf16.msra.mxu1 %v7415_v53  ;;  %v341_v53 = vld [vmem:[#allocation2 + $0x718] sm:$0xff] }
 0x1ea   :  { %1951 = vmatprep.subr.bf16.mxu1 %v7424_v54  ;;  %v345_v54 = vld [vmem:[#allocation2 + $0x738] sm:$0xff] }
 0x1eb   :  { %v7520_v58 = vcombine.high %v341_v53, %v345_v54 }
 0x1ec   :  { %1941 = vmatmul.mubr.bf16.vlgmr.msra.gmra.mrb[4].mxu1 %v9213_v12 }
 0x1ed   :  { %1952 = vmatpush1.bf16.msra.mxu1 %v7423_v59  ;;  %1983 = vmatprep.mubr.bf16.mxu1 %v9215_v16  ;;  %v7448_v16 = vcombine.high %v269_v5, %v273_v6  ;;  %v349_v59 = vld [vmem:[#allocation2 + $0x758] sm:$0xff] }
 0x1ee   :  { %1953 = vmatprep.subr.bf16.mxu1 %v7432_v61  ;;  %v7519_v61 = vcombine.low %v341_v53, %v345_v54 }
 0x1f1   :  { %1954 = vmatpush1.bf16.msra.mxu1 %v7431_v2  ;;  %v7536_v2 = vcombine.high %v357_v63, %v361_v0 }
 0x1f2   :  { %1955 = vmatprep.subr.bf16.mxu1 %v7440_v4  ;;  %v7535_v4 = vcombine.low %v357_v63, %v361_v0 }
 0x1f5   :  { %1956 = vmatpush1.bf16.msra.mxu1 %v7439_v8 }
 0x1f6   :  { %1957 = vmatprep.subr.bf16.mxu1 %v7448_v16 }
 0x1f9   :  { %1958 = vmatpush1.bf16.msra.mxu1 %v7447_v11 }
 0x1fa   :  { %1959 = vmatprep.subr.bf16.mxu1 %v7456_v13  ;;  %v2123_v13 = vlaneseq }
 0x1fd   :  { %1960 = vmatpush1.bf16.msra.mxu1 %v7455_v18 }
 0x1fe   :  { %1961 = vmatprep.subr.bf16.mxu1 %v7464_v27 }
 0x201   :  { %1962 = vmatpush1.bf16.msra.mxu1 %v7463_v26 }
 0x202   :  { %1963 = vmatprep.subr.bf16.mxu1 %v7472_v32 }
 0x205   :  { %1964 = vmatpush1.bf16.msra.mxu1 %v7471_v31 }
 0x206   :  { %1965 = vmatprep.subr.bf16.mxu1 %v7480_v34 }
 0x209   :  { %1966 = vmatpush1.bf16.msra.mxu1 %v7479_v37  ;;  %v9298_v37 = vld [vmem:[%s9718_s12 + $0x8] sm:$0xff] }
 0x20a   :  { %1967 = vmatprep.subr.bf16.mxu1 %v7488_v38 }
 0x20d   :  { %1968 = vmatpush1.bf16.msra.mxu1 %v7487_v41 }
 0x20e   :  { %1969 = vmatprep.subr.bf16.mxu1 %v7496_v42 }
 0x211   :  { %1970 = vmatpush1.bf16.msra.mxu1 %v7495_v46 }
 0x212   :  { %1971 = vmatprep.subr.bf16.mxu1 %v7504_v47 }
 0x213   :  { %v2219_v60 = vpop.permute.xlu0 %2218 }
 0x214   :  { %8050 = vmatprep.mubr.msk.f32.mxu0 %vm2003_vm0, %v2219_v60 }
 0x215   :  { %v2304_v62 = vpop.permute.xlu1 %2303  ;;  %1972 = vmatpush1.bf16.msra.mxu1 %v7503_v51 }
 0x216   :  { %v2309_v1 = vsel %vm2003_vm0, %v2304_v62, 0.0  ;;  %1973 = vmatprep.subr.bf16.mxu1 %v7512_v52 }
 0x217   :  { %2310 = vadd.xlane.f32.xlu0 %v2309_v1  ;;  %v2221_v3 = vpop.permute.xlu0 %2220 }
 0x218   :  { %v8143_v20 = vpack.c.bf16 %v2221_v3, %v2219_v60  ;;  %v353_v60 = vld [vmem:[#allocation2 + $0x778] sm:$0xff] }
 0x219   :  { %v2306_v7 = vpop.permute.xlu1 %2305  ;;  %1974 = vmatpush1.bf16.msra.mxu1 %v7511_v55  ;;  %v7528_v62 = vcombine.high %v349_v59, %v353_v60  ;;  %v7527_v1 = vcombine.low %v349_v59, %v353_v60 }
 0x21a   :  { %8145 = vmatprep.subr.msk.bf16.mxu0 %vm9242_vm1, %v8143_v20  ;;  %v2312_v12 = vsel %vm2003_vm0, %v2306_v7, 0.0  ;;  %1975 = vmatprep.subr.bf16.mxu1 %v7520_v58 }
 0x21b   :  { %8148 = vmatpush3.bf16.xpose.msk.msra.mxu0 %vm9242_vm1, %v8143_v20  ;;  %2313 = vadd.xlane.f32.xlu0 %v2312_v12  ;;  %v369_v20 = vld [vmem:[#allocation2 + $0x7f8] sm:$0xff]  ;;  %v9054_v12 = vmov 0.0  }
 0x21d   :  { %1976 = vmatpush1.bf16.msra.mxu1 %v7519_v61 }
 0x21e   :  { %1977 = vmatprep.subr.bf16.mxu1 %v7528_v62 }
 0x220   :  { %v1899_v14 = vpop.f32.mrb[4].mxu0 }
 0x221   :  { %v1901_v15 = vpop.f32.mrb[5].mxu0  ;;  %1978 = vmatpush1.bf16.msra.mxu1 %v7527_v1 }
 0x222   :  { %8051 = vmatmul.mubr.msk.f32.vlgmr.msra.gmra.mrb[10].mxu0 %vm2003_vm0, %v2221_v3  ;;  %v1903_v17 = vpop.f32.mrb[6].mxu0  ;;  %v365_v3 = vld [vmem:[#allocation2 + $0x7d8] sm:$0xff]  ;;  %1979 = vmatprep.subr.bf16.mxu1 %v7536_v2 }
 0x223   :  { %v9276_v21 = vpack.c.bf16 %v1903_v17, %v1899_v14  ;;  %v1905_v22 = vpop.f32.mrb[7].mxu0  ;;  %v7544_v5 = vcombine.high %v365_v3, %v369_v20  ;;  %v7543_v6 = vcombine.low %v365_v3, %v369_v20  ;;  %v9284_v14 = vshrl.u32 %v2123_v13, 7 }
 0x224   :  { %v9278_v23 = vpack.c.bf16 %v1905_v22, %v1901_v15 }
 0x225   :  { %1980 = vmatpush1.bf16.msra.mxu1 %v7535_v4  ;;  %v9287_v15 = vsub.s32 0, %v9284_v14 }
 0x226   :  { %1981 = vmatprep.subr.bf16.mxu1 %v7544_v5 }
 0x229   :  { %1982 = vmatpush1.bf16.msra.mxu1 %v7543_v6 }
 0x22a   :  { %8040 = vmatprep.subr.bf16.mxu1 %v9054_v12 }
 0x22c   :  { %1984 = vmatmul.mubr.bf16.vlgmr.msra.gmra.mrb[4].mxu1 %v9225_v19 }
 0x22d   :  { %8041 = vmatpush3.bf16.msra.mxu1 %v9276_v21  ;;  %8042 = vmatprep.mubr.msk.bf16.mxu1 %vm9055_vm3, %v9054_v12 }
 0x22e   :  { %8053 = vmatprep.subr.bf16.mxu1 %v9054_v12 }
 0x251   :  { %v2087_v7 = vpop.xlane.xlu0 %2086 }
 0x252   :  { %2091 = vxpose.xlu1.b32.start [1/2] (short) (narrow) %v2087_v7, 8 }
 0x258   :  { %v2090_v8 = vpop.xlane.xlu1 %2089 }
 0x259   :  { %2092 = vxpose.xlu1.b32.end [2/2] (short) (narrow) %v2090_v8, 8 }
 0x280   :  { %v8039_v16 = vpop.f32.mrb[8].mxu0 }
 0x281   :  { %v2076_v9 = vpop.f32.mrb[9].mxu0  ;;  %v2130_v18 = vmul.f32 2.0, %v8039_v16  ;;  %v9319_v16 = vmul.f32 %v9248_v56, %v9248_v56 }
 0x282   :  { %v2129_v22 = vmul.f32 2.0, %v2076_v9 }
 0x283   :  { %v2868_v9 = vsel %vm2003_vm0, %v9319_v16, 0.0 }
 0x2a4   :  { %v2311_v10 = vpop.xlane.xlu0 %2310 }
 0x2a5   :  { %2315 = vxpose.xlu0.b32.start [1/2] (short) (narrow) %v2311_v10, 8 }
 0x2a8   :  { %v2314_v11 = vpop.xlane.xlu0 %2313 }
 0x2a9   :  { %2316 = vxpose.xlu0.b32.end [2/2] (short) (narrow) %v2314_v11, 8 }
 0x2d5   :  { %v2107_v17 = vpop.trf.xlu1 }
 0x2d6   :  { %v2126_v19 = vrot.slane %v2107_v17, %v9287_v15 }
 0x2d8   :  { %v2127_v24 = vadd.f32 %v2126_v19, %v2087_v7  ;;  %v2128_v25 = vadd.f32 %v2126_v19, %v2090_v8  ;;  %v9313_v7 = vmul.f32 %v9235_v45, %v9235_v45 }
 0x2da   :  { %v2131_v26 = vsub.f32 %v2127_v24, %v2129_v22  ;;  %v2132_v27 = vsub.f32 %v2128_v25, %v2130_v18  ;;  %v2865_v8 = vsel %vm2003_vm0, %v9313_v7, 0.0 }
 0x2dc   :  { %v2133_v28 = vmax.f32 %v2131_v26, 0.0  ;;  %v2134_v29 = vmax.f32 %v2132_v27, 0.0 }
 0x2de   :  { %v2135_v30 = vsub.f32 0.0, %v2133_v28  ;;  %v2136_v31 = vsub.f32 0.0, %v2134_v29 }
 0x2e0   :  { %v2137_v32 = vmul.f32 0.125, %v2135_v30  ;;  %v2138_v33 = vmul.f32 0.125, %v2136_v31 }
 0x2e2   :  { %v2139_v34 = vmul.f32 1.442695, %v2137_v32  ;;  %v2141_v35 = vmul.f32 1.442695, %v2138_v33 }
 0x2e4   :  { %8877 = vpow2.f32 %v2139_v34 }
 0x2e5   :  { %8879 = vpow2.f32 %v2141_v35 }
 0x2ee   :  { %v8878_v38 = vpop.eup %8877 }
 0x2ef   :  { %v8880_v39 = vpop.eup %8879  ;;  %v2143_v40 = vmul.f32 %v8878_v38, %v9293_v36 }
 0x2f0   :  { %v2144_v41 = vmul.f32 %v8880_v39, %v9298_v37 }
 0x2f1   :  { %v2146_v42 = vsel %vm2145_vm2, %v2143_v40, 0.0 }
 0x2f2   :  { %v2149_v43 = vsel %vm2145_vm2, %v2144_v41, 0.0  ;;  %2147 = vadd.xlane.f32.xlu0 %v2146_v42 }
 0x2f3   :  { %2150 = vadd.xlane.f32.xlu1 %v2149_v43 }
 0x2f5   :  { %v8052_v44 = vpop.f32.mrb[10].mxu0 }
 0x2f6   :  { %v2292_v46 = vpop.f32.mrb[11].mxu0  ;;  %v2354_v49 = vmul.f32 2.0, %v8052_v44 }
 0x2f7   :  { %v2353_v51 = vmul.f32 2.0, %v2292_v46 }
 0x325   :  { %v2331_v47 = vpop.trf.xlu0 }
 0x326   :  { %v2350_v48 = vrot.slane %v2331_v47, %v9287_v15 }
 0x328   :  { %v2351_v52 = vadd.f32 %v2350_v48, %v2311_v10  ;;  %v2352_v53 = vadd.f32 %v2350_v48, %v2314_v11  ;;  %v9325_v10 = vpop.f32.mrb[0].mxu1  ;;  %v8301_v48 = vld [vmem:[#allocation4 + $0x80] ss:$16 sps:$4 sm:$0xff]  }
 0x329   :  { %v9327_v11 = vpop.f32.mrb[1].mxu1 }
 0x32a   :  { %v2355_v54 = vsub.f32 %v2351_v52, %v2353_v51  ;;  %v2356_v55 = vsub.f32 %v2352_v53, %v2354_v49  ;;  %v9329_v13 = vpop.f32.mrb[2].mxu1  ;;  %v8303_v49 = vld [vmem:[#allocation4 + $0x84] ss:$16 sps:$4 sm:$0xff]   ;;  %v8304_v51 = vld [vmem:[#allocation4 + $0x88] ss:$16 sps:$4 sm:$0xff]  }
 0x32b   :  { %v9333_v17 = vpack.c.bf16 %v9329_v13, %v9325_v10  ;;  %v9335_v19 = vpop.f32.mrb[3].mxu1  ;;  %v8306_v52 = vld [vmem:[#allocation4 + $0x8c] ss:$16 sps:$4 sm:$0xff]   ;;  %v8309_v53 = vld [vmem:[#allocation4 + $0xa4] ss:$16 sps:$4 sm:$0xff]   ;;  %2528 = vmatprep.subr.bf16.mxu0 %v8303_v49 }
 0x32c   :  { %v2357_v58 = vmax.f32 %v2355_v54, 0.0  ;;  %v2358_v59 = vmax.f32 %v2356_v55, 0.0  ;;  %v9339_v18 = vpack.c.bf16 %v9335_v19, %v9327_v11  ;;  %v1985_v34 = vpop.f32.mrb[4].mxu1  ;;  %v8312_v54 = vld [vmem:[#allocation4 + $0xac] ss:$16 sps:$4 sm:$0xff]   ;;  %2529 = vmatpush1.bf16.msra.mxu0 %v8301_v48 }
 0x32d   :  { %v1987_v35 = vpop.f32.mrb[5].mxu1  ;;  %v8307_v55 = vld [vmem:[#allocation4 + $0xa0] ss:$16 sps:$4 sm:$0xff]   ;;  %2530 = vmatprep.subr.bf16.mxu0 %v8309_v53  ;;  %v8346_v48 = vld [vmem:[#allocation4 + $0x68] ss:$16 sps:$4 sm:$0xff]  }
 0x32e   :  { %v2359_v60 = vsub.f32 0.0, %v2357_v58  ;;  %v2360_v61 = vsub.f32 0.0, %v2358_v59  ;;  %v1989_v39 = vpop.f32.mrb[6].mxu1  ;;  %v8310_v58 = vld [vmem:[#allocation4 + $0xa8] ss:$16 sps:$4 sm:$0xff]  }
 0x32f   :  { %v9350_v42 = vpack.c.bf16 %v1989_v39, %v1985_v34  ;;  %v1991_v43 = vpop.f32.mrb[7].mxu1  ;;  %v8315_v59 = vld [vmem:[#allocation4 + $0xc4] ss:$16 sps:$4 sm:$0xff]   ;;  %v8331_v34 = vld [vmem:[#allocation4 + $0x20] ss:$16 sps:$4 sm:$0xff]  }
 0x330   :  { %v2361_v62 = vmul.f32 0.125, %v2359_v60  ;;  %v2362_v63 = vmul.f32 0.125, %v2360_v61  ;;  %v9352_v46 = vpack.c.bf16 %v1991_v43, %v1987_v35  ;;  %v8318_v60 = vld [vmem:[#allocation4 + $0xcc] ss:$16 sps:$4 sm:$0xff]   ;;  %2531 = vmatpush1.bf16.msra.mxu0 %v8307_v55  ;;  %v8313_v61 = vld [vmem:[#allocation4 + $0xc0] ss:$16 sps:$4 sm:$0xff]  }
 0x331   :  { %2532 = vmatprep.subr.bf16.mxu0 %v8315_v59  ;;  %v8334_v35 = vld [vmem:[#allocation4 + $0x28] ss:$16 sps:$4 sm:$0xff]   ;;  %v8342_v39 = vld [vmem:[#allocation4 + $0x4c] ss:$16 sps:$4 sm:$0xff]   ;;  %v8345_v43 = vld [vmem:[#allocation4 + $0x64] ss:$16 sps:$4 sm:$0xff]  }
 0x332   :  { %v2363_v0 = vmul.f32 1.442695, %v2361_v62  ;;  %v2365_v1 = vmul.f32 1.442695, %v2362_v63  ;;  %v8316_v62 = vld [vmem:[#allocation4 + $0xc8] ss:$16 sps:$4 sm:$0xff]  }
 0x333   :  { %v8319_v63 = vld [vmem:[#allocation4 + $0xe0] ss:$16 sps:$4 sm:$0xff]  }
 0x334   :  { %8881 = vpow2.f32 %v2363_v0  ;;  %2533 = vmatpush1.bf16.msra.mxu0 %v8313_v61  ;;  %v8321_v0 = vld [vmem:[#allocation4 + $0xe4] ss:$16 sps:$4 sm:$0xff]   ;;  %v8349_v49 = vld [vmem:[#allocation4 + $0x100] ss:$16 sps:$4 sm:$0xff]  }
 0x335   :  { %8883 = vpow2.f32 %v2365_v1  ;;  %v8322_v1 = vld [vmem:[#allocation4 + $0xe8] ss:$16 sps:$4 sm:$0xff]   ;;  %2534 = vmatprep.subr.bf16.mxu0 %v8321_v0 }
 0x338   :  { %2535 = vmatpush1.bf16.msra.mxu0 %v8319_v63 }
 0x33e   :  { %v8882_v2 = vpop.eup %8881 }
 0x33f   :  { %v8884_v3 = vpop.eup %8883  ;;  %v2367_v20 = vmul.f32 %v8882_v2, %v9293_v36  ;;  %v8324_v2 = vld [vmem:[#allocation4 + $0xec] ss:$16 sps:$4 sm:$0xff]  }
 0x340   :  { %v2368_v4 = vmul.f32 %v8884_v3, %v9298_v37  ;;  %v8327_v3 = vld [vmem:[#allocation4 + $0x4] ss:$16 sps:$4 sm:$0xff]  }
 0x341   :  { %v2369_v5 = vsel %vm2145_vm2, %v2367_v20, 0.0  ;;  %2697 = vmatprep.subr.bf16.mxu0 %v8327_v3 }
 0x342   :  { %2370 = vadd.xlane.f32.xlu1 %v2369_v5  ;;  %v2372_v6 = vsel %vm2145_vm2, %v2368_v4, 0.0 }
 0x343   :  { %2373 = vadd.xlane.f32.xlu0 %v2372_v6 }
 0x347   :  { %2866 = vadd.xlane.f32.xlu0 %v2865_v8 }
 0x34b   :  { %2869 = vadd.xlane.f32.xlu0 %v2868_v9 }
 0x353   :  { %2381 = vrot.lane.b32.xlu1 %v9276_v21, %s9053_s25 }
 0x37f   :  { %v2148_v22 = vpop.xlane.xlu0 %2147 }
 0x380   :  { %v2151_v24 = vpop.xlane.xlu1 %2150  ;;  %8885 = vrcp.f32 %v2148_v22 }
 0x381   :  { %8887 = vrcp.f32 %v2151_v24 }
 0x38a   :  { %v8886_v21 = vpop.eup %8885 }
 0x38b   :  { %v8888_v25 = vpop.eup %8887  ;;  %v2154_v26 = vmul.f32 %v8886_v21, %v2143_v40 }
 0x38c   :  { %v2155_v27 = vmul.f32 %v8888_v25, %v2144_v41 }
 0x38e   :  { %v2156_v28 = vpack.c.bf16 %v2155_v27, %v2154_v26  ;;  %v8325_v26 = vld [vmem:[#allocation4] ss:$16 sps:$4 sm:$0xff]   ;;  %v8328_v27 = vld [vmem:[#allocation4 + $0x8] ss:$16 sps:$4 sm:$0xff]  }
 0x390   :  { %8043 = vmatmul.mubr.msk.bf16.vlgmr.msra.gmra.mrb[8].mxu1 %vm2145_vm2, %v2156_v28 }
 0x391   :  { %8055 = vmatprep.mubr.msk.bf16.mxu1 %vm9055_vm3, %v9054_v12 }
 0x3cf   :  { %v2371_v29 = vpop.xlane.xlu1 %2370 }
 0x3d0   :  { %8889 = vrcp.f32 %v2371_v29  ;;  %v2374_v30 = vpop.xlane.xlu0 %2373 }
 0x3d1   :  { %8891 = vrcp.f32 %v2374_v30  ;;  %v8333_v30 = vld [vmem:[#allocation4 + $0x24] ss:$16 sps:$4 sm:$0xff]  }
 0x3d3   :  { %v2382_v31 = vpop.permute.xlu1 %2381 }
 0x3d4   :  { %v9344_v32 = vpop.xlane.xlu0 %2866  ;;  %8054 = vmatpush3.bf16.msra.mxu1 %v2382_v31  ;;  %v8336_v31 = vld [vmem:[#allocation4 + $0x2c] ss:$16 sps:$4 sm:$0xff]  }
 0x3d5   :  { %2871 = vxpose.xlu0.b32.start [1/2] (short) (narrow) %v9344_v32, 8  ;;  %2571 = vmatprep.subr.bf16.mxu1 %v8306_v52 }
 0x3d8   :  { %v9347_v33 = vpop.xlane.xlu0 %2869 }
 0x3d9   :  { %2872 = vxpose.xlu0.b32.end [2/2] (short) (narrow) %v9347_v33, 8 }
 0x3da   :  { %v8890_v38 = vpop.eup %8889 }
 0x3db   :  { %v8892_v40 = vpop.eup %8891  ;;  %v2377_v41 = vmul.f32 %v8890_v38, %v2367_v20  ;;  %v9056_v20 = vmov 0   ;;  %v8339_v38 = vld [vmem:[#allocation4 + $0x44] ss:$16 sps:$4 sm:$0xff]  }
 0x3dc   :  { %v2378_v44 = vmul.f32 %v8892_v40, %v2368_v4  ;;  %2560 = vmatprep.mubr.bf16.mxu0 %v9056_v20  ;;  %v8330_v4 = vld [vmem:[#allocation4 + $0xc] ss:$16 sps:$4 sm:$0xff]   ;;  %v8337_v40 = vld [vmem:[#allocation4 + $0x40] ss:$16 sps:$4 sm:$0xff]  }
 0x3de   :  { %v2379_v47 = vpack.c.bf16 %v2378_v44, %v2377_v41  ;;  %v8340_v41 = vld [vmem:[#allocation4 + $0x48] ss:$16 sps:$4 sm:$0xff]   ;;  %v8348_v44 = vld [vmem:[#allocation4 + $0x6c] ss:$16 sps:$4 sm:$0xff]  }
 0x3e0   :  { %8056 = vmatmul.mubr.msk.bf16.vlgmr.msra.gmra.mrb[12].mxu1 %vm2145_vm2, %v2379_v47  ;;  %v8343_v47 = vld [vmem:[#allocation4 + $0x60] ss:$16 sps:$4 sm:$0xff]  }
 0x3e1   :  { %2572 = vmatpush1.bf16.msra.mxu1 %v8304_v51  ;;  %2603 = vmatprep.mubr.bf16.mxu1 %v9056_v20  ;;  %v8351_v51 = vld [vmem:[#allocation4 + $0x104] ss:$16 sps:$4 sm:$0xff]  }
 0x3e2   :  { %2573 = vmatprep.subr.bf16.mxu1 %v8312_v54 }
 0x3e5   :  { %2574 = vmatpush1.bf16.msra.mxu1 %v8310_v58 }
 0x3e6   :  { %2575 = vmatprep.subr.bf16.mxu1 %v8318_v60 }
 0x3e9   :  { %2576 = vmatpush1.bf16.msra.mxu1 %v8316_v62 }
 0x3ea   :  { %2577 = vmatprep.subr.bf16.mxu1 %v8324_v2 }
 0x3ed   :  { %2578 = vmatpush1.bf16.msra.mxu1 %v8322_v1 }
 0x3ee   :  { %2740 = vmatprep.subr.bf16.mxu1 %v8330_v4 }
 0x402   :  { %3176 = vrot.lane.b32.xlu0 %v9248_v56, %s9053_s25 }
 0x455   :  { %v2887_v52 = vpop.trf.xlu0 }
 0x456   :  { %v2906_v53 = vrot.slane %v2887_v52, %v9287_v15  ;;  %v8369_v52 = vld [vmem:[#allocation4 + $0x14c] ss:$16 sps:$4 sm:$0xff]  }
 0x458   :  { %v2908_v55 = vadd.f32 %v2906_v53, %v9347_v33  ;;  %v2907_v60 = vadd.f32 %v2906_v53, %v9344_v32  ;;  %v8367_v53 = vld [vmem:[#allocation4 + $0x148] ss:$16 sps:$4 sm:$0xff]  }
 0x463   :  { %v2194_v5 = vpop.f32.mrb[8].mxu1 }
 0x464   :  { %v8044_v6 = vpop.f32.mrb[9].mxu1 }
 0x465   :  { %v2197_v8 = vpop.f32.mrb[10].mxu1 }
 0x466   :  { %v2201_v9 = vpack.c.bf16 %v2197_v8, %v2194_v5  ;;  %v8045_v22 = vpop.f32.mrb[11].mxu1 }
 0x4b3   :  { %v2421_v24 = vpop.f32.mrb[12].mxu1 }
 0x4b4   :  { %v8057_v21 = vpop.f32.mrb[13].mxu1 }
 0x4b5   :  { %v2424_v25 = vpop.f32.mrb[14].mxu1  ;;  %v8352_v21 = vld [vmem:[#allocation4 + $0x120] ss:$16 sps:$4 sm:$0xff]  }
 0x4b6   :  { %v2428_v28 = vpack.c.bf16 %v2424_v25, %v2421_v24  ;;  %v8058_v29 = vpop.f32.mrb[15].mxu1  ;;  %v8354_v24 = vld [vmem:[#allocation4 + $0x124] ss:$16 sps:$4 sm:$0xff]  }
 0x4b7   :  { %v8357_v25 = vld [vmem:[#allocation4 + $0x144] ss:$16 sps:$4 sm:$0xff]  }
 0x4b8   :  { %7571 = vmatmul.mubr.msk.bf16.vlgmr.msra.gmra.mrb[12].mxu0 %vm2003_vm0, %v2428_v28  ;;  %7572 = vmatmul.mubr.msk.bf16.vlgmr.msra.gmra.mrb[16].mxu1 %vm2003_vm0, %v2428_v28  ;;  %v8358_v28 = vld [vmem:[#allocation4 + $0x160] ss:$16 sps:$4 sm:$0xff]  }
 0x4b9   :  { %2698 = vmatpush1.bf16.msra.mxu0 %v8325_v26  ;;  %2741 = vmatpush1.bf16.msra.mxu1 %v8328_v27  ;;  %v8355_v26 = vld [vmem:[#allocation4 + $0x140] ss:$16 sps:$4 sm:$0xff]   ;;  %v8360_v27 = vld [vmem:[#allocation4 + $0x164] ss:$16 sps:$4 sm:$0xff]  }
 0x4ba   :  { %2699 = vmatprep.subr.bf16.mxu0 %v8333_v30  ;;  %2742 = vmatprep.subr.bf16.mxu1 %v8336_v31  ;;  %v3177_v31 = vpop.permute.xlu0 %3176 }
 0x4bb   :  { %2729 = vmatprep.mubr.bf16.mxu0 %v9056_v20  ;;  %2772 = vmatprep.mubr.bf16.mxu1 %v9056_v20 }
 0x4bd   :  { %2700 = vmatpush1.bf16.msra.mxu0 %v8331_v34  ;;  %2743 = vmatpush1.bf16.msra.mxu1 %v8334_v35 }
 0x4be   :  { %2701 = vmatprep.subr.bf16.mxu0 %v8339_v38  ;;  %2744 = vmatprep.subr.bf16.mxu1 %v8342_v39 }
 0x4c1   :  { %2702 = vmatpush1.bf16.msra.mxu0 %v8337_v40  ;;  %2745 = vmatpush1.bf16.msra.mxu1 %v8340_v41 }
 0x4c2   :  { %2703 = vmatprep.subr.bf16.mxu0 %v8345_v43  ;;  %2746 = vmatprep.subr.bf16.mxu1 %v8348_v44 }
 0x4c5   :  { %2704 = vmatpush1.bf16.msra.mxu0 %v8343_v47  ;;  %2747 = vmatpush1.bf16.msra.mxu1 %v8346_v48  ;;  %v8361_v47 = vld [vmem:[#allocation4 + $0x108] ss:$16 sps:$4 sm:$0xff]   ;;  %v8363_v48 = vld [vmem:[#allocation4 + $0x10c] ss:$16 sps:$4 sm:$0xff]  }
 0x4c6   :  { %8151 = vmatprep.subr.msk.bf16.mxu0 %vm9242_vm1, %v9252_v57  ;;  %8066 = vmatprep.subr.bf16.mxu1 %v9054_v12 }
 0x4c8   :  { %7589 = vmatmul.mubr.msk.bf16.vlgmr.msra.gmra.mrb[12].mxu0 %vm2003_vm0, %v2201_v9  ;;  %7590 = vmatmul.mubr.msk.bf16.vlgmr.msra.gmra.mrb[16].mxu1 %vm2003_vm0, %v2201_v9 }
 0x4c9   :  { %8063 = vmatprep.mubr.msk.f32.mxu0 %vm2003_vm0, %v9235_v45  ;;  %8067 = vmatpush3.bf16.msra.mxu1 %v9278_v23 }
 0x4ca   :  { %8068 = vmatprep.mubr.msk.bf16.mxu1 %vm9055_vm3, %v9054_v12  ;;  %3123 = vmatprep.subr.bf16.mxu1 %v8363_v48  ;;  %v9427_v48 = vmul.f32 %v9325_v10, %v9325_v10 }
 0x4ce   :  { %8154 = vmatpush3.bf16.xpose.msk.msra.mxu0 %vm9242_vm1, %v9252_v57 }
 0x4cf   :  { %3080 = vmatprep.subr.bf16.mxu0 %v8351_v51  ;;  %v8364_v51 = vld [vmem:[#allocation4 + $0x128] ss:$16 sps:$4 sm:$0xff]  }
 0x4d5   :  { %8064 = vmatmul.mubr.msk.f32.vlgmr.msra.gmra.mrb[16].mxu0 %vm2003_vm0, %v9248_v56 }
 0x4d6   :  { %3112 = vmatprep.mubr.bf16.mxu0 %v9056_v20  ;;  %3081 = vmatpush1.bf16.msra.mxu0 %v8349_v49  ;;  %v8366_v49 = vld [vmem:[#allocation4 + $0x12c] ss:$16 sps:$4 sm:$0xff]  }
 0x4d7   :  { %3082 = vmatprep.subr.bf16.mxu0 %v8354_v24 }
 0x4da   :  { %3083 = vmatpush1.bf16.msra.mxu0 %v8352_v21 }
 0x4db   :  { %3084 = vmatprep.subr.bf16.mxu0 %v8357_v25 }
 0x4de   :  { %3085 = vmatpush1.bf16.msra.mxu0 %v8355_v26 }
 0x4df   :  { %3086 = vmatprep.subr.bf16.mxu0 %v8360_v27 }
 0x4e2   :  { %3087 = vmatpush1.bf16.msra.mxu0 %v8358_v28 }
 0x5a8   :  { %v8065_v54 = vpop.f32.mrb[16].mxu0 }
 0x5a9   :  { %v2910_v58 = vmul.f32 2.0, %v8065_v54  ;;  %v2856_v59 = vpop.f32.mrb[17].mxu0  ;;  %v8370_v54 = vld [vmem:[#allocation4 + $0x168] ss:$16 sps:$4 sm:$0xff]  }
 0x5aa   :  { %v2909_v57 = vmul.f32 2.0, %v2856_v59 }
 0x5ab   :  { %v2912_v61 = vsub.f32 %v2908_v55, %v2910_v58  ;;  %v8372_v55 = vld [vmem:[#allocation4 + $0x16c] ss:$16 sps:$4 sm:$0xff]  }
 0x5ac   :  { %v2911_v62 = vsub.f32 %v2907_v60, %v2909_v57  ;;  %v9402_v60 = vmul.f32 %v9329_v13, %v9329_v13 }
 0x5ad   :  { %v2914_v56 = vmax.f32 %v2912_v61, 0.0 }
 0x5ae   :  { %v2913_v63 = vmax.f32 %v2911_v62, 0.0  ;;  %v3663_v57 = vsel %vm2003_vm0, %v9402_v60, 0.0 }
 0x5af   :  { %v2916_v0 = vsub.f32 0.0, %v2914_v56 }
 0x5b0   :  { %v2915_v1 = vsub.f32 0.0, %v2913_v63 }
 0x5b1   :  { %v2918_v2 = vmul.f32 0.125, %v2916_v0 }
 0x5b2   :  { %v2917_v3 = vmul.f32 0.125, %v2915_v1  ;;  %v8375_v1 = vld [vmem:[#allocation4 + $0x184] ss:$16 sps:$4 sm:$0xff]  }
 0x5b3   :  { %v2921_v4 = vmul.f32 1.442695, %v2918_v2  ;;  %v8373_v2 = vld [vmem:[#allocation4 + $0x180] ss:$16 sps:$4 sm:$0xff]  }
 0x5b4   :  { %v2919_v5 = vmul.f32 1.442695, %v2917_v3  ;;  %v8378_v3 = vld [vmem:[#allocation4 + $0x1a4] ss:$16 sps:$4 sm:$0xff]  }
 0x5b5   :  { %8893 = vpow2.f32 %v2921_v4  ;;  %v8376_v4 = vld [vmem:[#allocation4 + $0x1a0] ss:$16 sps:$4 sm:$0xff]  }
 0x5b6   :  { %8895 = vpow2.f32 %v2919_v5  ;;  %v8381_v5 = vld [vmem:[#allocation4 + $0x1c4] ss:$16 sps:$4 sm:$0xff]  }
 0x5bf   :  { %v8894_v6 = vpop.eup %8893 }
 0x5c0   :  { %v8896_v8 = vpop.eup %8895  ;;  %v2924_v32 = vmul.f32 %v8894_v6, %v9298_v37  ;;  %v8379_v6 = vld [vmem:[#allocation4 + $0x1c0] ss:$16 sps:$4 sm:$0xff]  }
 0x5c1   :  { %v2923_v33 = vmul.f32 %v8896_v8, %v9293_v36  ;;  %v8384_v8 = vld [vmem:[#allocation4 + $0x1e4] ss:$16 sps:$4 sm:$0xff]  }
 0x5c2   :  { %v2928_v22 = vsel %vm2145_vm2, %v2924_v32, 0.0 }
 0x5c3   :  { %v2925_v9 = vsel %vm2145_vm2, %v2923_v33, 0.0 }
 0x5c4   :  { %2926 = vadd.xlane.f32.xlu1 %v2925_v9 }
 0x5c8   :  { %2929 = vadd.xlane.f32.xlu1 %v2928_v22 }
 0x5d9   :  { %3174 = vrot.lane.b32.xlu1 %v9235_v45, %s9053_s25 }
 0x5dd   :  { %3259 = vrot.lane.b32.xlu1 %v9313_v7, %s9053_s25 }
 0x5e1   :  { %3261 = vrot.lane.b32.xlu1 %v9319_v16, %s9053_s25 }
 0x651   :  { %v2927_v29 = vpop.xlane.xlu1 %2926 }
 0x652   :  { %8897 = vrcp.f32 %v2927_v29 }
 0x655   :  { %v2930_v30 = vpop.xlane.xlu1 %2929 }
 0x656   :  { %8899 = vrcp.f32 %v2930_v30 }
 0x659   :  { %v3175_v34 = vpop.permute.xlu1 %3174 }
 0x65a   :  { %v8155_v35 = vpack.c.bf16 %v3177_v31, %v3175_v34 }
 0x65c   :  { %8157 = vmatprep.subr.msk.bf16.mxu0 %vm9242_vm1, %v8155_v35  ;;  %v8898_v38 = vpop.eup %8897 }
 0x65d   :  { %v3260_v45 = vpop.permute.xlu1 %3259  ;;  %v2933_v40 = vmul.f32 %v8898_v38, %v2923_v33  ;;  %v8382_v33 = vld [vmem:[#allocation4 + $0x1e0] ss:$16 sps:$4 sm:$0xff]  }
 0x65e   :  { %v3265_v39 = vsel %vm2003_vm0, %v3260_v45, 0.0 }
 0x65f   :  { %3266 = vadd.xlane.f32.xlu1 %v3265_v39 }
 0x660   :  { %v8900_v7 = vpop.eup %8899 }
 0x661   :  { %v2934_v41 = vmul.f32 %v8900_v7, %v2924_v32  ;;  %v3262_v43 = vpop.permute.xlu1 %3261 }
 0x662   :  { %v3268_v16 = vsel %vm2003_vm0, %v3262_v43, 0.0 }
 0x663   :  { %3269 = vadd.xlane.f32.xlu0 %v3268_v16  ;;  %v2935_v44 = vpack.c.bf16 %v2934_v41, %v2933_v40 }
 0x665   :  { %8069 = vmatmul.mubr.msk.bf16.vlgmr.msra.gmra.mrb[20].mxu1 %vm2145_vm2, %v2935_v44 }
 0x666   :  { %3155 = vmatprep.mubr.bf16.mxu1 %v9056_v20  ;;  %3124 = vmatpush1.bf16.msra.mxu1 %v8361_v47 }
 0x667   :  { %3125 = vmatprep.subr.bf16.mxu1 %v8366_v49  ;;  %v3660_v49 = vsel %vm2003_vm0, %v9427_v48, 0.0 }
 0x66a   :  { %3126 = vmatpush1.bf16.msra.mxu1 %v8364_v51 }
 0x66b   :  { %3127 = vmatprep.subr.bf16.mxu1 %v8369_v52 }
 0x66e   :  { %3128 = vmatpush1.bf16.msra.mxu1 %v8367_v53 }
 0x66f   :  { %3129 = vmatprep.subr.bf16.mxu1 %v8372_v55 }
 0x672   :  { %3130 = vmatpush1.bf16.msra.mxu1 %v8370_v54 }
 0x673   :  { %8079 = vmatprep.subr.bf16.mxu1 %v9054_v12 }
 0x6ec   :  { %v3267_v58 = vpop.xlane.xlu1 %3266 }
 0x6ed   :  { %3271 = vxpose.xlu1.b32.start [1/2] (short) (narrow) %v3267_v58, 8 }
 0x6f0   :  { %v3270_v59 = vpop.xlane.xlu0 %3269 }
 0x6f1   :  { %3272 = vxpose.xlu1.b32.end [2/2] (short) (narrow) %v3270_v59, 8 }
 0x718   :  { %3664 = vadd.xlane.f32.xlu1 %v3663_v57 }
 0x738   :  { %v2973_v61 = vpop.f32.mrb[20].mxu1 }
 0x739   :  { %v8070_v62 = vpop.f32.mrb[21].mxu1 }
 0x73a   :  { %v2976_v56 = vpop.f32.mrb[22].mxu1  ;;  %v8385_v62 = vld [vmem:[#allocation4 + $0x188] ss:$16 sps:$4 sm:$0xff]  }
 0x73b   :  { %v2980_v63 = vpack.c.bf16 %v2976_v56, %v2973_v61  ;;  %v8071_v0 = vpop.f32.mrb[23].mxu1  ;;  %v8387_v56 = vld [vmem:[#allocation4 + $0x18c] ss:$16 sps:$4 sm:$0xff]  }
 0x73c   :  { %v8388_v0 = vld [vmem:[#allocation4 + $0x1a8] ss:$16 sps:$4 sm:$0xff]  }
 0x73d   :  { %7612 = vmatmul.mubr.msk.bf16.vlgmr.msra.gmra.mrb[12].mxu0 %vm2003_vm0, %v2980_v63  ;;  %7613 = vmatmul.mubr.msk.bf16.vlgmr.msra.gmra.mrb[16].mxu1 %vm2003_vm0, %v2980_v63  ;;  %v8390_v63 = vld [vmem:[#allocation4 + $0x1ac] ss:$16 sps:$4 sm:$0xff]  }
 0x73e   :  { %8160 = vmatpush3.bf16.xpose.msk.msra.mxu0 %vm9242_vm1, %v8155_v35  ;;  %8076 = vmatprep.mubr.msk.f32.mxu0 %vm2003_vm0, %v3175_v34 }
 0x73f   :  { %3484 = vmatprep.subr.bf16.mxu0 %v8375_v1  ;;  %8081 = vmatprep.mubr.msk.bf16.mxu1 %vm9055_vm3, %v9054_v12  ;;  %v8393_v1 = vld [vmem:[#allocation4 + $0x1cc] ss:$16 sps:$4 sm:$0xff]  }
 0x745   :  { %8077 = vmatmul.mubr.msk.f32.vlgmr.msra.gmra.mrb[18].mxu0 %vm2003_vm0, %v3177_v31 }
 0x746   :  { %3485 = vmatpush1.bf16.msra.mxu0 %v8373_v2  ;;  %3516 = vmatprep.mubr.bf16.mxu0 %v9056_v20  ;;  %v8391_v2 = vld [vmem:[#allocation4 + $0x1c8] ss:$16 sps:$4 sm:$0xff]  }
 0x747   :  { %3486 = vmatprep.subr.bf16.mxu0 %v8378_v3  ;;  %v8394_v3 = vld [vmem:[#allocation4 + $0x1e8] ss:$16 sps:$4 sm:$0xff]  }
 0x74a   :  { %3487 = vmatpush1.bf16.msra.mxu0 %v8376_v4  ;;  %v8396_v4 = vld [vmem:[#allocation4 + $0x1ec] ss:$16 sps:$4 sm:$0xff]  }
 0x74b   :  { %3488 = vmatprep.subr.bf16.mxu0 %v8381_v5 }
 0x74e   :  { %3489 = vmatpush1.bf16.msra.mxu0 %v8379_v6 }
 0x74f   :  { %3490 = vmatprep.subr.bf16.mxu0 %v8384_v8 }
 0x752   :  { %3491 = vmatpush1.bf16.msra.mxu0 %v8382_v33 }
 0x753   :  { %8163 = vmatprep.subr.msk.bf16.mxu0 %vm9242_vm1, %v9333_v17 }
 0x76d   :  { %v3287_v9 = vpop.trf.xlu1 }
 0x76e   :  { %v3306_v32 = vrot.slane %v3287_v9, %v9287_v15 }
 0x770   :  { %v3308_v24 = vadd.f32 %v3306_v32, %v3270_v59  ;;  %v3307_v26 = vadd.f32 %v3306_v32, %v3267_v58 }
 0x7a5   :  { %v3665_v61 = vpop.xlane.xlu1 %3664 }
 0x818   :  { %v8078_v22 = vpop.f32.mrb[18].mxu0 }
 0x819   :  { %v3310_v21 = vmul.f32 2.0, %v8078_v22  ;;  %v3248_v25 = vpop.f32.mrb[19].mxu0 }
 0x81a   :  { %v3309_v27 = vmul.f32 2.0, %v3248_v25 }
 0x81b   :  { %v3312_v28 = vsub.f32 %v3308_v24, %v3310_v21 }
 0x81c   :  { %v3311_v29 = vsub.f32 %v3307_v26, %v3309_v27 }
 0x81d   :  { %v3314_v30 = vmax.f32 %v3312_v28, 0.0 }
 0x81e   :  { %v3313_v31 = vmax.f32 %v3311_v29, 0.0 }
 0x81f   :  { %v3316_v34 = vsub.f32 0.0, %v3314_v30 }
 0x820   :  { %v3315_v35 = vsub.f32 0.0, %v3313_v31 }
 0x821   :  { %v3318_v45 = vmul.f32 0.125, %v3316_v34 }
 0x822   :  { %v3317_v38 = vmul.f32 0.125, %v3315_v35 }
 0x823   :  { %v3321_v39 = vmul.f32 1.442695, %v3318_v45 }
 0x824   :  { %v3319_v7 = vmul.f32 1.442695, %v3317_v38 }
 0x825   :  { %8901 = vpow2.f32 %v3321_v39 }
 0x826   :  { %8903 = vpow2.f32 %v3319_v7 }
 0x82f   :  { %v8902_v40 = vpop.eup %8901 }
 0x830   :  { %v8904_v41 = vpop.eup %8903  ;;  %v3324_v43 = vmul.f32 %v8902_v40, %v9298_v37 }
 0x831   :  { %v3323_v44 = vmul.f32 %v8904_v41, %v9293_v36 }
 0x832   :  { %v3328_v16 = vsel %vm2145_vm2, %v3324_v43, 0.0 }
 0x833   :  { %3329 = vadd.xlane.f32.xlu0 %v3328_v16  ;;  %v3325_v47 = vsel %vm2145_vm2, %v3323_v44, 0.0 }
 0x837   :  { %3326 = vadd.xlane.f32.xlu0 %v3325_v47  ;;  %v8399_v47 = vld [vmem:[#allocation4 + $0x204] ss:$16 sps:$4 sm:$0xff]  }
 0x84d   :  { %3337 = vrot.lane.b32.xlu0 %v9278_v23, %s9053_s25 }
 0x86c   :  { %3661 = vadd.xlane.f32.xlu0 %v3660_v49  ;;  %v8397_v49 = vld [vmem:[#allocation4 + $0x200] ss:$16 sps:$4 sm:$0xff]  }
 0x8c0   :  { %v3330_v51 = vpop.xlane.xlu0 %3329 }
 0x8c1   :  { %8905 = vrcp.f32 %v3330_v51  ;;  %v8402_v51 = vld [vmem:[#allocation4 + $0x224] ss:$16 sps:$4 sm:$0xff]  }
 0x8c4   :  { %v3327_v52 = vpop.xlane.xlu0 %3326 }
 0x8c5   :  { %8907 = vrcp.f32 %v3327_v52  ;;  %v8400_v52 = vld [vmem:[#allocation4 + $0x220] ss:$16 sps:$4 sm:$0xff]  }
 0x8c8   :  { %v3338_v53 = vpop.permute.xlu0 %3337 }
 0x8c9   :  { %8080 = vmatpush3.bf16.msra.mxu1 %v3338_v53  ;;  %v8403_v53 = vld [vmem:[#allocation4 + $0x240] ss:$16 sps:$4 sm:$0xff]  }
 0x8ca   :  { %3527 = vmatprep.subr.bf16.mxu1 %v8387_v56 }
 0x8cb   :  { %v8906_v54 = vpop.eup %8905 }
 0x8cc   :  { %v3334_v58 = vmul.f32 %v8906_v54, %v3324_v43  ;;  %v8406_v54 = vld [vmem:[#allocation4 + $0x260] ss:$16 sps:$4 sm:$0xff]  }
 0x8cf   :  { %v8908_v55 = vpop.eup %8907 }
 0x8d0   :  { %v3333_v59 = vmul.f32 %v8908_v55, %v3323_v44 }
 0x8d2   :  { %v3335_v57 = vpack.c.bf16 %v3334_v58, %v3333_v59 }
 0x8d4   :  { %8082 = vmatmul.mubr.msk.bf16.vlgmr.msra.gmra.mrb[24].mxu1 %vm2145_vm2, %v3335_v57 }
 0x8d5   :  { %3559 = vmatprep.mubr.bf16.mxu1 %v9056_v20  ;;  %3528 = vmatpush1.bf16.msra.mxu1 %v8385_v62 }
 0x8d6   :  { %3529 = vmatprep.subr.bf16.mxu1 %v8390_v63 }
 0x8d9   :  { %3530 = vmatpush1.bf16.msra.mxu1 %v8388_v0 }
 0x8da   :  { %3531 = vmatprep.subr.bf16.mxu1 %v8393_v1 }
 0x8dd   :  { %3532 = vmatpush1.bf16.msra.mxu1 %v8391_v2  ;;  %v8409_v2 = vld [vmem:[#allocation4 + $0x208] ss:$16 sps:$4 sm:$0xff]  }
 0x8de   :  { %3533 = vmatprep.subr.bf16.mxu1 %v8396_v4  ;;  %v8414_v4 = vld [vmem:[#allocation4 + $0x22c] ss:$16 sps:$4 sm:$0xff]  }
 0x8e1   :  { %3534 = vmatpush1.bf16.msra.mxu1 %v8394_v3  ;;  %v8411_v3 = vld [vmem:[#allocation4 + $0x20c] ss:$16 sps:$4 sm:$0xff]  }
 0x8e2   :  { %8092 = vmatprep.subr.bf16.mxu1 %v9054_v12 }
 0x8f9   :  { %v3662_v23 = vpop.xlane.xlu0 %3661 }
 0x8fa   :  { %3666 = vxpose.xlu0.b32.start [1/2] (short) (narrow) %v3662_v23, 8 }
 0x8fe   :  { %3667 = vxpose.xlu0.b32.end [2/2] (short) (narrow) %v3665_v61, 8 }
 0x927   :  { %4056 = vrot.lane.b32.xlu0 %v9402_v60, %s9053_s25 }
 0x97a   :  { %v3682_v60 = vpop.trf.xlu0 }
 0x97b   :  { %v3701_v32 = vrot.slane %v3682_v60, %v9287_v15 }
 0x97d   :  { %v3703_v24 = vadd.f32 %v3701_v32, %v3665_v61  ;;  %v3702_v25 = vadd.f32 %v3701_v32, %v3662_v23 }
 0x9a7   :  { %v3377_v5 = vpop.f32.mrb[24].mxu1 }
 0x9a8   :  { %v8083_v6 = vpop.f32.mrb[25].mxu1 }
 0x9a9   :  { %v3380_v8 = vpop.f32.mrb[26].mxu1  ;;  %v8417_v6 = vld [vmem:[#allocation4 + $0x24c] ss:$16 sps:$4 sm:$0xff]  }
 0x9aa   :  { %v3384_v33 = vpack.c.bf16 %v3380_v8, %v3377_v5  ;;  %v8084_v9 = vpop.f32.mrb[27].mxu1  ;;  %v8412_v5 = vld [vmem:[#allocation4 + $0x228] ss:$16 sps:$4 sm:$0xff]  }
 0x9ab   :  { %v8415_v8 = vld [vmem:[#allocation4 + $0x248] ss:$16 sps:$4 sm:$0xff]   ;;  %v8420_v9 = vld [vmem:[#allocation4 + $0x26c] ss:$16 sps:$4 sm:$0xff]  }
 0x9ac   :  { %7635 = vmatmul.mubr.msk.bf16.vlgmr.msra.gmra.mrb[12].mxu0 %vm2003_vm0, %v3384_v33  ;;  %7636 = vmatmul.mubr.msk.bf16.vlgmr.msra.gmra.mrb[16].mxu1 %vm2003_vm0, %v3384_v33  ;;  %v8418_v33 = vld [vmem:[#allocation4 + $0x268] ss:$16 sps:$4 sm:$0xff]  }
 0x9ad   :  { %8166 = vmatpush3.bf16.xpose.msk.msra.mxu0 %vm9242_vm1, %v9333_v17  ;;  %8093 = vmatpush3.bf16.msra.mxu1 %v9350_v42 }
 0x9ae   :  { %8089 = vmatprep.mubr.msk.f32.mxu0 %vm2003_vm0, %v9325_v10  ;;  %8094 = vmatprep.mubr.msk.bf16.mxu1 %vm9055_vm3, %v9054_v12 }
 0x9af   :  { %3875 = vmatprep.subr.bf16.mxu0 %v8399_v47  ;;  %3918 = vmatprep.subr.bf16.mxu1 %v8411_v3 }
 0x9b4   :  { %8090 = vmatmul.mubr.msk.f32.vlgmr.msra.gmra.mrb[20].mxu0 %vm2003_vm0, %v9329_v13 }
 0x9b5   :  { %3907 = vmatprep.mubr.bf16.mxu0 %v9056_v20  ;;  %3876 = vmatpush1.bf16.msra.mxu0 %v8397_v49 }
 0x9b6   :  { %3877 = vmatprep.subr.bf16.mxu0 %v8402_v51 }
 0x9b9   :  { %3878 = vmatpush1.bf16.msra.mxu0 %v8400_v52 }
 0xa87   :  { %v8091_v22 = vpop.f32.mrb[20].mxu0 }
 0xa88   :  { %v3705_v21 = vmul.f32 2.0, %v8091_v22  ;;  %v3651_v17 = vpop.f32.mrb[21].mxu0  ;;  %v9469_v22 = vmul.f32 %v9335_v19, %v9335_v19 }
 0xa89   :  { %v3704_v26 = vmul.f32 2.0, %v3651_v17 }
 0xa8a   :  { %v3707_v27 = vsub.f32 %v3703_v24, %v3705_v21  ;;  %v4458_v24 = vsel %vm2003_vm0, %v9469_v22, 0.0 }
 0xa8b   :  { %v3706_v28 = vsub.f32 %v3702_v25, %v3704_v26 }
 0xa8c   :  { %v3709_v29 = vmax.f32 %v3707_v27, 0.0 }
 0xa8d   :  { %v3708_v30 = vmax.f32 %v3706_v28, 0.0  ;;  %v8423_v28 = vld [vmem:[#allocation4 + $0x284] ss:$16 sps:$4 sm:$0xff]  }
 0xa8e   :  { %v3711_v31 = vsub.f32 0.0, %v3709_v29  ;;  %v8421_v29 = vld [vmem:[#allocation4 + $0x280] ss:$16 sps:$4 sm:$0xff]  }
 0xa8f   :  { %v3710_v34 = vsub.f32 0.0, %v3708_v30  ;;  %v8426_v30 = vld [vmem:[#allocation4 + $0x2a4] ss:$16 sps:$4 sm:$0xff]  }
 0xa90   :  { %v3713_v35 = vmul.f32 0.125, %v3711_v31  ;;  %v8424_v31 = vld [vmem:[#allocation4 + $0x2a0] ss:$16 sps:$4 sm:$0xff]  }
 0xa91   :  { %v3712_v45 = vmul.f32 0.125, %v3710_v34  ;;  %v8429_v34 = vld [vmem:[#allocation4 + $0x2c4] ss:$16 sps:$4 sm:$0xff]  }
 0xa92   :  { %v3716_v38 = vmul.f32 1.442695, %v3713_v35  ;;  %v8427_v35 = vld [vmem:[#allocation4 + $0x2c0] ss:$16 sps:$4 sm:$0xff]  }
 0xa93   :  { %v3714_v39 = vmul.f32 1.442695, %v3712_v45  ;;  %v8432_v45 = vld [vmem:[#allocation4 + $0x2e4] ss:$16 sps:$4 sm:$0xff]  }
 0xa94   :  { %8909 = vpow2.f32 %v3716_v38  ;;  %v8430_v38 = vld [vmem:[#allocation4 + $0x2e0] ss:$16 sps:$4 sm:$0xff]  }
 0xa95   :  { %8911 = vpow2.f32 %v3714_v39 }
 0xa9e   :  { %v8910_v7 = vpop.eup %8909 }
 0xa9f   :  { %v8912_v40 = vpop.eup %8911  ;;  %v3719_v16 = vmul.f32 %v8910_v7, %v9298_v37  ;;  %v8408_v37 = vld [vmem:[#allocation4 + $0x264] ss:$16 sps:$4 sm:$0xff]  }
 0xaa0   :  { %v3718_v41 = vmul.f32 %v8912_v40, %v9293_v36  ;;  %v8405_v36 = vld [vmem:[#allocation4 + $0x244] ss:$16 sps:$4 sm:$0xff]  }
 0xaa1   :  { %v3723_v44 = vsel %vm2145_vm2, %v3719_v16, 0.0  ;;  %3879 = vmatprep.subr.bf16.mxu0 %v8405_v36 }
 0xaa2   :  { %v3720_v43 = vsel %vm2145_vm2, %v3718_v41, 0.0  ;;  %3880 = vmatpush1.bf16.msra.mxu0 %v8403_v53 }
 0xaa3   :  { %3721 = vadd.xlane.f32.xlu1 %v3720_v43  ;;  %3881 = vmatprep.subr.bf16.mxu0 %v8408_v37 }
 0xaa6   :  { %3882 = vmatpush1.bf16.msra.mxu0 %v8406_v54 }
 0xaa7   :  { %3724 = vadd.xlane.f32.xlu1 %v3723_v44 }
 0xab8   :  { %3969 = vrot.lane.b32.xlu1 %v9325_v10, %s9053_s25 }
 0xabc   :  { %3971 = vrot.lane.b32.xlu1 %v9329_v13, %s9053_s25 }
 0xac0   :  { %4054 = vrot.lane.b32.xlu1 %v9427_v48, %s9053_s25  ;;  %v4057_v48 = vpop.permute.xlu0 %4056 }
 0xac1   :  { %v4063_v1 = vsel %vm2003_vm0, %v4057_v48, 0.0  ;;  %v9504_v48 = vmul.f32 %v9327_v11, %v9327_v11 }
 0xb30   :  { %v3722_v55 = vpop.xlane.xlu1 %3721 }
 0xb31   :  { %8913 = vrcp.f32 %v3722_v55 }
 0xb34   :  { %v3725_v58 = vpop.xlane.xlu1 %3724 }
 0xb35   :  { %8915 = vrcp.f32 %v3725_v58 }
 0xb38   :  { %v3970_v10 = vpop.permute.xlu1 %3969 }
 0xb3b   :  { %v8914_v57 = vpop.eup %8913 }
 0xb3c   :  { %v3972_v59 = vpop.permute.xlu1 %3971  ;;  %v3728_v13 = vmul.f32 %v8914_v57, %v3718_v41 }
 0xb3d   :  { %v8167_v23 = vpack.c.bf16 %v3972_v59, %v3970_v10 }
 0xb3f   :  { %v8916_v61 = vpop.eup %8915  ;;  %8169 = vmatprep.subr.msk.bf16.mxu0 %vm9242_vm1, %v8167_v23 }
 0xb40   :  { %v3729_v62 = vmul.f32 %v8916_v61, %v3719_v16  ;;  %v4055_v56 = vpop.permute.xlu1 %4054 }
 0xb41   :  { %v4060_v63 = vsel %vm2003_vm0, %v4055_v56, 0.0 }
 0xb42   :  { %4061 = vadd.xlane.f32.xlu1 %v4060_v63  ;;  %v3730_v0 = vpack.c.bf16 %v3729_v62, %v3728_v13  ;;  %v9496_v62 = vld [vmem:[%s9718_s12] sm:$0xff] }
 0xb44   :  { %8095 = vmatmul.mubr.msk.bf16.vlgmr.msra.gmra.mrb[28].mxu1 %vm2145_vm2, %v3730_v0  ;;  %v4455_v0 = vsel %vm2003_vm0, %v9504_v48, 0.0 }
 0xb45   :  { %3950 = vmatprep.mubr.bf16.mxu1 %v9056_v20  ;;  %3919 = vmatpush1.bf16.msra.mxu1 %v8409_v2 }
 0xb46   :  { %4064 = vadd.xlane.f32.xlu1 %v4063_v1  ;;  %3920 = vmatprep.subr.bf16.mxu1 %v8414_v4 }
 0xb49   :  { %3921 = vmatpush1.bf16.msra.mxu1 %v8412_v5 }
 0xb4a   :  { %3922 = vmatprep.subr.bf16.mxu1 %v8417_v6 }
 0xb4d   :  { %3923 = vmatpush1.bf16.msra.mxu1 %v8415_v8 }
 0xb4e   :  { %3924 = vmatprep.subr.bf16.mxu1 %v8420_v9 }
 0xb51   :  { %3925 = vmatpush1.bf16.msra.mxu1 %v8418_v33 }
 0xb52   :  { %8105 = vmatprep.subr.bf16.mxu1 %v9054_v12 }
 0xbcf   :  { %v4062_v60 = vpop.xlane.xlu1 %4061 }
 0xbd0   :  { %4066 = vxpose.xlu0.b32.start [1/2] (short) (narrow) %v4062_v60, 8 }
 0xbd3   :  { %v4065_v32 = vpop.xlane.xlu1 %4064 }
 0xbd4   :  { %4067 = vxpose.xlu0.b32.end [2/2] (short) (narrow) %v4065_v32, 8 }
 0xc01   :  { %4459 = vadd.xlane.f32.xlu0 %v4458_v24  ;;  %v8438_v24 = vld [vmem:[#allocation4 + $0x2ac] ss:$16 sps:$4 sm:$0xff]  }
 0xc17   :  { %v3768_v21 = vpop.f32.mrb[28].mxu1 }
 0xc18   :  { %v8096_v17 = vpop.f32.mrb[29].mxu1 }
 0xc19   :  { %v3771_v25 = vpop.f32.mrb[30].mxu1  ;;  %v8441_v17 = vld [vmem:[#allocation4 + $0x2cc] ss:$16 sps:$4 sm:$0xff]  }
 0xc1a   :  { %v3775_v26 = vpack.c.bf16 %v3771_v25, %v3768_v21  ;;  %v8097_v27 = vpop.f32.mrb[31].mxu1  ;;  %v8436_v21 = vld [vmem:[#allocation4 + $0x2a8] ss:$16 sps:$4 sm:$0xff]  }
 0xc1b   :  { %v8439_v25 = vld [vmem:[#allocation4 + $0x2c8] ss:$16 sps:$4 sm:$0xff]   ;;  %v8444_v27 = vld [vmem:[#allocation4 + $0x2ec] ss:$16 sps:$4 sm:$0xff]  }
 0xc1c   :  { %7658 = vmatmul.mubr.msk.bf16.vlgmr.msra.gmra.mrb[12].mxu0 %vm2003_vm0, %v3775_v26  ;;  %7659 = vmatmul.mubr.msk.bf16.vlgmr.msra.gmra.mrb[16].mxu1 %vm2003_vm0, %v3775_v26  ;;  %v8442_v26 = vld [vmem:[#allocation4 + $0x2e8] ss:$16 sps:$4 sm:$0xff]  }
 0xc1d   :  { %8172 = vmatpush3.bf16.xpose.msk.msra.mxu0 %vm9242_vm1, %v8167_v23  ;;  %8102 = vmatprep.mubr.msk.f32.mxu0 %vm2003_vm0, %v3970_v10  ;;  %v9489_v23 = vld [vmem:[%s9718_s12 + $0x8] sm:$0xff] }
 0xc1e   :  { %4279 = vmatprep.subr.bf16.mxu0 %v8423_v28  ;;  %8107 = vmatprep.mubr.msk.bf16.mxu1 %vm9055_vm3, %v9054_v12 }
 0xc24   :  { %8103 = vmatmul.mubr.msk.f32.vlgmr.msra.gmra.mrb[22].mxu0 %vm2003_vm0, %v3972_v59 }
 0xc25   :  { %4280 = vmatpush1.bf16.msra.mxu0 %v8421_v29  ;;  %4311 = vmatprep.mubr.bf16.mxu0 %v9056_v20 }
 0xc26   :  { %4281 = vmatprep.subr.bf16.mxu0 %v8426_v30 }
 0xc29   :  { %4282 = vmatpush1.bf16.msra.mxu0 %v8424_v31 }
 0xc2a   :  { %4283 = vmatprep.subr.bf16.mxu0 %v8429_v34 }
 0xc2d   :  { %4284 = vmatpush1.bf16.msra.mxu0 %v8427_v35 }
 0xc2e   :  { %4285 = vmatprep.subr.bf16.mxu0 %v8432_v45 }
 0xc31   :  { %4286 = vmatpush1.bf16.msra.mxu0 %v8430_v38 }
 0xc32   :  { %8175 = vmatprep.subr.msk.bf16.mxu0 %vm9242_vm1, %v9339_v18 }
 0xc50   :  { %v4082_v39 = vpop.trf.xlu0 }
 0xc51   :  { %v4101_v7 = vrot.slane %v4082_v39, %v9287_v15 }
 0xc53   :  { %v4103_v41 = vadd.f32 %v4101_v7, %v4065_v32  ;;  %v4102_v44 = vadd.f32 %v4101_v7, %v4062_v60  ;;  %v8433_v60 = vld [vmem:[#allocation4 + $0x288] ss:$16 sps:$4 sm:$0xff]   ;;  %v8435_v32 = vld [vmem:[#allocation4 + $0x28c] ss:$16 sps:$4 sm:$0xff]  }
 0xc8e   :  { %v4460_v9 = vpop.xlane.xlu0 %4459 }
 0xcf7   :  { %v8104_v40 = vpop.f32.mrb[22].mxu0 }
 0xcf8   :  { %v4105_v43 = vmul.f32 2.0, %v8104_v40  ;;  %v4043_v16 = vpop.f32.mrb[23].mxu0 }
 0xcf9   :  { %v4104_v47 = vmul.f32 2.0, %v4043_v16 }
 0xcfa   :  { %v4107_v49 = vsub.f32 %v4103_v41, %v4105_v43 }
 0xcfb   :  { %v4106_v51 = vsub.f32 %v4102_v44, %v4104_v47 }
 0xcfc   :  { %v4109_v52 = vmax.f32 %v4107_v49, 0.0 }
 0xcfd   :  { %v4108_v36 = vmax.f32 %v4106_v51, 0.0 }
 0xcfe   :  { %v4111_v53 = vsub.f32 0.0, %v4109_v52 }
 0xcff   :  { %v4110_v37 = vsub.f32 0.0, %v4108_v36 }
 0xd00   :  { %v4113_v54 = vmul.f32 0.125, %v4111_v53 }
 0xd01   :  { %v4112_v55 = vmul.f32 0.125, %v4110_v37 }
 0xd02   :  { %v4116_v58 = vmul.f32 1.442695, %v4113_v54 }
 0xd03   :  { %v4114_v10 = vmul.f32 1.442695, %v4112_v55 }
 0xd04   :  { %8917 = vpow2.f32 %v4116_v58 }
 0xd05   :  { %8919 = vpow2.f32 %v4114_v10 }
 0xd0e   :  { %v8918_v59 = vpop.eup %8917 }
 0xd0f   :  { %v8920_v57 = vpop.eup %8919  ;;  %v4119_v61 = vmul.f32 %v9489_v23, %v8918_v59 }
 0xd10   :  { %v4118_v56 = vmul.f32 %v9496_v62, %v8920_v57 }
 0xd11   :  { %v4123_v13 = vsel %vm2145_vm2, %v4119_v61, 0.0 }
 0xd12   :  { %4124 = vadd.xlane.f32.xlu1 %v4123_v13  ;;  %v4120_v63 = vsel %vm2145_vm2, %v4118_v56, 0.0  ;;  %v8445_v13 = vld [vmem:[#allocation4 + $0x300] ss:$16 sps:$4 sm:$0xff]  }
 0xd16   :  { %4121 = vadd.xlane.f32.xlu1 %v4120_v63  ;;  %v8448_v63 = vld [vmem:[#allocation4 + $0x320] ss:$16 sps:$4 sm:$0xff]  }
 0xd27   :  { %4132 = vrot.lane.b32.xlu1 %v9350_v42, %s9053_s25 }
 0xd4b   :  { %4456 = vadd.xlane.f32.xlu1 %v4455_v0  ;;  %v8453_v0 = vld [vmem:[#allocation4 + $0x344] ss:$16 sps:$4 sm:$0xff]  }
 0xd9f   :  { %v4125_v1 = vpop.xlane.xlu1 %4124 }
 0xda0   :  { %8921 = vrcp.f32 %v4125_v1  ;;  %v8451_v1 = vld [vmem:[#allocation4 + $0x340] ss:$16 sps:$4 sm:$0xff]  }
 0xda3   :  { %v4122_v2 = vpop.xlane.xlu1 %4121 }
 0xda4   :  { %8923 = vrcp.f32 %v4122_v2  ;;  %v8456_v2 = vld [vmem:[#allocation4 + $0x364] ss:$16 sps:$4 sm:$0xff]  }
 0xda7   :  { %v4133_v3 = vpop.permute.xlu1 %4132 }
 0xda8   :  { %8106 = vmatpush3.bf16.msra.mxu1 %v4133_v3  ;;  %v8454_v3 = vld [vmem:[#allocation4 + $0x360] ss:$16 sps:$4 sm:$0xff]  }
 0xda9   :  { %4322 = vmatprep.subr.bf16.mxu1 %v8435_v32 }
 0xdaa   :  { %v8922_v4 = vpop.eup %8921 }
 0xdab   :  { %v4129_v6 = vmul.f32 %v8922_v4, %v4119_v61  ;;  %v8447_v61 = vld [vmem:[#allocation4 + $0x304] ss:$16 sps:$4 sm:$0xff]  }
 0xdae   :  { %v8924_v5 = vpop.eup %8923 }
 0xdaf   :  { %v4128_v8 = vmul.f32 %v8924_v5, %v4118_v56  ;;  %v8450_v56 = vld [vmem:[#allocation4 + $0x324] ss:$16 sps:$4 sm:$0xff]  }
 0xdb1   :  { %v4130_v33 = vpack.c.bf16 %v4129_v6, %v4128_v8 }
 0xdb3   :  { %8108 = vmatmul.mubr.msk.bf16.vlgmr.msra.gmra.mrb[32].mxu1 %vm2145_vm2, %v4130_v33 }
 0xdb4   :  { %4354 = vmatprep.mubr.bf16.mxu1 %v9056_v20  ;;  %4323 = vmatpush1.bf16.msra.mxu1 %v8433_v60 }
 0xdb5   :  { %4324 = vmatprep.subr.bf16.mxu1 %v8438_v24 }
 0xdb8   :  { %4325 = vmatpush1.bf16.msra.mxu1 %v8436_v21  ;;  %v8457_v21 = vld [vmem:[#allocation4 + $0x308] ss:$16 sps:$4 sm:$0xff]  }
 0xdb9   :  { %4326 = vmatprep.subr.bf16.mxu1 %v8441_v17  ;;  %v8459_v17 = vld [vmem:[#allocation4 + $0x30c] ss:$16 sps:$4 sm:$0xff]  }
 0xdbc   :  { %4327 = vmatpush1.bf16.msra.mxu1 %v8439_v25  ;;  %v8462_v25 = vld [vmem:[#allocation4 + $0x32c] ss:$16 sps:$4 sm:$0xff]  }
 0xdbd   :  { %4328 = vmatprep.subr.bf16.mxu1 %v8444_v27  ;;  %v8465_v27 = vld [vmem:[#allocation4 + $0x34c] ss:$16 sps:$4 sm:$0xff]  }
 0xdc0   :  { %4329 = vmatpush1.bf16.msra.mxu1 %v8442_v26  ;;  %v8460_v26 = vld [vmem:[#allocation4 + $0x328] ss:$16 sps:$4 sm:$0xff]  }
 0xdc1   :  { %8118 = vmatprep.subr.bf16.mxu1 %v9054_v12 }
 0xdd8   :  { %v4457_v42 = vpop.xlane.xlu1 %4456 }
 0xdd9   :  { %4461 = vxpose.xlu1.b32.start [1/2] (short) (narrow) %v4457_v42, 8 }
 0xddd   :  { %4462 = vxpose.xlu1.b32.end [2/2] (short) (narrow) %v4460_v9, 8 }
 0xe59   :  { %v4477_v35 = vpop.trf.xlu1 }
 0xe5a   :  { %v4496_v45 = vrot.slane %v4477_v35, %v9287_v15 }
 0xe5c   :  { %v4498_v39 = vadd.f32 %v4496_v45, %v4460_v9  ;;  %v4497_v40 = vadd.f32 %v4496_v45, %v4457_v42 }
 0xe86   :  { %v4172_v28 = vpop.f32.mrb[32].mxu1 }
 0xe87   :  { %v8109_v29 = vpop.f32.mrb[33].mxu1 }
 0xe88   :  { %v4175_v30 = vpop.f32.mrb[34].mxu1  ;;  %v8466_v29 = vld [vmem:[#allocation4 + $0x368] ss:$16 sps:$4 sm:$0xff]  }
 0xe89   :  { %v4179_v31 = vpack.c.bf16 %v4175_v30, %v4172_v28  ;;  %v8110_v34 = vpop.f32.mrb[35].mxu1  ;;  %v8463_v28 = vld [vmem:[#allocation4 + $0x348] ss:$16 sps:$4 sm:$0xff]   ;;  %v8468_v30 = vld [vmem:[#allocation4 + $0x36c] ss:$16 sps:$4 sm:$0xff]  }
 0xe8b   :  { %7681 = vmatmul.mubr.msk.bf16.vlgmr.msra.gmra.mrb[12].mxu0 %vm2003_vm0, %v4179_v31  ;;  %7682 = vmatmul.mubr.msk.bf16.vlgmr.msra.gmra.mrb[16].mxu1 %vm2003_vm0, %v4179_v31 }
 0xe8c   :  { %8178 = vmatpush3.bf16.xpose.msk.msra.mxu0 %vm9242_vm1, %v9339_v18  ;;  %8119 = vmatpush3.bf16.msra.mxu1 %v9352_v46 }
 0xe8d   :  { %8115 = vmatprep.mubr.msk.f32.mxu0 %vm2003_vm0, %v9327_v11  ;;  %8120 = vmatprep.mubr.msk.bf16.mxu1 %vm9055_vm3, %v9054_v12 }
 0xe8e   :  { %4670 = vmatprep.subr.bf16.mxu0 %v8447_v61  ;;  %4713 = vmatprep.subr.bf16.mxu1 %v8459_v17  ;;  %v8492_v17 = vld [vmem:[#allocation4 + $0x3ec] ss:$16 sps:$4 sm:$0xff]  }
 0xe93   :  { %8116 = vmatmul.mubr.msk.f32.vlgmr.msra.gmra.mrb[24].mxu0 %vm2003_vm0, %v9335_v19 }
 0xe94   :  { %4702 = vmatprep.mubr.bf16.mxu0 %v9056_v20  ;;  %4671 = vmatpush1.bf16.msra.mxu0 %v8445_v13 }
 0xe95   :  { %4672 = vmatprep.subr.bf16.mxu0 %v8450_v56 }
 0xe98   :  { %4673 = vmatpush1.bf16.msra.mxu0 %v8448_v63  ;;  %v8469_v63 = vld [vmem:[#allocation4 + $0x380] ss:$16 sps:$4 sm:$0xff]  }
 0xe99   :  { %4674 = vmatprep.subr.bf16.mxu0 %v8453_v0  ;;  %v8471_v0 = vld [vmem:[#allocation4 + $0x384] ss:$16 sps:$4 sm:$0xff]  }
 0xe9c   :  { %4675 = vmatpush1.bf16.msra.mxu0 %v8451_v1  ;;  %v8477_v1 = vld [vmem:[#allocation4 + $0x3a4] ss:$16 sps:$4 sm:$0xff]  }
 0xe9d   :  { %4676 = vmatprep.subr.bf16.mxu0 %v8456_v2  ;;  %v8475_v2 = vld [vmem:[#allocation4 + $0x3a0] ss:$16 sps:$4 sm:$0xff]  }
 0xea0   :  { %4677 = vmatpush1.bf16.msra.mxu0 %v8454_v3  ;;  %v8483_v3 = vld [vmem:[#allocation4 + $0x3c4] ss:$16 sps:$4 sm:$0xff]  }
 0xf66   :  { %v8117_v38 = vpop.f32.mrb[24].mxu0 }
 0xf67   :  { %v4500_v7 = vmul.f32 2.0, %v8117_v38  ;;  %v4446_v18 = vpop.f32.mrb[25].mxu0 }
 0xf68   :  { %v4499_v41 = vmul.f32 2.0, %v4446_v18 }
 0xf69   :  { %v4502_v43 = vsub.f32 %v4498_v39, %v4500_v7 }
 0xf6a   :  { %v4501_v16 = vsub.f32 %v4497_v40, %v4499_v41 }
 0xf6b   :  { %v4504_v44 = vmax.f32 %v4502_v43, 0.0 }
 0xf6c   :  { %v4503_v47 = vmax.f32 %v4501_v16, 0.0 }
 0xf6d   :  { %v4506_v49 = vsub.f32 0.0, %v4504_v44 }
 0xf6e   :  { %v4505_v51 = vsub.f32 0.0, %v4503_v47 }
 0xf6f   :  { %v4508_v52 = vmul.f32 0.125, %v4506_v49 }
 0xf70   :  { %v4507_v36 = vmul.f32 0.125, %v4505_v51 }
 0xf71   :  { %v4511_v53 = vmul.f32 1.442695, %v4508_v52 }
 0xf72   :  { %v4509_v37 = vmul.f32 1.442695, %v4507_v36 }
 0xf73   :  { %8925 = vpow2.f32 %v4511_v53 }
 0xf74   :  { %8927 = vpow2.f32 %v4509_v37 }
 0xf7d   :  { %v8926_v54 = vpop.eup %8925 }
 0xf7e   :  { %v8928_v55 = vpop.eup %8927  ;;  %v4514_v59 = vmul.f32 %v9489_v23, %v8926_v54 }
 0xf7f   :  { %v4513_v58 = vmul.f32 %v9496_v62, %v8928_v55 }
 0xf80   :  { %v4518_v57 = vsel %vm2145_vm2, %v4514_v59, 0.0 }
 0xf81   :  { %v4515_v10 = vsel %vm2145_vm2, %v4513_v58, 0.0 }
 0xf82   :  { %4516 = vadd.xlane.f32.xlu0 %v4515_v10 }
 0xf86   :  { %4519 = vadd.xlane.f32.xlu0 %v4518_v57 }
 0xf9c   :  { %4764 = vrot.lane.b32.xlu0 %v9327_v11, %s9053_s25 }
 0xfa0   :  { %4766 = vrot.lane.b32.xlu0 %v9335_v19, %s9053_s25 }
 0xfa4   :  { %4849 = vrot.lane.b32.xlu0 %v9504_v48, %s9053_s25 }
 0xfa8   :  { %4851 = vrot.lane.b32.xlu0 %v9469_v22, %s9053_s25 }
0x100f   :  { %v4517_v4 = vpop.xlane.xlu0 %4516 }
0x1010   :  { %8929 = vrcp.f32 %v4517_v4 }
0x1013   :  { %v4520_v5 = vpop.xlane.xlu0 %4519 }
0x1014   :  { %8931 = vrcp.f32 %v4520_v5  ;;  %v8474_v5 = vld [vmem:[#allocation4 + $0x38c] ss:$16 sps:$4 sm:$0xff]  }
0x1017   :  { %v4765_v6 = vpop.permute.xlu0 %4764 }
0x101a   :  { %v8930_v8 = vpop.eup %8929 }
0x101b   :  { %v4767_v11 = vpop.permute.xlu0 %4766  ;;  %v4523_v19 = vmul.f32 %v8930_v8, %v4513_v58 }
0x101c   :  { %v8179_v33 = vpack.c.bf16 %v4767_v11, %v4765_v6 }
0x101e   :  { %v8932_v42 = vpop.eup %8931  ;;  %8181 = vmatprep.subr.msk.bf16.mxu0 %vm9242_vm1, %v8179_v33 }
0x101f   :  { %v4524_v9 = vmul.f32 %v8932_v42, %v4514_v59  ;;  %v4850_v60 = vpop.permute.xlu0 %4849  ;;  %v8472_v42 = vld [vmem:[#allocation4 + $0x388] ss:$16 sps:$4 sm:$0xff]  }
0x1020   :  { %v4855_v48 = vsel %vm2003_vm0, %v4850_v60, 0.0  ;;  %v8478_v60 = vld [vmem:[#allocation4 + $0x3a8] ss:$16 sps:$4 sm:$0xff]  }
0x1021   :  { %4856 = vadd.xlane.f32.xlu1 %v4855_v48  ;;  %v4525_v32 = vpack.c.bf16 %v4524_v9, %v4523_v19  ;;  %v8480_v9 = vld [vmem:[#allocation4 + $0x3ac] ss:$16 sps:$4 sm:$0xff]  }
0x1022   :  { %v8486_v48 = vld [vmem:[#allocation4 + $0x3cc] ss:$16 sps:$4 sm:$0xff]  }
0x1023   :  { %8121 = vmatmul.mubr.msk.bf16.vlgmr.msra.gmra.mrb[36].mxu1 %vm2145_vm2, %v4525_v32  ;;  %v4852_v22 = vpop.permute.xlu0 %4851  ;;  %v8484_v32 = vld [vmem:[#allocation4 + $0x3c8] ss:$16 sps:$4 sm:$0xff]  }
0x1024   :  { %v4858_v24 = vsel %vm2003_vm0, %v4852_v22, 0.0  ;;  %4745 = vmatprep.mubr.bf16.mxu1 %v9056_v20  ;;  %4714 = vmatpush1.bf16.msra.mxu1 %v8457_v21  ;;  %v8487_v22 = vld [vmem:[#allocation4 + $0x3e0] ss:$16 sps:$4 sm:$0xff]   ;;  %v8490_v21 = vld [vmem:[#allocation4 + $0x3e8] ss:$16 sps:$4 sm:$0xff]  }
0x1025   :  { %4859 = vadd.xlane.f32.xlu0 %v4858_v24  ;;  %4715 = vmatprep.subr.bf16.mxu1 %v8462_v25  ;;  %v8489_v24 = vld [vmem:[#allocation4 + $0x3e4] ss:$16 sps:$4 sm:$0xff]  }
0x1026   :  { %v8495_v25 = vld [vmem:[#allocation6 + $0x4] ss:$16 sps:$4 sm:$0xff]  }
0x1028   :  { %4716 = vmatpush1.bf16.msra.mxu1 %v8460_v26  ;;  %v8498_v26 = vld [vmem:[#allocation6 + $0xc] ss:$16 sps:$4 sm:$0xff]  }
0x1029   :  { %4717 = vmatprep.subr.bf16.mxu1 %v8465_v27 }
0x102c   :  { %4718 = vmatpush1.bf16.msra.mxu1 %v8463_v28 }
0x102d   :  { %4719 = vmatprep.subr.bf16.mxu1 %v8468_v30  ;;  %v8496_v30 = vld [vmem:[#allocation6 + $0x8] ss:$16 sps:$4 sm:$0xff]  }
0x1030   :  { %4720 = vmatpush1.bf16.msra.mxu1 %v8466_v29  ;;  %v8493_v29 = vld [vmem:[#allocation6] ss:$16 sps:$4 sm:$0xff]  }
0x1031   :  { %8131 = vmatprep.subr.bf16.mxu1 %v9054_v12 }
0x10ae   :  { %v4857_v31 = vpop.xlane.xlu1 %4856 }
0x10af   :  { %4861 = vxpose.xlu0.b32.start [1/2] (short) (narrow) %v4857_v31, 8 }
0x10b2   :  { %v4860_v34 = vpop.xlane.xlu0 %4859 }
0x10b3   :  { %4862 = vxpose.xlu0.b32.end [2/2] (short) (narrow) %v4860_v34, 8 }
0x10f6   :  { %v4563_v35 = vpop.f32.mrb[36].mxu1 }
0x10f7   :  { %v8122_v45 = vpop.f32.mrb[37].mxu1 }
0x10f8   :  { %v4566_v38 = vpop.f32.mrb[38].mxu1  ;;  %v8504_v45 = vld [vmem:[#allocation6 + $0x2c] ss:$16 sps:$4 sm:$0xff]  }
0x10f9   :  { %v4570_v39 = vpack.c.bf16 %v4566_v38, %v4563_v35  ;;  %v8123_v7 = vpop.f32.mrb[39].mxu1  ;;  %v8501_v35 = vld [vmem:[#allocation6 + $0x24] ss:$16 sps:$4 sm:$0xff]   ;;  %v8499_v38 = vld [vmem:[#allocation6 + $0x20] ss:$16 sps:$4 sm:$0xff]  }
0x10fa   :  { %v8507_v7 = vld [vmem:[#allocation6 + $0x44] ss:$16 sps:$4 sm:$0xff]  }
0x10fb   :  { %7704 = vmatmul.mubr.msk.bf16.vlgmr.msra.gmra.mrb[12].mxu0 %vm2003_vm0, %v4570_v39  ;;  %7705 = vmatmul.mubr.msk.bf16.vlgmr.msra.gmra.mrb[16].mxu1 %vm2003_vm0, %v4570_v39  ;;  %v8502_v39 = vld [vmem:[#allocation6 + $0x28] ss:$16 sps:$4 sm:$0xff]  }
0x10fc   :  { %8184 = vmatpush3.bf16.xpose.msk.msra.mxu0 %vm9242_vm1, %v8179_v33  ;;  %8128 = vmatprep.mubr.msk.f32.mxu0 %vm2003_vm0, %v4765_v6 }
0x10fd   :  { %8133 = vmatprep.mubr.msk.bf16.mxu1 %vm9055_vm3, %v9054_v12  ;;  %5074 = vmatprep.subr.bf16.mxu0 %v8471_v0  ;;  %v8541_v0 = vld [vmem:[#allocation6 + $0x100] ss:$16 sps:$4 sm:$0xff]  }
0x1103   :  { %8129 = vmatmul.mubr.msk.f32.vlgmr.msra.gmra.mrb[26].mxu0 %vm2003_vm0, %v4767_v11 }
0x1104   :  { %5106 = vmatprep.mubr.bf16.mxu0 %v9056_v20  ;;  %5075 = vmatpush1.bf16.msra.mxu0 %v8469_v63  ;;  %v8546_v63 = vld [vmem:[#allocation6 + $0x10c] ss:$16 sps:$4 sm:$0xff]  }
0x1105   :  { %5076 = vmatprep.subr.bf16.mxu0 %v8477_v1  ;;  %v8544_v1 = vld [vmem:[#allocation6 + $0x108] ss:$16 sps:$4 sm:$0xff]  }
0x1108   :  { %5077 = vmatpush1.bf16.msra.mxu0 %v8475_v2  ;;  %v8549_v2 = vld [vmem:[#allocation6 + $0x124] ss:$16 sps:$4 sm:$0xff]  }
0x1109   :  { %5078 = vmatprep.subr.bf16.mxu0 %v8483_v3  ;;  %v8552_v3 = vld [vmem:[#allocation6 + $0x12c] ss:$16 sps:$4 sm:$0xff]  }
0x112f   :  { %v4877_v18 = vpop.trf.xlu0 }
0x1130   :  { %v4896_v40 = vrot.slane %v4877_v18, %v9287_v15  ;;  %v8510_v18 = vld [vmem:[#allocation6 + $0x4c] ss:$16 sps:$4 sm:$0xff]  }
0x1132   :  { %v4898_v43 = vadd.f32 %v4896_v40, %v4860_v34  ;;  %v4897_v47 = vadd.f32 %v4896_v40, %v4857_v31  ;;  %v8505_v40 = vld [vmem:[#allocation6 + $0x40] ss:$16 sps:$4 sm:$0xff]  }
0x11d6   :  { %v8130_v41 = vpop.f32.mrb[26].mxu0 }
0x11d7   :  { %v4900_v16 = vmul.f32 2.0, %v8130_v41  ;;  %v4838_v44 = vpop.f32.mrb[27].mxu0  ;;  %v8508_v41 = vld [vmem:[#allocation6 + $0x48] ss:$16 sps:$4 sm:$0xff]  }
0x11d8   :  { %v4899_v49 = vmul.f32 2.0, %v4838_v44  ;;  %v8511_v44 = vld [vmem:[#allocation6 + $0x60] ss:$16 sps:$4 sm:$0xff]  }
0x11d9   :  { %v4902_v50 = vsub.f32 %v4898_v43, %v4900_v16  ;;  %v8513_v43 = vld [vmem:[#allocation6 + $0x64] ss:$16 sps:$4 sm:$0xff]   ;;  %v8516_v16 = vld [vmem:[#allocation6 + $0x6c] ss:$16 sps:$4 sm:$0xff]  }
0x11da   :  { %v4901_v51 = vsub.f32 %v4897_v47, %v4899_v49  ;;  %v8514_v47 = vld [vmem:[#allocation6 + $0x68] ss:$16 sps:$4 sm:$0xff]   ;;  %v8519_v49 = vld [vmem:[#allocation6 + $0x84] ss:$16 sps:$4 sm:$0xff]  }
0x11db   :  { %v4904_v52 = vmax.f32 %v4902_v50, 0.0  ;;  %v8522_v50 = vld [vmem:[#allocation6 + $0x8c] ss:$16 sps:$4 sm:$0xff]  }
0x11dc   :  { %v4903_v36 = vmax.f32 %v4901_v51, 0.0  ;;  %v8517_v51 = vld [vmem:[#allocation6 + $0x80] ss:$16 sps:$4 sm:$0xff]  }
0x11dd   :  { %v4906_v53 = vsub.f32 0.0, %v4904_v52  ;;  %v8520_v52 = vld [vmem:[#allocation6 + $0x88] ss:$16 sps:$4 sm:$0xff]  }
0x11de   :  { %v4905_v37 = vsub.f32 0.0, %v4903_v36  ;;  %v8525_v36 = vld [vmem:[#allocation6 + $0xa4] ss:$16 sps:$4 sm:$0xff]  }
0x11df   :  { %v4908_v12 = vmul.f32 0.125, %v4906_v53  ;;  %v8528_v53 = vld [vmem:[#allocation6 + $0xac] ss:$16 sps:$4 sm:$0xff]  }
0x11e0   :  { %v4907_v54 = vmul.f32 0.125, %v4905_v37  ;;  %v8523_v37 = vld [vmem:[#allocation6 + $0xa0] ss:$16 sps:$4 sm:$0xff]  }
0x11e1   :  { %v4911_v55 = vmul.f32 1.442695, %v4908_v12  ;;  %v8526_v12 = vld [vmem:[#allocation6 + $0xa8] ss:$16 sps:$4 sm:$0xff]  }
0x11e2   :  { %v4909_v58 = vmul.f32 1.442695, %v4907_v54  ;;  %v8531_v54 = vld [vmem:[#allocation6 + $0xc4] ss:$16 sps:$4 sm:$0xff]  }
0x11e3   :  { %8933 = vpow2.f32 %v4911_v55  ;;  %v8534_v55 = vld [vmem:[#allocation6 + $0xcc] ss:$16 sps:$4 sm:$0xff]  }
0x11e4   :  { %8935 = vpow2.f32 %v4909_v58  ;;  %v8529_v58 = vld [vmem:[#allocation6 + $0xc0] ss:$16 sps:$4 sm:$0xff]  }
0x11ed   :  { %v8934_v10 = vpop.eup %8933 }
0x11ee   :  { %v8936_v59 = vpop.eup %8935  ;;  %v4914_v57 = vmul.f32 %v9489_v23, %v8934_v10  ;;  %v8481_v23 = vld [vmem:[#allocation4 + $0x3c0] ss:$16 sps:$4 sm:$0xff]   ;;  %v8532_v10 = vld [vmem:[#allocation6 + $0xc8] ss:$16 sps:$4 sm:$0xff]  }
0x11ef   :  { %v4913_v13 = vmul.f32 %v9496_v62, %v8936_v59  ;;  %5079 = vmatpush1.bf16.msra.mxu0 %v8481_v23  ;;  %v8537_v59 = vld [vmem:[#allocation6 + $0xe4] ss:$16 sps:$4 sm:$0xff]   ;;  %v8547_v23 = vld [vmem:[#allocation6 + $0x120] ss:$16 sps:$4 sm:$0xff]  }
0x11f0   :  { %v4918_v61 = vsel %vm2145_vm2, %v4914_v57, 0.0  ;;  %5080 = vmatprep.subr.bf16.mxu0 %v8489_v24  ;;  %v8574_v24 = vld [vmem:[#allocation6 + $0x1a8] ss:$16 sps:$4 sm:$0xff]  }
0x11f1   :  { %4919 = vadd.xlane.f32.xlu1 %v4918_v61  ;;  %v4915_v56 = vsel %vm2145_vm2, %v4913_v13, 0.0  ;;  %v8535_v61 = vld [vmem:[#allocation6 + $0xe0] ss:$16 sps:$4 sm:$0xff]  }
0x11f3   :  { %5081 = vmatpush1.bf16.msra.mxu0 %v8487_v22  ;;  %v8571_v22 = vld [vmem:[#allocation6 + $0x1a0] ss:$16 sps:$4 sm:$0xff]  }
0x11f4   :  { %6060 = vmatprep.subr.bf16.mxu0 %v8495_v25  ;;  %v8582_v25 = vld [vmem:[#allocation6 + $0x1cc] ss:$16 sps:$4 sm:$0xff]  }
0x11f5   :  { %4916 = vadd.xlane.f32.xlu1 %v4915_v56  ;;  %v8543_v56 = vld [vmem:[#allocation6 + $0x104] ss:$16 sps:$4 sm:$0xff]  }
0x1206   :  { %4927 = vrot.lane.b32.xlu1 %v9352_v46, %s9053_s25 }
0x127e   :  { %v4920_v62 = vpop.xlane.xlu1 %4919 }
0x127f   :  { %8937 = vrcp.f32 %v4920_v62  ;;  %v8550_v62 = vld [vmem:[#allocation6 + $0x128] ss:$16 sps:$4 sm:$0xff]  }
0x1282   :  { %v4917_v4 = vpop.xlane.xlu1 %4916 }
0x1283   :  { %8939 = vrcp.f32 %v4917_v4  ;;  %v8555_v4 = vld [vmem:[#allocation6 + $0x144] ss:$16 sps:$4 sm:$0xff]  }
0x1286   :  { %v4928_v6 = vpop.permute.xlu1 %4927 }
0x1287   :  { %8132 = vmatpush3.bf16.msra.mxu1 %v4928_v6  ;;  %v8553_v6 = vld [vmem:[#allocation6 + $0x140] ss:$16 sps:$4 sm:$0xff]  }
0x1288   :  { %5117 = vmatprep.subr.bf16.mxu1 %v8474_v5  ;;  %v8558_v5 = vld [vmem:[#allocation6 + $0x14c] ss:$16 sps:$4 sm:$0xff]  }
0x1289   :  { %v8938_v46 = vpop.eup %8937 }
0x128a   :  { %v4924_v8 = vmul.f32 %v8938_v46, %v4914_v57  ;;  %v8540_v57 = vld [vmem:[#allocation6 + $0xec] ss:$16 sps:$4 sm:$0xff]   ;;  %v8556_v46 = vld [vmem:[#allocation6 + $0x148] ss:$16 sps:$4 sm:$0xff]  }
0x128d   :  { %v8940_v11 = vpop.eup %8939 }
0x128e   :  { %v4923_v33 = vmul.f32 %v8940_v11, %v4913_v13  ;;  %v8538_v13 = vld [vmem:[#allocation6 + $0xe8] ss:$16 sps:$4 sm:$0xff]   ;;  %v8561_v11 = vld [vmem:[#allocation6 + $0x164] ss:$16 sps:$4 sm:$0xff]  }
0x1290   :  { %v4925_v19 = vpack.c.bf16 %v4924_v8, %v4923_v33  ;;  %v8564_v8 = vld [vmem:[#allocation6 + $0x16c] ss:$16 sps:$4 sm:$0xff]   ;;  %v8559_v33 = vld [vmem:[#allocation6 + $0x160] ss:$16 sps:$4 sm:$0xff]  }
0x1292   :  { %8134 = vmatmul.mubr.msk.bf16.vlgmr.msra.gmra.mrb[40].mxu1 %vm2145_vm2, %v4925_v19  ;;  %v8567_v19 = vld [vmem:[#allocation6 + $0x184] ss:$16 sps:$4 sm:$0xff]  }
0x1293   :  { %5118 = vmatpush1.bf16.msra.mxu1 %v8472_v42  ;;  %5149 = vmatprep.mubr.bf16.mxu1 %v9056_v20  ;;  %v8562_v42 = vld [vmem:[#allocation6 + $0x168] ss:$16 sps:$4 sm:$0xff]  }
0x1294   :  { %5119 = vmatprep.subr.bf16.mxu1 %v8480_v9  ;;  %v8570_v9 = vld [vmem:[#allocation6 + $0x18c] ss:$16 sps:$4 sm:$0xff]  }
0x1297   :  { %5120 = vmatpush1.bf16.msra.mxu1 %v8478_v60  ;;  %v8565_v60 = vld [vmem:[#allocation6 + $0x180] ss:$16 sps:$4 sm:$0xff]  }
0x1298   :  { %5121 = vmatprep.subr.bf16.mxu1 %v8486_v48  ;;  %v8568_v48 = vld [vmem:[#allocation6 + $0x188] ss:$16 sps:$4 sm:$0xff]  }
0x129b   :  { %5122 = vmatpush1.bf16.msra.mxu1 %v8484_v32  ;;  %v8573_v32 = vld [vmem:[#allocation6 + $0x1a4] ss:$16 sps:$4 sm:$0xff]  }
0x129c   :  { %5123 = vmatprep.subr.bf16.mxu1 %v8492_v17  ;;  %v8579_v17 = vld [vmem:[#allocation6 + $0x1c4] ss:$16 sps:$4 sm:$0xff]  }
0x129f   :  { %5124 = vmatpush1.bf16.msra.mxu1 %v8490_v21  ;;  %v8576_v21 = vld [vmem:[#allocation6 + $0x1ac] ss:$16 sps:$4 sm:$0xff]  }
0x12a0   :  { %6146 = vmatprep.subr.bf16.mxu1 %v8498_v26  ;;  %v8577_v26 = vld [vmem:[#allocation6 + $0x1c0] ss:$16 sps:$4 sm:$0xff]  }
0x1365   :  { %v4967_v27 = vpop.f32.mrb[40].mxu1 }
0x1366   :  { %v8135_v20 = vpop.f32.mrb[41].mxu1 }
0x1367   :  { %v4970_v28 = vpop.f32.mrb[42].mxu1  ;;  %v8585_v20 = vld [vmem:[#allocation6 + $0x1e4] ss:$16 sps:$4 sm:$0xff]  }
0x1368   :  { %v4974_v31 = vpack.c.bf16 %v4970_v28, %v4967_v27  ;;  %v8136_v34 = vpop.f32.mrb[43].mxu1  ;;  %v8580_v27 = vld [vmem:[#allocation6 + $0x1c8] ss:$16 sps:$4 sm:$0xff]   ;;  %v8583_v28 = vld [vmem:[#allocation6 + $0x1e0] ss:$16 sps:$4 sm:$0xff]  }
0x1369   :  { %v8594_v34 = vld [vmem:[#allocation6 + $0x20c] ss:$16 sps:$4 sm:$0xff]  }
0x136a   :  { %7727 = vmatmul.mubr.msk.bf16.vlgmr.msra.gmra.mrb[12].mxu0 %vm2003_vm0, %v4974_v31  ;;  %7728 = vmatmul.mubr.msk.bf16.vlgmr.msra.gmra.mrb[16].mxu1 %vm2003_vm0, %v4974_v31  ;;  %v8591_v31 = vld [vmem:[#allocation6 + $0x204] ss:$16 sps:$4 sm:$0xff]  }
0x136b   :  { %6061 = vmatpush1.bf16.msra.mxu0 %v8493_v29  ;;  %6147 = vmatpush1.bf16.msra.mxu1 %v8496_v30  ;;  %v8588_v29 = vld [vmem:[#allocation6 + $0x1ec] ss:$16 sps:$4 sm:$0xff]   ;;  %v8586_v30 = vld [vmem:[#allocation6 + $0x1e8] ss:$16 sps:$4 sm:$0xff]  }
0x136c   :  { %6062 = vmatprep.subr.bf16.mxu0 %v8501_v35  ;;  %6148 = vmatprep.subr.bf16.mxu1 %v8504_v45  ;;  %v9565_v35 = vsub.s32 2, %v9284_v14  ;;  %v5176_v45 = vld [vmem:[%s9709_s3] sm:$0xf] }
0x136f   :  { %6063 = vmatpush1.bf16.msra.mxu0 %v8499_v38  ;;  %6149 = vmatpush1.bf16.msra.mxu1 %v8502_v39  ;;  %v9571_v38 = vsub.s32 1, %v9284_v14  ;;  %v9574_v39 = vsub.s32 3, %v9284_v14 }
0x1370   :  { %6064 = vmatprep.subr.bf16.mxu0 %v8507_v7  ;;  %6150 = vmatprep.subr.bf16.mxu1 %v8510_v18  ;;  %v5206_v7 = vld [vmem:[%s9711_s5] sm:$0xf] }
0x1371   :  { %v5236_v18 = vld [vmem:[%s9710_s4] sm:$0xf]  ;;  %v5193_v14 = vrot.slane %v5176_v45, %v9574_v39 }
0x1373   :  { %6065 = vmatpush1.bf16.msra.mxu0 %v8505_v40  ;;  %6151 = vmatpush1.bf16.msra.mxu1 %v8508_v41  ;;  %v5181_v40 = vrot.slane %v5176_v45, %v9287_v15  ;;  %v5189_v41 = vrot.slane %v5176_v45, %v9565_v35 }
0x1374   :  { %6066 = vmatprep.subr.bf16.mxu0 %v8513_v43  ;;  %6152 = vmatprep.subr.bf16.mxu1 %v8516_v16  ;;  %v5211_v16 = vrot.slane %v5206_v7, %v9287_v15 }
0x1377   :  { %6067 = vmatpush1.bf16.msra.mxu0 %v8511_v44  ;;  %6153 = vmatpush1.bf16.msra.mxu1 %v8514_v47  ;;  %v5185_v47 = vrot.slane %v5176_v45, %v9571_v38 }
0x1378   :  { %6068 = vmatprep.subr.bf16.mxu0 %v8519_v49  ;;  %6154 = vmatprep.subr.bf16.mxu1 %v8522_v50  ;;  %v8943_v49 = vld [vmem:[%s9706_s0] sm:$0xff] }
0x137b   :  { %6069 = vmatpush1.bf16.msra.mxu0 %v8517_v51  ;;  %6155 = vmatpush1.bf16.msra.mxu1 %v8520_v52  ;;  %v5241_v51 = vrot.slane %v5236_v18, %v9287_v15  ;;  %v8944_v52 = vld [vmem:[%s9706_s0 + $0x10] sm:$0xff] }
0x137c   :  { %6070 = vmatprep.subr.bf16.mxu0 %v8525_v36  ;;  %6156 = vmatprep.subr.bf16.mxu1 %v8528_v53  ;;  %v5219_v53 = vrot.slane %v5206_v7, %v9565_v35 }
0x137f   :  { %6071 = vmatpush1.bf16.msra.mxu0 %v8523_v37  ;;  %6157 = vmatpush1.bf16.msra.mxu1 %v8526_v12 }
0x1380   :  { %6072 = vmatprep.subr.bf16.mxu0 %v8531_v54  ;;  %6158 = vmatprep.subr.bf16.mxu1 %v8534_v55  ;;  %v5249_v54 = vrot.slane %v5236_v18, %v9565_v35  ;;  %v8945_v55 = vld [vmem:[%s9706_s0 + $0x8] sm:$0xff] }
0x1383   :  { %6073 = vmatpush1.bf16.msra.mxu0 %v8529_v58  ;;  %6159 = vmatpush1.bf16.msra.mxu1 %v8532_v10  ;;  %v5215_v10 = vrot.slane %v5206_v7, %v9571_v38 }
0x1384   :  { %6074 = vmatprep.subr.bf16.mxu0 %v8537_v59  ;;  %6160 = vmatprep.subr.bf16.mxu1 %v8540_v57  ;;  %v8946_v59 = vld [vmem:[%s9706_s0 + $0x18] sm:$0xff] }
0x1387   :  { %6075 = vmatpush1.bf16.msra.mxu0 %v8535_v61  ;;  %6161 = vmatpush1.bf16.msra.mxu1 %v8538_v13 }
0x1388   :  { %6076 = vmatprep.subr.bf16.mxu0 %v8543_v56  ;;  %6162 = vmatprep.subr.bf16.mxu1 %v8546_v63 }
0x138b   :  { %6077 = vmatpush1.bf16.msra.mxu0 %v8541_v0  ;;  %6163 = vmatpush1.bf16.msra.mxu1 %v8544_v1  ;;  %v8947_v0 = vld [vmem:[%s9706_s0 + $0x20] sm:$0xff] }
0x138c   :  { %6078 = vmatprep.subr.bf16.mxu0 %v8549_v2  ;;  %6164 = vmatprep.subr.bf16.mxu1 %v8552_v3  ;;  %v8948_v2 = vld [vmem:[%s9706_s0 + $0x30] sm:$0xff] }
0x138f   :  { %6079 = vmatpush1.bf16.msra.mxu0 %v8547_v23  ;;  %6165 = vmatpush1.bf16.msra.mxu1 %v8550_v62 }
0x1390   :  { %6080 = vmatprep.subr.bf16.mxu0 %v8555_v4  ;;  %6166 = vmatprep.subr.bf16.mxu1 %v8558_v5  ;;  %v5223_v5 = vrot.slane %v5206_v7, %v9574_v39 }
0x1393   :  { %6081 = vmatpush1.bf16.msra.mxu0 %v8553_v6  ;;  %6167 = vmatpush1.bf16.msra.mxu1 %v8556_v46  ;;  %v8949_v6 = vld [vmem:[%s9706_s0 + $0x28] sm:$0xff] }
0x1394   :  { %6082 = vmatprep.subr.bf16.mxu0 %v8561_v11  ;;  %6168 = vmatprep.subr.bf16.mxu1 %v8564_v8  ;;  %v8950_v11 = vld [vmem:[%s9706_s0 + $0x38] sm:$0xff] }
0x1397   :  { %6083 = vmatpush1.bf16.msra.mxu0 %v8559_v33  ;;  %6169 = vmatpush1.bf16.msra.mxu1 %v8562_v42 }
0x1398   :  { %6084 = vmatprep.subr.bf16.mxu0 %v8567_v19  ;;  %6170 = vmatprep.subr.bf16.mxu1 %v8570_v9 }
0x139b   :  { %6085 = vmatpush1.bf16.msra.mxu0 %v8565_v60  ;;  %6171 = vmatpush1.bf16.msra.mxu1 %v8568_v48 }
0x139c   :  { %6086 = vmatprep.subr.bf16.mxu0 %v8573_v32  ;;  %6172 = vmatprep.subr.bf16.mxu1 %v8576_v21 }
0x139f   :  { %6087 = vmatpush1.bf16.msra.mxu0 %v8571_v22  ;;  %6173 = vmatpush1.bf16.msra.mxu1 %v8574_v24  ;;  %v5245_v22 = vrot.slane %v5236_v18, %v9571_v38 }
0x13a0   :  { %6088 = vmatprep.subr.bf16.mxu0 %v8579_v17  ;;  %6174 = vmatprep.subr.bf16.mxu1 %v8582_v25 }
0x13a3   :  { %6089 = vmatpush1.bf16.msra.mxu0 %v8577_v26  ;;  %6175 = vmatpush1.bf16.msra.mxu1 %v8580_v27 }
0x13a4   :  { %6090 = vmatprep.subr.bf16.mxu0 %v8585_v20  ;;  %6176 = vmatprep.subr.bf16.mxu1 %v8588_v29 }
0x13a7   :  { %6091 = vmatpush1.bf16.msra.mxu0 %v8583_v28  ;;  %6177 = vmatpush1.bf16.msra.mxu1 %v8586_v30  ;;  %v5253_v30 = vrot.slane %v5236_v18, %v9574_v39  ;;  %v8597_v18 = vld [vmem:[#allocation6 + $0x224] ss:$16 sps:$4 sm:$0xff]  }
0x13a8   :  { %6103 = vmatprep.subr.bf16.mxu0 %v8591_v31  ;;  %6189 = vmatprep.subr.bf16.mxu1 %v8594_v34 }
0x143d   :  { %v5108_v43 = vpop.f32.mrb[12].mxu0  ;;  %v5151_v44 = vpop.f32.mrb[16].mxu1 }
0x143e   :  { %v5168_v50 = vadd.f32 %v8943_v49, %v5108_v43  ;;  %v5170_v36 = vadd.f32 %v8944_v52, %v5151_v44  ;;  %v5110_v37 = vpop.f32.mrb[13].mxu0  ;;  %v5153_v12 = vpop.f32.mrb[17].mxu1  ;;  %v8592_v43 = vld [vmem:[#allocation6 + $0x208] ss:$16 sps:$4 sm:$0xff]   ;;  %v8595_v49 = vld [vmem:[#allocation6 + $0x220] ss:$16 sps:$4 sm:$0xff]  }
0x143f   :  { %v5169_v58 = vadd.f32 %v8945_v55, %v5110_v37  ;;  %v5171_v57 = vadd.f32 %v8946_v59, %v5153_v12  ;;  %v5112_v61 = vpop.f32.mrb[14].mxu0  ;;  %v5155_v13 = vpop.f32.mrb[18].mxu1  ;;  %v8606_v52 = vld [vmem:[#allocation6 + $0x24c] ss:$16 sps:$4 sm:$0xff]   ;;  %v8609_v37 = vld [vmem:[#allocation6 + $0x264] ss:$16 sps:$4 sm:$0xff]  }
0x1440   :  { %v5198_v56 = vadd.f32 %v5181_v40, %v5168_v50  ;;  %v5200_v63 = vadd.f32 %v5189_v41, %v5170_v36  ;;  %v5172_v1 = vadd.f32 %v8947_v0, %v5112_v61  ;;  %v5174_v3 = vadd.f32 %v8948_v2, %v5155_v13  ;;  %v5114_v23 = vpop.f32.mrb[15].mxu0  ;;  %v5157_v62 = vpop.f32.mrb[19].mxu1  ;;  %v8598_v50 = vld [vmem:[#allocation6 + $0x228] ss:$16 sps:$4 sm:$0xff]   ;;  %v8601_v36 = vld [vmem:[#allocation6 + $0x240] ss:$16 sps:$4 sm:$0xff]  }
0x1441   :  { %v5199_v4 = vadd.f32 %v5185_v47, %v5169_v58  ;;  %v5173_v46 = vadd.f32 %v8949_v6, %v5114_v23  ;;  %v5175_v8 = vadd.f32 %v8950_v11, %v5157_v62  ;;  %v5201_v42 = vadd.f32 %v5193_v14, %v5171_v57  ;;  %v8612_v12 = vld [vmem:[#allocation6 + $0x26c] ss:$16 sps:$4 sm:$0xff]   ;;  %v8610_v55 = vld [vmem:[#allocation6 + $0x268] ss:$16 sps:$4 sm:$0xff]   ;;  %v8615_v58 = vld [vmem:[#allocation6 + $0x284] ss:$16 sps:$4 sm:$0xff]  }
0x1442   :  { %v5230_v33 = vadd.f32 %v5219_v53, %v5200_v63  ;;  %v5202_v19 = vadd.f32 %v5181_v40, %v5172_v1  ;;  %v5204_v9 = vadd.f32 %v5189_v41, %v5174_v3  ;;  %v5228_v24 = vadd.f32 %v5211_v16, %v5198_v56  ;;  %v8589_v41 = vld [vmem:[#allocation6 + $0x200] ss:$16 sps:$4 sm:$0xff]   ;;  %v8616_v57 = vld [vmem:[#allocation6 + $0x288] ss:$16 sps:$4 sm:$0xff]   ;;  %v8621_v61 = vld [vmem:[#allocation6 + $0x2a4] ss:$16 sps:$4 sm:$0xff]  }
0x1443   :  { %v5229_v60 = vadd.f32 %v5215_v10, %v5199_v4  ;;  %v5203_v48 = vadd.f32 %v5185_v47, %v5173_v46  ;;  %v5205_v32 = vadd.f32 %v5193_v14, %v5175_v8  ;;  %v5231_v20 = vadd.f32 %v5223_v5, %v5201_v42  ;;  %v8600_v47 = vld [vmem:[#allocation6 + $0x22c] ss:$16 sps:$4 sm:$0xff]   ;;  %v8613_v59 = vld [vmem:[#allocation6 + $0x280] ss:$16 sps:$4 sm:$0xff]   ;;  %v8622_v63 = vld [vmem:[#allocation6 + $0x2a8] ss:$16 sps:$4 sm:$0xff]  }
0x1444   :  { %v9617_v21 = vmul.f32 %v5249_v54, %v5230_v33  ;;  %v5232_v17 = vadd.f32 %v5211_v16, %v5202_v19  ;;  %v5234_v25 = vadd.f32 %v5219_v53, %v5204_v9  ;;  %v9628_v45 = vmul.f32 %v5241_v51, %v5228_v24  ;;  %v8604_v53 = vld [vmem:[#allocation6 + $0x248] ss:$16 sps:$4 sm:$0xff]   ;;  %v8624_v13 = vld [vmem:[#allocation6 + $0x2ac] ss:$16 sps:$4 sm:$0xff]   ;;  %v8619_v56 = vld [vmem:[#allocation6 + $0x2a0] ss:$16 sps:$4 sm:$0xff]  }
0x1445   :  { %v5233_v26 = vadd.f32 %v5215_v10, %v5203_v48  ;;  %v5235_v27 = vadd.f32 %v5223_v5, %v5205_v32  ;;  %v9624_v31 = vmul.f32 %v5245_v22, %v5229_v60  ;;  %v9636_v44 = vmul.f32 %v5253_v30, %v5231_v20  ;;  %v8618_v10 = vld [vmem:[#allocation6 + $0x28c] ss:$16 sps:$4 sm:$0xff]   ;;  %v8627_v0 = vld [vmem:[#allocation6 + $0x2c4] ss:$16 sps:$4 sm:$0xff]   ;;  %v8625_v2 = vld [vmem:[#allocation6 + $0x2c0] ss:$16 sps:$4 sm:$0xff]  }
0x1446   :  { %v9619_v28 = vmul.f32 %v5241_v51, %v5232_v17  ;;  %v9621_v29 = vmul.f32 %v5249_v54, %v5234_v25  ;;  %v8603_v51 = vld [vmem:[#allocation6 + $0x244] ss:$16 sps:$4 sm:$0xff]   ;;  %v8607_v54 = vld [vmem:[#allocation6 + $0x260] ss:$16 sps:$4 sm:$0xff]   ;;  %v8630_v1 = vld [vmem:[#allocation6 + $0x2cc] ss:$16 sps:$4 sm:$0xff]  }
0x1447   :  { %v9626_v34 = vmul.f32 %v5245_v22, %v5233_v26  ;;  %v9630_v7 = vmul.f32 %v5253_v30, %v5235_v27  ;;  %v8628_v3 = vld [vmem:[#allocation6 + $0x2c8] ss:$16 sps:$4 sm:$0xff]   ;;  %v8633_v23 = vld [vmem:[#allocation6 + $0x2e4] ss:$16 sps:$4 sm:$0xff]   ;;  %v8636_v62 = vld [vmem:[#allocation6 + $0x2ec] ss:$16 sps:$4 sm:$0xff]  }
0x1448   :  { %v5266_v16 = vpack.c.bf16 %v9619_v28, %v9628_v45  ;;  %v8631_v4 = vld [vmem:[#allocation6 + $0x2e0] ss:$16 sps:$4 sm:$0xff]   ;;  %v8634_v5 = vld [vmem:[#allocation6 + $0x2e8] ss:$16 sps:$4 sm:$0xff]   ;;  %v8639_v6 = vld [vmem:[#allocation6 + $0x304] ss:$16 sps:$4 sm:$0xff]  }
0x1449   :  { %v5267_v40 = vpack.c.bf16 %v9626_v34, %v9624_v31  ;;  %v5269_v14 = vpack.c.bf16 %v9630_v7, %v9636_v44  ;;  %v8642_v46 = vld [vmem:[#allocation6 + $0x30c] ss:$16 sps:$4 sm:$0xff]   ;;  %v8637_v11 = vld [vmem:[#allocation6 + $0x300] ss:$16 sps:$4 sm:$0xff]   ;;  %v8640_v8 = vld [vmem:[#allocation6 + $0x308] ss:$16 sps:$4 sm:$0xff]  }
0x144a   :  { %v8645_v33 = vld [vmem:[#allocation6 + $0x324] ss:$16 sps:$4 sm:$0xff]   ;;  %v8648_v42 = vld [vmem:[#allocation6 + $0x32c] ss:$16 sps:$4 sm:$0xff]   ;;  %v8643_v19 = vld [vmem:[#allocation6 + $0x320] ss:$16 sps:$4 sm:$0xff]  }
0x144b   :  { %6092 = vmatprep.mubr.bf16.mxu0 %v5267_v40  ;;  %6178 = vmatprep.mubr.bf16.mxu1 %v5267_v40  ;;  %v8646_v9 = vld [vmem:[#allocation6 + $0x328] ss:$16 sps:$4 sm:$0xff]   ;;  %v8651_v60 = vld [vmem:[#allocation6 + $0x344] ss:$16 sps:$4 sm:$0xff]   ;;  %v8654_v48 = vld [vmem:[#allocation6 + $0x34c] ss:$16 sps:$4 sm:$0xff]  }
0x144c   :  { %6093 = vmatmul.mubr.bf16.vlgmr.msra.gmra.mrb[28].mxu0 %v5266_v16  ;;  %6179 = vmatmul.mubr.bf16.vlgmr.msra.gmra.mrb[44].mxu1 %v5266_v16  ;;  %v8649_v32 = vld [vmem:[#allocation6 + $0x340] ss:$16 sps:$4 sm:$0xff]   ;;  %v8652_v22 = vld [vmem:[#allocation6 + $0x348] ss:$16 sps:$4 sm:$0xff]   ;;  %v8657_v24 = vld [vmem:[#allocation6 + $0x364] ss:$16 sps:$4 sm:$0xff]  }
0x144d   :  { %6104 = vmatpush1.bf16.msra.mxu0 %v8589_v41  ;;  %6190 = vmatpush1.bf16.msra.mxu1 %v8592_v43  ;;  %v8660_v17 = vld [vmem:[#allocation6 + $0x36c] ss:$16 sps:$4 sm:$0xff]   ;;  %v8655_v25 = vld [vmem:[#allocation6 + $0x360] ss:$16 sps:$4 sm:$0xff]   ;;  %v8658_v26 = vld [vmem:[#allocation6 + $0x368] ss:$16 sps:$4 sm:$0xff]  }
0x144e   :  { %6135 = vmatprep.mubr.bf16.mxu0 %v5269_v14  ;;  %6221 = vmatprep.mubr.bf16.mxu1 %v5269_v14  ;;  %v8663_v27 = vld [vmem:[#allocation6 + $0x384] ss:$16 sps:$4 sm:$0xff]   ;;  %v8666_v20 = vld [vmem:[#allocation6 + $0x38c] ss:$16 sps:$4 sm:$0xff]   ;;  %v8661_v30 = vld [vmem:[#allocation6 + $0x380] ss:$16 sps:$4 sm:$0xff]  }
0x144f   :  { %6105 = vmatprep.subr.bf16.mxu0 %v8597_v18  ;;  %6191 = vmatprep.subr.bf16.mxu1 %v8600_v47  ;;  %v8664_v40 = vld [vmem:[#allocation6 + $0x388] ss:$16 sps:$4 sm:$0xff]   ;;  %v8669_v41 = vld [vmem:[#allocation6 + $0x3a4] ss:$16 sps:$4 sm:$0xff]   ;;  %v8672_v43 = vld [vmem:[#allocation6 + $0x3ac] ss:$16 sps:$4 sm:$0xff]  }
0x1450   :  { %v8667_v16 = vld [vmem:[#allocation6 + $0x3a0] ss:$16 sps:$4 sm:$0xff]   ;;  %v8670_v18 = vld [vmem:[#allocation6 + $0x3a8] ss:$16 sps:$4 sm:$0xff]   ;;  %v8675_v47 = vld [vmem:[#allocation6 + $0x3c4] ss:$16 sps:$4 sm:$0xff]  }
0x1451   :  { %6106 = vmatpush1.bf16.msra.mxu0 %v8595_v49  ;;  %6192 = vmatpush1.bf16.msra.mxu1 %v8598_v50  ;;  %v8678_v14 = vld [vmem:[#allocation6 + $0x3cc] ss:$16 sps:$4 sm:$0xff]   ;;  %v8673_v49 = vld [vmem:[#allocation6 + $0x3c0] ss:$16 sps:$4 sm:$0xff]   ;;  %v8676_v50 = vld [vmem:[#allocation6 + $0x3c8] ss:$16 sps:$4 sm:$0xff]  }
0x1452   :  { %6107 = vmatprep.subr.bf16.mxu0 %v8603_v51  ;;  %6193 = vmatprep.subr.bf16.mxu1 %v8606_v52  ;;  %v8681_v51 = vld [vmem:[#allocation6 + $0x3e4] ss:$16 sps:$4 sm:$0xff]   ;;  %v8684_v52 = vld [vmem:[#allocation6 + $0x3ec] ss:$16 sps:$4 sm:$0xff]  }
0x1455   :  { %6108 = vmatpush1.bf16.msra.mxu0 %v8601_v36  ;;  %6194 = vmatpush1.bf16.msra.mxu1 %v8604_v53  ;;  %v8679_v36 = vld [vmem:[#allocation6 + $0x3e0] ss:$16 sps:$4 sm:$0xff]   ;;  %v8682_v53 = vld [vmem:[#allocation6 + $0x3e8] ss:$16 sps:$4 sm:$0xff]  }
0x1456   :  { %6109 = vmatprep.subr.bf16.mxu0 %v8609_v37  ;;  %6195 = vmatprep.subr.bf16.mxu1 %v8612_v12  ;;  %v8687_v37 = vld [vmem:[#allocation7 + $0x4] ss:$16 sps:$4 sm:$0xff]   ;;  %v8690_v12 = vld [vmem:[#allocation7 + $0xc] ss:$16 sps:$4 sm:$0xff]  }
0x1459   :  { %6110 = vmatpush1.bf16.msra.mxu0 %v8607_v54  ;;  %6196 = vmatpush1.bf16.msra.mxu1 %v8610_v55  ;;  %v8685_v54 = vld [vmem:[#allocation7] ss:$16 sps:$4 sm:$0xff]   ;;  %v8688_v55 = vld [vmem:[#allocation7 + $0x8] ss:$16 sps:$4 sm:$0xff]  }
0x145a   :  { %6111 = vmatprep.subr.bf16.mxu0 %v8615_v58  ;;  %6197 = vmatprep.subr.bf16.mxu1 %v8618_v10  ;;  %v5268_v58 = vpack.c.bf16 %v9621_v29, %v9617_v21  ;;  %v8693_v10 = vld [vmem:[#allocation7 + $0x24] ss:$16 sps:$4 sm:$0xff]  }
0x145d   :  { %6112 = vmatpush1.bf16.msra.mxu0 %v8613_v59  ;;  %6198 = vmatpush1.bf16.msra.mxu1 %v8616_v57  ;;  %v8696_v59 = vld [vmem:[#allocation7 + $0x2c] ss:$16 sps:$4 sm:$0xff]   ;;  %v8691_v57 = vld [vmem:[#allocation7 + $0x20] ss:$16 sps:$4 sm:$0xff]  }
0x145e   :  { %6113 = vmatprep.subr.bf16.mxu0 %v8621_v61  ;;  %6199 = vmatprep.subr.bf16.mxu1 %v8624_v13  ;;  %v8694_v61 = vld [vmem:[#allocation7 + $0x28] ss:$16 sps:$4 sm:$0xff]   ;;  %v8699_v13 = vld [vmem:[#allocation7 + $0x44] ss:$16 sps:$4 sm:$0xff]  }
0x1461   :  { %6114 = vmatpush1.bf16.msra.mxu0 %v8619_v56  ;;  %6200 = vmatpush1.bf16.msra.mxu1 %v8622_v63  ;;  %v8702_v56 = vld [vmem:[#allocation7 + $0x4c] ss:$16 sps:$4 sm:$0xff]   ;;  %v8697_v63 = vld [vmem:[#allocation7 + $0x40] ss:$16 sps:$4 sm:$0xff]  }
0x1462   :  { %6115 = vmatprep.subr.bf16.mxu0 %v8627_v0  ;;  %6201 = vmatprep.subr.bf16.mxu1 %v8630_v1  ;;  %v8700_v0 = vld [vmem:[#allocation7 + $0x48] ss:$16 sps:$4 sm:$0xff]   ;;  %v8705_v1 = vld [vmem:[#allocation7 + $0x64] ss:$16 sps:$4 sm:$0xff]  }
0x1465   :  { %6116 = vmatpush1.bf16.msra.mxu0 %v8625_v2  ;;  %6202 = vmatpush1.bf16.msra.mxu1 %v8628_v3  ;;  %v8708_v2 = vld [vmem:[#allocation7 + $0x6c] ss:$16 sps:$4 sm:$0xff]   ;;  %v8703_v3 = vld [vmem:[#allocation7 + $0x60] ss:$16 sps:$4 sm:$0xff]  }
0x1466   :  { %6117 = vmatprep.subr.bf16.mxu0 %v8633_v23  ;;  %6203 = vmatprep.subr.bf16.mxu1 %v8636_v62  ;;  %v8706_v23 = vld [vmem:[#allocation7 + $0x68] ss:$16 sps:$4 sm:$0xff]   ;;  %v8711_v62 = vld [vmem:[#allocation7 + $0x84] ss:$16 sps:$4 sm:$0xff]  }
0x1469   :  { %6118 = vmatpush1.bf16.msra.mxu0 %v8631_v4  ;;  %6204 = vmatpush1.bf16.msra.mxu1 %v8634_v5  ;;  %v8714_v4 = vld [vmem:[#allocation7 + $0x8c] ss:$16 sps:$4 sm:$0xff]   ;;  %v8709_v5 = vld [vmem:[#allocation7 + $0x80] ss:$16 sps:$4 sm:$0xff]  }
0x146a   :  { %6119 = vmatprep.subr.bf16.mxu0 %v8639_v6  ;;  %6205 = vmatprep.subr.bf16.mxu1 %v8642_v46  ;;  %v8712_v6 = vld [vmem:[#allocation7 + $0x88] ss:$16 sps:$4 sm:$0xff]   ;;  %v8717_v46 = vld [vmem:[#allocation7 + $0xa4] ss:$16 sps:$4 sm:$0xff]  }
0x146d   :  { %6120 = vmatpush1.bf16.msra.mxu0 %v8637_v11  ;;  %6206 = vmatpush1.bf16.msra.mxu1 %v8640_v8  ;;  %v8720_v11 = vld [vmem:[#allocation7 + $0xac] ss:$16 sps:$4 sm:$0xff]   ;;  %v8715_v8 = vld [vmem:[#allocation7 + $0xa0] ss:$16 sps:$4 sm:$0xff]  }
0x146e   :  { %6121 = vmatprep.subr.bf16.mxu0 %v8645_v33  ;;  %6207 = vmatprep.subr.bf16.mxu1 %v8648_v42  ;;  %v8718_v33 = vld [vmem:[#allocation7 + $0xa8] ss:$16 sps:$4 sm:$0xff]   ;;  %v8723_v42 = vld [vmem:[#allocation7 + $0xc4] ss:$16 sps:$4 sm:$0xff]  }
0x1471   :  { %6122 = vmatpush1.bf16.msra.mxu0 %v8643_v19  ;;  %6208 = vmatpush1.bf16.msra.mxu1 %v8646_v9  ;;  %v8726_v19 = vld [vmem:[#allocation7 + $0xcc] ss:$16 sps:$4 sm:$0xff]   ;;  %v8721_v9 = vld [vmem:[#allocation7 + $0xc0] ss:$16 sps:$4 sm:$0xff]  }
0x1472   :  { %6123 = vmatprep.subr.bf16.mxu0 %v8651_v60  ;;  %6209 = vmatprep.subr.bf16.mxu1 %v8654_v48  ;;  %v8724_v60 = vld [vmem:[#allocation7 + $0xc8] ss:$16 sps:$4 sm:$0xff]   ;;  %v8729_v48 = vld [vmem:[#allocation7 + $0xe4] ss:$16 sps:$4 sm:$0xff]  }
0x1475   :  { %6124 = vmatpush1.bf16.msra.mxu0 %v8649_v32  ;;  %6210 = vmatpush1.bf16.msra.mxu1 %v8652_v22  ;;  %v8732_v32 = vld [vmem:[#allocation7 + $0xec] ss:$16 sps:$4 sm:$0xff]   ;;  %v8727_v22 = vld [vmem:[#allocation7 + $0xe0] ss:$16 sps:$4 sm:$0xff]  }
0x1476   :  { %6125 = vmatprep.subr.bf16.mxu0 %v8657_v24  ;;  %6211 = vmatprep.subr.bf16.mxu1 %v8660_v17  ;;  %v8730_v24 = vld [vmem:[#allocation7 + $0xe8] ss:$16 sps:$4 sm:$0xff]   ;;  %v8735_v17 = vld [vmem:[#allocation7 + $0x104] ss:$16 sps:$4 sm:$0xff]  }
0x1479   :  { %6126 = vmatpush1.bf16.msra.mxu0 %v8655_v25  ;;  %6212 = vmatpush1.bf16.msra.mxu1 %v8658_v26  ;;  %v8738_v25 = vld [vmem:[#allocation7 + $0x10c] ss:$16 sps:$4 sm:$0xff]   ;;  %v8733_v26 = vld [vmem:[#allocation7 + $0x100] ss:$16 sps:$4 sm:$0xff]  }
0x147a   :  { %6127 = vmatprep.subr.bf16.mxu0 %v8663_v27  ;;  %6213 = vmatprep.subr.bf16.mxu1 %v8666_v20  ;;  %v8736_v27 = vld [vmem:[#allocation7 + $0x108] ss:$16 sps:$4 sm:$0xff]   ;;  %v8741_v20 = vld [vmem:[#allocation7 + $0x124] ss:$16 sps:$4 sm:$0xff]  }
0x147d   :  { %6128 = vmatpush1.bf16.msra.mxu0 %v8661_v30  ;;  %6214 = vmatpush1.bf16.msra.mxu1 %v8664_v40  ;;  %v8744_v30 = vld [vmem:[#allocation7 + $0x12c] ss:$16 sps:$4 sm:$0xff]   ;;  %v8739_v40 = vld [vmem:[#allocation7 + $0x120] ss:$16 sps:$4 sm:$0xff]  }
0x147e   :  { %6129 = vmatprep.subr.bf16.mxu0 %v8669_v41  ;;  %6215 = vmatprep.subr.bf16.mxu1 %v8672_v43  ;;  %v8742_v41 = vld [vmem:[#allocation7 + $0x128] ss:$16 sps:$4 sm:$0xff]   ;;  %v8747_v43 = vld [vmem:[#allocation7 + $0x144] ss:$16 sps:$4 sm:$0xff]  }
0x1481   :  { %6130 = vmatpush1.bf16.msra.mxu0 %v8667_v16  ;;  %6216 = vmatpush1.bf16.msra.mxu1 %v8670_v18  ;;  %v8750_v16 = vld [vmem:[#allocation7 + $0x14c] ss:$16 sps:$4 sm:$0xff]   ;;  %v8745_v18 = vld [vmem:[#allocation7 + $0x140] ss:$16 sps:$4 sm:$0xff]  }
0x1482   :  { %6131 = vmatprep.subr.bf16.mxu0 %v8675_v47  ;;  %6217 = vmatprep.subr.bf16.mxu1 %v8678_v14  ;;  %v8748_v47 = vld [vmem:[#allocation7 + $0x148] ss:$16 sps:$4 sm:$0xff]   ;;  %v8753_v14 = vld [vmem:[#allocation7 + $0x164] ss:$16 sps:$4 sm:$0xff]  }
0x1485   :  { %6132 = vmatpush1.bf16.msra.mxu0 %v8673_v49  ;;  %6218 = vmatpush1.bf16.msra.mxu1 %v8676_v50  ;;  %v8756_v49 = vld [vmem:[#allocation7 + $0x16c] ss:$16 sps:$4 sm:$0xff]   ;;  %v8751_v50 = vld [vmem:[#allocation7 + $0x160] ss:$16 sps:$4 sm:$0xff]  }
0x1486   :  { %6133 = vmatprep.subr.bf16.mxu0 %v8681_v51  ;;  %6219 = vmatprep.subr.bf16.mxu1 %v8684_v52  ;;  %v8754_v51 = vld [vmem:[#allocation7 + $0x168] ss:$16 sps:$4 sm:$0xff]   ;;  %v8759_v52 = vld [vmem:[#allocation7 + $0x184] ss:$16 sps:$4 sm:$0xff]  }
0x1489   :  { %6134 = vmatpush1.bf16.msra.mxu0 %v8679_v36  ;;  %6220 = vmatpush1.bf16.msra.mxu1 %v8682_v53  ;;  %v8762_v36 = vld [vmem:[#allocation7 + $0x18c] ss:$16 sps:$4 sm:$0xff]   ;;  %v8757_v53 = vld [vmem:[#allocation7 + $0x180] ss:$16 sps:$4 sm:$0xff]  }
0x148a   :  { %7034 = vmatprep.subr.bf16.mxu0 %v8687_v37  ;;  %7120 = vmatprep.subr.bf16.mxu1 %v8690_v12  ;;  %v8760_v37 = vld [vmem:[#allocation7 + $0x188] ss:$16 sps:$4 sm:$0xff]   ;;  %v8765_v12 = vld [vmem:[#allocation7 + $0x1a4] ss:$16 sps:$4 sm:$0xff]  }
0x148c   :  { %6136 = vmatmul.mubr.bf16.vlgmr.msra.gmra.mrb[28].mxu0 %v5268_v58  ;;  %6222 = vmatmul.mubr.bf16.vlgmr.msra.gmra.mrb[44].mxu1 %v5268_v58  ;;  %v8766_v58 = vld [vmem:[#allocation7 + $0x1a8] ss:$16 sps:$4 sm:$0xff]  }
0x148d   :  { %7035 = vmatpush1.bf16.msra.mxu0 %v8685_v54  ;;  %7121 = vmatpush1.bf16.msra.mxu1 %v8688_v55  ;;  %v8768_v54 = vld [vmem:[#allocation7 + $0x1ac] ss:$16 sps:$4 sm:$0xff]   ;;  %v8763_v55 = vld [vmem:[#allocation7 + $0x1a0] ss:$16 sps:$4 sm:$0xff]  }
0x148e   :  { %7036 = vmatprep.subr.bf16.mxu0 %v8693_v10  ;;  %7122 = vmatprep.subr.bf16.mxu1 %v8696_v59  ;;  %v8771_v10 = vld [vmem:[#allocation7 + $0x1c4] ss:$16 sps:$4 sm:$0xff]   ;;  %v8774_v59 = vld [vmem:[#allocation7 + $0x1cc] ss:$16 sps:$4 sm:$0xff]  }
0x1491   :  { %7037 = vmatpush1.bf16.msra.mxu0 %v8691_v57  ;;  %7123 = vmatpush1.bf16.msra.mxu1 %v8694_v61  ;;  %v8769_v57 = vld [vmem:[#allocation7 + $0x1c0] ss:$16 sps:$4 sm:$0xff]   ;;  %v8772_v61 = vld [vmem:[#allocation7 + $0x1c8] ss:$16 sps:$4 sm:$0xff]  }
0x1492   :  { %7038 = vmatprep.subr.bf16.mxu0 %v8699_v13  ;;  %7124 = vmatprep.subr.bf16.mxu1 %v8702_v56  ;;  %v8777_v13 = vld [vmem:[#allocation7 + $0x1e4] ss:$16 sps:$4 sm:$0xff]   ;;  %v8780_v56 = vld [vmem:[#allocation7 + $0x1ec] ss:$16 sps:$4 sm:$0xff]  }
0x1495   :  { %7039 = vmatpush1.bf16.msra.mxu0 %v8697_v63  ;;  %7125 = vmatpush1.bf16.msra.mxu1 %v8700_v0  ;;  %v8775_v63 = vld [vmem:[#allocation7 + $0x1e0] ss:$16 sps:$4 sm:$0xff]   ;;  %v8778_v0 = vld [vmem:[#allocation7 + $0x1e8] ss:$16 sps:$4 sm:$0xff]  }
0x1496   :  { %7040 = vmatprep.subr.bf16.mxu0 %v8705_v1  ;;  %7126 = vmatprep.subr.bf16.mxu1 %v8708_v2  ;;  %v8783_v1 = vld [vmem:[#allocation7 + $0x204] ss:$16 sps:$4 sm:$0xff]   ;;  %v8786_v2 = vld [vmem:[#allocation7 + $0x20c] ss:$16 sps:$4 sm:$0xff]  }
0x1499   :  { %7041 = vmatpush1.bf16.msra.mxu0 %v8703_v3  ;;  %7127 = vmatpush1.bf16.msra.mxu1 %v8706_v23  ;;  %v5398_v3 = vld [vmem:[%s9713_s7] sm:$0xf] }
0x149a   :  { %7042 = vmatprep.subr.bf16.mxu0 %v8711_v62  ;;  %7128 = vmatprep.subr.bf16.mxu1 %v8714_v4  ;;  %v5403_v23 = vrot.slane %v5398_v3, %v9287_v15  ;;  %v5411_v62 = vrot.slane %v5398_v3, %v9565_v35  ;;  %v5407_v4 = vrot.slane %v5398_v3, %v9571_v38 }
0x149d   :  { %7043 = vmatpush1.bf16.msra.mxu0 %v8709_v5  ;;  %7129 = vmatpush1.bf16.msra.mxu1 %v8712_v6  ;;  %v5415_v5 = vrot.slane %v5398_v3, %v9574_v39  ;;  %v8816_v3 = vld [vmem:[#allocation7 + $0x2ac] ss:$16 sps:$4 sm:$0xff]  }
0x149e   :  { %7044 = vmatprep.subr.bf16.mxu0 %v8717_v46  ;;  %7130 = vmatprep.subr.bf16.mxu1 %v8720_v11 }
0x14a1   :  { %7045 = vmatpush1.bf16.msra.mxu0 %v8715_v8  ;;  %7131 = vmatpush1.bf16.msra.mxu1 %v8718_v33 }
0x14a2   :  { %7046 = vmatprep.subr.bf16.mxu0 %v8723_v42  ;;  %7132 = vmatprep.subr.bf16.mxu1 %v8726_v19 }
0x14a5   :  { %7047 = vmatpush1.bf16.msra.mxu0 %v8721_v9  ;;  %7133 = vmatpush1.bf16.msra.mxu1 %v8724_v60 }
0x14a6   :  { %7048 = vmatprep.subr.bf16.mxu0 %v8729_v48  ;;  %7134 = vmatprep.subr.bf16.mxu1 %v8732_v32 }
0x14a9   :  { %7049 = vmatpush1.bf16.msra.mxu0 %v8727_v22  ;;  %7135 = vmatpush1.bf16.msra.mxu1 %v8730_v24 }
0x14aa   :  { %7050 = vmatprep.subr.bf16.mxu0 %v8735_v17  ;;  %7136 = vmatprep.subr.bf16.mxu1 %v8738_v25 }
0x14ad   :  { %7051 = vmatpush1.bf16.msra.mxu0 %v8733_v26  ;;  %7137 = vmatpush1.bf16.msra.mxu1 %v8736_v27 }
0x14ae   :  { %7052 = vmatprep.subr.bf16.mxu0 %v8741_v20  ;;  %7138 = vmatprep.subr.bf16.mxu1 %v8744_v30 }
0x14b1   :  { %7053 = vmatpush1.bf16.msra.mxu0 %v8739_v40  ;;  %7139 = vmatpush1.bf16.msra.mxu1 %v8742_v41 }
0x14b2   :  { %7054 = vmatprep.subr.bf16.mxu0 %v8747_v43  ;;  %7140 = vmatprep.subr.bf16.mxu1 %v8750_v16 }
0x14b5   :  { %7055 = vmatpush1.bf16.msra.mxu0 %v8745_v18  ;;  %7141 = vmatpush1.bf16.msra.mxu1 %v8748_v47 }
0x14b6   :  { %7056 = vmatprep.subr.bf16.mxu0 %v8753_v14  ;;  %7142 = vmatprep.subr.bf16.mxu1 %v8756_v49 }
0x14b9   :  { %7057 = vmatpush1.bf16.msra.mxu0 %v8751_v50  ;;  %7143 = vmatpush1.bf16.msra.mxu1 %v8754_v51  ;;  %v8781_v51 = vld [vmem:[#allocation7 + $0x200] ss:$16 sps:$4 sm:$0xff]  }
0x14ba   :  { %7058 = vmatprep.subr.bf16.mxu0 %v8759_v52  ;;  %7144 = vmatprep.subr.bf16.mxu1 %v8762_v36  ;;  %v8784_v52 = vld [vmem:[#allocation7 + $0x208] ss:$16 sps:$4 sm:$0xff]   ;;  %v8789_v36 = vld [vmem:[#allocation7 + $0x224] ss:$16 sps:$4 sm:$0xff]  }
0x14bd   :  { %7059 = vmatpush1.bf16.msra.mxu0 %v8757_v53  ;;  %7145 = vmatpush1.bf16.msra.mxu1 %v8760_v37  ;;  %v8792_v53 = vld [vmem:[#allocation7 + $0x22c] ss:$16 sps:$4 sm:$0xff]   ;;  %v8787_v37 = vld [vmem:[#allocation7 + $0x220] ss:$16 sps:$4 sm:$0xff]  }
0x14be   :  { %7060 = vmatprep.subr.bf16.mxu0 %v8765_v12  ;;  %7146 = vmatprep.subr.bf16.mxu1 %v8768_v54  ;;  %v8790_v12 = vld [vmem:[#allocation7 + $0x228] ss:$16 sps:$4 sm:$0xff]   ;;  %v8795_v54 = vld [vmem:[#allocation7 + $0x244] ss:$16 sps:$4 sm:$0xff]  }
0x14c1   :  { %7061 = vmatpush1.bf16.msra.mxu0 %v8763_v55  ;;  %7147 = vmatpush1.bf16.msra.mxu1 %v8766_v58  ;;  %v8798_v55 = vld [vmem:[#allocation7 + $0x24c] ss:$16 sps:$4 sm:$0xff]   ;;  %v8793_v58 = vld [vmem:[#allocation7 + $0x240] ss:$16 sps:$4 sm:$0xff]  }
0x14c2   :  { %7062 = vmatprep.subr.bf16.mxu0 %v8771_v10  ;;  %7148 = vmatprep.subr.bf16.mxu1 %v8774_v59  ;;  %v8796_v10 = vld [vmem:[#allocation7 + $0x248] ss:$16 sps:$4 sm:$0xff]   ;;  %v8801_v59 = vld [vmem:[#allocation7 + $0x264] ss:$16 sps:$4 sm:$0xff]  }
0x14c5   :  { %7063 = vmatpush1.bf16.msra.mxu0 %v8769_v57  ;;  %7149 = vmatpush1.bf16.msra.mxu1 %v8772_v61  ;;  %v8804_v57 = vld [vmem:[#allocation7 + $0x26c] ss:$16 sps:$4 sm:$0xff]   ;;  %v8799_v61 = vld [vmem:[#allocation7 + $0x260] ss:$16 sps:$4 sm:$0xff]  }
0x14c6   :  { %7064 = vmatprep.subr.bf16.mxu0 %v8777_v13  ;;  %7150 = vmatprep.subr.bf16.mxu1 %v8780_v56  ;;  %v8802_v13 = vld [vmem:[#allocation7 + $0x268] ss:$16 sps:$4 sm:$0xff]   ;;  %v8807_v56 = vld [vmem:[#allocation7 + $0x284] ss:$16 sps:$4 sm:$0xff]  }
0x14c9   :  { %7065 = vmatpush1.bf16.msra.mxu0 %v8775_v63  ;;  %7151 = vmatpush1.bf16.msra.mxu1 %v8778_v0  ;;  %v8810_v63 = vld [vmem:[#allocation7 + $0x28c] ss:$16 sps:$4 sm:$0xff]   ;;  %v8805_v0 = vld [vmem:[#allocation7 + $0x280] ss:$16 sps:$4 sm:$0xff]  }
0x14ca   :  { %7077 = vmatprep.subr.bf16.mxu0 %v8783_v1  ;;  %7163 = vmatprep.subr.bf16.mxu1 %v8786_v2  ;;  %v8808_v1 = vld [vmem:[#allocation7 + $0x288] ss:$16 sps:$4 sm:$0xff]   ;;  %v8813_v2 = vld [vmem:[#allocation7 + $0x2a4] ss:$16 sps:$4 sm:$0xff]  }
0x155f   :  { %v6137_v6 = vpop.f32.mrb[28].mxu0  ;;  %v6223_v46 = vpop.f32.mrb[44].mxu1 }
0x1560   :  { %v8185_v11 = vadd.f32 %v6137_v6, %v5403_v23  ;;  %v8189_v8 = vadd.f32 %v6223_v46, %v5411_v62  ;;  %v6139_v33 = vpop.f32.mrb[29].mxu0  ;;  %v6225_v42 = vpop.f32.mrb[45].mxu1  ;;  %v8817_v6 = vld [vmem:[#allocation7 + $0x2c0] ss:$16 sps:$4 sm:$0xff]   ;;  %v8820_v46 = vld [vmem:[#allocation7 + $0x2c8] ss:$16 sps:$4 sm:$0xff]  }
0x1561   :  { %v8186_v19 = vadd.f32 %v6139_v33, %v5407_v4  ;;  %v8190_v9 = vadd.f32 %v6225_v42, %v5415_v5  ;;  %v6141_v60 = vpop.f32.mrb[30].mxu0  ;;  %v6227_v48 = vpop.f32.mrb[46].mxu1  ;;  %v8823_v33 = vld [vmem:[#allocation7 + $0x2e0] ss:$16 sps:$4 sm:$0xff]   ;;  %v8826_v42 = vld [vmem:[#allocation7 + $0x2e8] ss:$16 sps:$4 sm:$0xff]  }
0x1562   :  { %v8187_v32 = vadd.f32 %v6141_v60, %v5403_v23  ;;  %v8191_v22 = vadd.f32 %v6227_v48, %v5411_v62  ;;  %v6143_v24 = vpop.f32.mrb[31].mxu0  ;;  %v6229_v17 = vpop.f32.mrb[47].mxu1  ;;  %v6232_v27 = vmax.f32 %v8185_v11, 0.0  ;;  %v6234_v20 = vmax.f32 %v8189_v8, 0.0  ;;  %v8811_v23 = vld [vmem:[#allocation7 + $0x2a0] ss:$16 sps:$4 sm:$0xff]  }
0x1563   :  { %v8188_v25 = vadd.f32 %v6143_v24, %v5407_v4  ;;  %v8192_v26 = vadd.f32 %v6229_v17, %v5415_v5  ;;  %v6233_v41 = vmax.f32 %v8186_v19, 0.0  ;;  %v6235_v43 = vmax.f32 %v8190_v9, 0.0  ;;  %v8814_v62 = vld [vmem:[#allocation7 + $0x2a8] ss:$16 sps:$4 sm:$0xff]   ;;  %v8819_v4 = vld [vmem:[#allocation7 + $0x2c4] ss:$16 sps:$4 sm:$0xff]  }
0x1564   :  { %v6236_v30 = vmax.f32 %v8187_v32, 0.0  ;;  %v6238_v40 = vmax.f32 %v8191_v22, 0.0  ;;  %v8822_v5 = vld [vmem:[#allocation7 + $0x2cc] ss:$16 sps:$4 sm:$0xff]   ;;  %v8825_v11 = vld [vmem:[#allocation7 + $0x2e4] ss:$16 sps:$4 sm:$0xff]  }
0x1565   :  { %v6237_v16 = vmax.f32 %v8188_v25, 0.0  ;;  %v6239_v18 = vmax.f32 %v8192_v26, 0.0  ;;  %v8828_v8 = vld [vmem:[#allocation7 + $0x2ec] ss:$16 sps:$4 sm:$0xff]   ;;  %v8831_v19 = vld [vmem:[#allocation7 + $0x304] ss:$16 sps:$4 sm:$0xff]  }
0x1566   :  { %v6240_v47 = vpack.c.bf16 %v6236_v30, %v6232_v27  ;;  %v9649_v14 = vpack.c.bf16 %v6238_v40, %v6234_v20  ;;  %v8834_v9 = vld [vmem:[#allocation7 + $0x30c] ss:$16 sps:$4 sm:$0xff]   ;;  %v8829_v60 = vld [vmem:[#allocation7 + $0x300] ss:$16 sps:$4 sm:$0xff]   ;;  %v8832_v48 = vld [vmem:[#allocation7 + $0x308] ss:$16 sps:$4 sm:$0xff]  }
0x1567   :  { %v6241_v49 = vpack.c.bf16 %v6237_v16, %v6233_v41  ;;  %v6243_v50 = vpack.c.bf16 %v6239_v18, %v6235_v43  ;;  %v8837_v32 = vld [vmem:[#allocation7 + $0x324] ss:$16 sps:$4 sm:$0xff]   ;;  %v8840_v22 = vld [vmem:[#allocation7 + $0x32c] ss:$16 sps:$4 sm:$0xff]   ;;  %v8835_v24 = vld [vmem:[#allocation7 + $0x320] ss:$16 sps:$4 sm:$0xff]  }
0x1568   :  { %v8838_v17 = vld [vmem:[#allocation7 + $0x328] ss:$16 sps:$4 sm:$0xff]   ;;  %v8843_v25 = vld [vmem:[#allocation7 + $0x344] ss:$16 sps:$4 sm:$0xff]   ;;  %v8846_v26 = vld [vmem:[#allocation7 + $0x34c] ss:$16 sps:$4 sm:$0xff]  }
0x1569   :  { %7066 = vmatprep.mubr.bf16.mxu0 %v6241_v49  ;;  %7152 = vmatprep.mubr.bf16.mxu1 %v6241_v49  ;;  %v8841_v27 = vld [vmem:[#allocation7 + $0x340] ss:$16 sps:$4 sm:$0xff]   ;;  %v8844_v20 = vld [vmem:[#allocation7 + $0x348] ss:$16 sps:$4 sm:$0xff]   ;;  %v8849_v30 = vld [vmem:[#allocation7 + $0x364] ss:$16 sps:$4 sm:$0xff]  }
0x156a   :  { %7067 = vmatmul.mubr.bf16.vlgmr.msra.gmra.mrb[32].mxu0 %v6240_v47  ;;  %7153 = vmatmul.mubr.bf16.vlgmr.msra.gmra.mrb[48].mxu1 %v6240_v47  ;;  %v8852_v40 = vld [vmem:[#allocation7 + $0x36c] ss:$16 sps:$4 sm:$0xff]   ;;  %v8847_v41 = vld [vmem:[#allocation7 + $0x360] ss:$16 sps:$4 sm:$0xff]   ;;  %v8850_v43 = vld [vmem:[#allocation7 + $0x368] ss:$16 sps:$4 sm:$0xff]  }
0x156b   :  { %7078 = vmatpush1.bf16.msra.mxu0 %v8781_v51  ;;  %7164 = vmatpush1.bf16.msra.mxu1 %v8784_v52  ;;  %v8855_v16 = vld [vmem:[#allocation7 + $0x384] ss:$16 sps:$4 sm:$0xff]   ;;  %v8858_v18 = vld [vmem:[#allocation7 + $0x38c] ss:$16 sps:$4 sm:$0xff]   ;;  %v8853_v47 = vld [vmem:[#allocation7 + $0x380] ss:$16 sps:$4 sm:$0xff]  }
0x156c   :  { %7109 = vmatprep.mubr.bf16.mxu0 %v6243_v50  ;;  %7195 = vmatprep.mubr.bf16.mxu1 %v6243_v50  ;;  %v8856_v49 = vld [vmem:[#allocation7 + $0x388] ss:$16 sps:$4 sm:$0xff]   ;;  %v8861_v50 = vld [vmem:[#allocation7 + $0x3a4] ss:$16 sps:$4 sm:$0xff]   ;;  %v8864_v51 = vld [vmem:[#allocation7 + $0x3ac] ss:$16 sps:$4 sm:$0xff]  }
0x156d   :  { %7079 = vmatprep.subr.bf16.mxu0 %v8789_v36  ;;  %7165 = vmatprep.subr.bf16.mxu1 %v8792_v53  ;;  %v8859_v52 = vld [vmem:[#allocation7 + $0x3a0] ss:$16 sps:$4 sm:$0xff]   ;;  %v8862_v36 = vld [vmem:[#allocation7 + $0x3a8] ss:$16 sps:$4 sm:$0xff]   ;;  %v8867_v53 = vld [vmem:[#allocation7 + $0x3c4] ss:$16 sps:$4 sm:$0xff]  }
0x156f   :  { %7080 = vmatpush1.bf16.msra.mxu0 %v8787_v37  ;;  %7166 = vmatpush1.bf16.msra.mxu1 %v8790_v12  ;;  %v8870_v37 = vld [vmem:[#allocation7 + $0x3cc] ss:$16 sps:$4 sm:$0xff]   ;;  %v8865_v12 = vld [vmem:[#allocation7 + $0x3c0] ss:$16 sps:$4 sm:$0xff]  }
0x1570   :  { %7081 = vmatprep.subr.bf16.mxu0 %v8795_v54  ;;  %7167 = vmatprep.subr.bf16.mxu1 %v8798_v55  ;;  %v8868_v54 = vld [vmem:[#allocation7 + $0x3c8] ss:$16 sps:$4 sm:$0xff]   ;;  %v8873_v55 = vld [vmem:[#allocation7 + $0x3e4] ss:$16 sps:$4 sm:$0xff]  }
0x1573   :  { %7082 = vmatpush1.bf16.msra.mxu0 %v8793_v58  ;;  %7168 = vmatpush1.bf16.msra.mxu1 %v8796_v10  ;;  %v8876_v58 = vld [vmem:[#allocation7 + $0x3ec] ss:$16 sps:$4 sm:$0xff]   ;;  %v8871_v10 = vld [vmem:[#allocation7 + $0x3e0] ss:$16 sps:$4 sm:$0xff]  }
0x1574   :  { %7083 = vmatprep.subr.bf16.mxu0 %v8801_v59  ;;  %7169 = vmatprep.subr.bf16.mxu1 %v8804_v57  ;;  %v8874_v59 = vld [vmem:[#allocation7 + $0x3e8] ss:$16 sps:$4 sm:$0xff]   ;;  %v6372_v57 = vld [vmem:[%s9715_s9] sm:$0xf] }
0x1577   :  { %7084 = vmatpush1.bf16.msra.mxu0 %v8799_v61  ;;  %7170 = vmatpush1.bf16.msra.mxu1 %v8802_v13  ;;  %v6377_v61 = vrot.slane %v6372_v57, %v9287_v15  ;;  %v7214_v13 = vld [vmem:[%s9717_s11] sm:$0xf] }
0x1578   :  { %7085 = vmatprep.subr.bf16.mxu0 %v8807_v56  ;;  %7171 = vmatprep.subr.bf16.mxu1 %v8810_v63  ;;  %v6385_v56 = vrot.slane %v6372_v57, %v9565_v35  ;;  %v7244_v63 = vld [vmem:[%s9716_s10] sm:$0xf] }
0x157b   :  { %7086 = vmatpush1.bf16.msra.mxu0 %v8805_v0  ;;  %7172 = vmatpush1.bf16.msra.mxu1 %v8808_v1  ;;  %v6381_v0 = vrot.slane %v6372_v57, %v9571_v38 }
0x157c   :  { %7087 = vmatprep.subr.bf16.mxu0 %v8813_v2  ;;  %7173 = vmatprep.subr.bf16.mxu1 %v8816_v3  ;;  %v7219_v2 = vrot.slane %v7214_v13, %v9287_v15 }
0x157f   :  { %7088 = vmatpush1.bf16.msra.mxu0 %v8811_v23  ;;  %7174 = vmatpush1.bf16.msra.mxu1 %v8814_v62  ;;  %v7227_v23 = vrot.slane %v7214_v13, %v9565_v35  ;;  %v7223_v62 = vrot.slane %v7214_v13, %v9571_v38 }
0x1580   :  { %7089 = vmatprep.subr.bf16.mxu0 %v8819_v4  ;;  %7175 = vmatprep.subr.bf16.mxu1 %v8822_v5  ;;  %v7231_v4 = vrot.slane %v7214_v13, %v9574_v39 }
0x1583   :  { %7090 = vmatpush1.bf16.msra.mxu0 %v8817_v6  ;;  %7176 = vmatpush1.bf16.msra.mxu1 %v8820_v46  ;;  %v7249_v6 = vrot.slane %v7244_v63, %v9287_v15 }
0x1584   :  { %7091 = vmatprep.subr.bf16.mxu0 %v8825_v11  ;;  %7177 = vmatprep.subr.bf16.mxu1 %v8828_v8  ;;  %v7257_v11 = vrot.slane %v7244_v63, %v9565_v35 }
0x1587   :  { %7092 = vmatpush1.bf16.msra.mxu0 %v8823_v33  ;;  %7178 = vmatpush1.bf16.msra.mxu1 %v8826_v42 }
0x1588   :  { %7093 = vmatprep.subr.bf16.mxu0 %v8831_v19  ;;  %7179 = vmatprep.subr.bf16.mxu1 %v8834_v9  ;;  %v7253_v19 = vrot.slane %v7244_v63, %v9571_v38 }
0x158b   :  { %7094 = vmatpush1.bf16.msra.mxu0 %v8829_v60  ;;  %7180 = vmatpush1.bf16.msra.mxu1 %v8832_v48  ;;  %v7261_v60 = vrot.slane %v7244_v63, %v9574_v39 }
0x158c   :  { %7095 = vmatprep.subr.bf16.mxu0 %v8837_v32  ;;  %7181 = vmatprep.subr.bf16.mxu1 %v8840_v22 }
0x158f   :  { %7096 = vmatpush1.bf16.msra.mxu0 %v8835_v24  ;;  %7182 = vmatpush1.bf16.msra.mxu1 %v8838_v17 }
0x1590   :  { %7097 = vmatprep.subr.bf16.mxu0 %v8843_v25  ;;  %7183 = vmatprep.subr.bf16.mxu1 %v8846_v26 }
0x1593   :  { %7098 = vmatpush1.bf16.msra.mxu0 %v8841_v27  ;;  %7184 = vmatpush1.bf16.msra.mxu1 %v8844_v20 }
0x1594   :  { %7099 = vmatprep.subr.bf16.mxu0 %v8849_v30  ;;  %7185 = vmatprep.subr.bf16.mxu1 %v8852_v40 }
0x1597   :  { %7100 = vmatpush1.bf16.msra.mxu0 %v8847_v41  ;;  %7186 = vmatpush1.bf16.msra.mxu1 %v8850_v43 }
0x1598   :  { %7101 = vmatprep.subr.bf16.mxu0 %v8855_v16  ;;  %7187 = vmatprep.subr.bf16.mxu1 %v8858_v18 }
0x159b   :  { %7102 = vmatpush1.bf16.msra.mxu0 %v8853_v47  ;;  %7188 = vmatpush1.bf16.msra.mxu1 %v8856_v49 }
0x159c   :  { %7103 = vmatprep.subr.bf16.mxu0 %v8861_v50  ;;  %7189 = vmatprep.subr.bf16.mxu1 %v8864_v51 }
0x159f   :  { %7104 = vmatpush1.bf16.msra.mxu0 %v8859_v52  ;;  %7190 = vmatpush1.bf16.msra.mxu1 %v8862_v36 }
0x15a0   :  { %7105 = vmatprep.subr.bf16.mxu0 %v8867_v53  ;;  %7191 = vmatprep.subr.bf16.mxu1 %v8870_v37 }
0x15a3   :  { %7106 = vmatpush1.bf16.msra.mxu0 %v8865_v12  ;;  %7192 = vmatpush1.bf16.msra.mxu1 %v8868_v54 }
0x15a4   :  { %7107 = vmatprep.subr.bf16.mxu0 %v8873_v55  ;;  %7193 = vmatprep.subr.bf16.mxu1 %v8876_v58 }
0x15a7   :  { %7108 = vmatpush1.bf16.msra.mxu0 %v8871_v10  ;;  %7194 = vmatpush1.bf16.msra.mxu1 %v8874_v59 }
0x15aa   :  { %7110 = vmatmul.mubr.bf16.vlgmr.msra.gmra.mrb[32].mxu0 %v9649_v14  ;;  %7196 = vmatmul.mubr.bf16.vlgmr.msra.gmra.mrb[48].mxu1 %v9649_v14  ;;  %v6389_v14 = vrot.slane %v6372_v57, %v9574_v39 }
0x167d   :  { %v7111_v1 = vpop.f32.mrb[32].mxu0  ;;  %v7197_v3 = vpop.f32.mrb[48].mxu1 }
0x167e   :  { %v8193_v5 = vadd.f32 %v7111_v1, %v6377_v61  ;;  %v8197_v46 = vadd.f32 %v7197_v3, %v6385_v56  ;;  %v7113_v8 = vpop.f32.mrb[33].mxu0  ;;  %v7199_v33 = vpop.f32.mrb[49].mxu1 }
0x167f   :  { %v8194_v42 = vadd.f32 %v7113_v8, %v6381_v0  ;;  %v8198_v9 = vadd.f32 %v7199_v33, %v6389_v14  ;;  %v7115_v48 = vpop.f32.mrb[34].mxu0  ;;  %v7201_v32 = vpop.f32.mrb[50].mxu1 }
0x1680   :  { %v7206_v22 = vadd.f32 %v8193_v5, %v9628_v45  ;;  %v7208_v24 = vadd.f32 %v8197_v46, %v9617_v21  ;;  %v8195_v17 = vadd.f32 %v7115_v48, %v6377_v61  ;;  %v8199_v25 = vadd.f32 %v7201_v32, %v6385_v56  ;;  %v7117_v15 = vpop.f32.mrb[35].mxu0  ;;  %v7203_v26 = vpop.f32.mrb[51].mxu1 }
0x1681   :  { %v7207_v35 = vadd.f32 %v8194_v42, %v9624_v31  ;;  %v7209_v27 = vadd.f32 %v8198_v9, %v9636_v44  ;;  %v8196_v20 = vadd.f32 %v7117_v15, %v6381_v0  ;;  %v8200_v30 = vadd.f32 %v7203_v26, %v6389_v14 }
0x1682   :  { %v7236_v38 = vadd.f32 %v7219_v2, %v7206_v22  ;;  %v7238_v40 = vadd.f32 %v7227_v23, %v7208_v24  ;;  %v7210_v39 = vadd.f32 %v8195_v17, %v9619_v28  ;;  %v7212_v41 = vadd.f32 %v8199_v25, %v9621_v29 }
0x1683   :  { %v7237_v43 = vadd.f32 %v7223_v62, %v7207_v35  ;;  %v7239_v45 = vadd.f32 %v7231_v4, %v7209_v27  ;;  %v7211_v21 = vadd.f32 %v8196_v20, %v9626_v34  ;;  %v7213_v16 = vadd.f32 %v8200_v30, %v9630_v7 }
0x1684   :  { %v7266_v18 = vmul.f32 %v7249_v6, %v7236_v38  ;;  %v7268_v47 = vmul.f32 %v7257_v11, %v7238_v40  ;;  %v7240_v49 = vadd.f32 %v7219_v2, %v7210_v39  ;;  %v7242_v31 = vadd.f32 %v7227_v23, %v7212_v41 }
0x1685   :  { %v7267_v50 = vmul.f32 %v7253_v19, %v7237_v43  ;;  %v7269_v44 = vmul.f32 %v7261_v60, %v7239_v45  ;;  %v7241_v51 = vadd.f32 %v7223_v62, %v7211_v21  ;;  %v7243_v52 = vadd.f32 %v7231_v4, %v7213_v16 }
0x1686   :  { %7274 = vst [vmem:[%s9719_s13] sm:$0xff] %v7266_v18  ;;  %7276 = vst [vmem:[%s9719_s13 + $0x10] sm:$0xff] %v7268_v47  ;;  %v7270_v28 = vmul.f32 %v7249_v6, %v7240_v49  ;;  %v7272_v29 = vmul.f32 %v7257_v11, %v7242_v31 }
0x1687   :  { %7275 = vst [vmem:[%s9719_s13 + $0x8] sm:$0xff] %v7267_v50  ;;  %7277 = vst [vmem:[%s9719_s13 + $0x18] sm:$0xff] %v7269_v44  ;;  %v7271_v34 = vmul.f32 %v7253_v19, %v7241_v51  ;;  %v7273_v7 = vmul.f32 %v7261_v60, %v7243_v52 }
0x1688   :  { %7278 = vst [vmem:[%s9719_s13 + $0x20] sm:$0xff] %v7270_v28  ;;  %7280 = vst [vmem:[%s9719_s13 + $0x30] sm:$0xff] %v7272_v29 }
0x1689   :  { %7279 = vst [vmem:[%s9719_s13 + $0x28] sm:$0xff] %v7271_v34  ;;  %7281 = vst [vmem:[%s9719_s13 + $0x38] sm:$0xff] %v7273_v7 }
0x168a   :  { %7286 = vsyncpa [#allocation3], 1 }
0x168b   :  { %7287 = vsyncpa [#allocation5], 1 }
0x168c   :  { %7288 = vsyncpa [#allocation8], 1 }

</bundles_post_ra>
